<compile_context>
chip_gen: v7x
topology: tpu7x:2x2x1
jax: 0.10.0
libtpu: 0.0.40
codegen_flags: <defaults>
</compile_context>

<pallas_src>
import functools
import math

import jax
import jax.numpy as jnp
from jax.experimental import pallas as pl
from jax.experimental.pallas import tpu as pltpu

LANE = 128


def _round_up(v, m):
    return ((v + m - 1) // m) * m


def _pick_tile(hw, pref):
    """Largest multiple of 128 that is <= pref and divides hw; else hw itself."""
    t = min(pref, hw)
    for cand in range(t - t % LANE, 0, -LANE):
        if hw % cand == 0:
            return cand
    return hw


# ---------------------------------------------------------------------------
# Pallas kernel: grid = (batch, query tile, key tile), key tile innermost.
# Inputs are the pre-projected g(x), f(x)^T, h(x) tiles plus the residual.
# ---------------------------------------------------------------------------
def self_attn_kernel(cout,
                     gamma_ref, gq_ref, fT_ref, h_ref, xres_ref,
                     o_ref, m_s, l_s, acc_s):
    k = pl.program_id(2)
    nk = pl.num_programs(2)

    # ---- per query tile init (k == 0): online-softmax state
    @pl.when(k == 0)
    def _init():
        m_s[...] = jnp.full(m_s.shape, -jnp.inf, jnp.float32)
        l_s[...] = jnp.zeros(l_s.shape, jnp.float32)
        acc_s[...] = jnp.zeros(acc_s.shape, jnp.float32)

    # ---- scores: plain (tq, csq_p) x (csq_p, tk) contraction (f pre-transposed)
    s = jnp.dot(gq_ref[0], fT_ref[0], preferred_element_type=jnp.float32)  # (tq, tk)

    # ---- online softmax update (f32 statistics; f32 exp for v5e portability)
    m_prev = m_s[...]
    m_new = jnp.maximum(m_prev, jnp.max(s, axis=-1, keepdims=True))
    alpha = jnp.exp(m_prev - m_new)
    p = jnp.exp(s - m_new)
    l_s[...] = alpha * l_s[...] + jnp.sum(p, axis=-1, keepdims=True)
    acc_s[...] = alpha * acc_s[...] + jnp.dot(
        p.astype(jnp.bfloat16), h_ref[0], preferred_element_type=jnp.float32)
    m_s[...] = m_new

    # ---- finalize: normalize, fold gamma, add residual, lane-dense store
    @pl.when(k == nk - 1)
    def _fin():
        inv_l = pl.reciprocal(l_s[...], approx=True)                 # (tq, 1)
        scale = gamma_ref[0] * inv_l                                 # gamma folded in
        acc_t = (acc_s[...] * scale).T                               # (cout_p, tq) aligned
        o_ref[0] = acc_t[:cout, :] + xres_ref[0]                     # (cout, tq)


# ---------------------------------------------------------------------------
# Wrapper
# ---------------------------------------------------------------------------
def self_attn_pallas(x_nlc, x_ncl, wf_t, bf, wg_t, bg, wh_t, bh, gamma,
                     *, block_q=256, block_k=256):
    """x_nlc: (N, HW, C) f32 (rows for the projection matmuls);
    x_ncl: (N, C, HW) f32 (residual / output layout).
    Weights are (C_in, C_out), biases (1, C_out), gamma (1,)."""
    N, HW, C = x_nlc.shape
    csq = wf_t.shape[1]
    cout = wh_t.shape[1]
    assert wg_t.shape == (C, csq) and wh_t.shape == (C, cout)
    assert cout == C, "module's final reshape requires out_channels == in_channels"

    tq = _pick_tile(HW, block_q)
    tk = _pick_tile(HW, block_k)
    nq, nk = HW // tq, HW // tk

    csq_p = _round_up(csq, LANE)       # pad score contraction dim to 128 lanes
    cout_p = _round_up(cout, LANE)     # pad value/accumulator width to 128 lanes
    width = csq_p + cout_p

    f32, bf16 = jnp.float32, jnp.bfloat16

    # padded projection weights: g (query) and fused [f | h] (key/value)
    wq = jnp.zeros((C, csq_p), f32).at[:, :csq].set(wg_t).astype(bf16)
    bq = jnp.zeros((1, csq_p), f32).at[:, :csq].set(bg)
    wkv = jnp.zeros((C, width), f32)
    wkv = wkv.at[:, :csq].set(wf_t).at[:, csq_p:csq_p + cout].set(wh_t).astype(bf16)
    bkv = jnp.zeros((1, width), f32)
    bkv = bkv.at[:, :csq].set(bf).at[:, csq_p:csq_p + cout].set(bh)

    # ---- one-shot projections (never recomputed per query tile). bf16 MXU
    # inputs, f32 accumulate, bf16 results.  f is stored pre-transposed so the
    # in-kernel score matmul needs no relayout.
    xb = x_nlc.astype(bf16)
    gq = (jnp.einsum("nlc,cd->nld", xb, wq,
                     preferred_element_type=f32) + bq).astype(bf16)     # (N, HW, csq_p)
    kv = jnp.einsum("nlc,cd->nld", xb, wkv,
                    preferred_element_type=f32) + bkv                   # (N, HW, width) f32
    fT = jnp.transpose(kv[..., :csq_p], (0, 2, 1)).astype(bf16)         # (N, csq_p, HW)
    hv = kv[..., csq_p:].astype(bf16)                                   # (N, HW, cout_p)

    # attention-core cost only (projections are separate XLA matmuls now)
    flops = 2 * N * HW * HW * (csq_p + cout_p)          # scores + context
    bytes_accessed = (2 * N * HW * csq_p                # g(x): read once per batch
                      + 2 * N * nq * HW * width         # f^T/h: streamed per query tile
                      + 4 * N * HW * cout * 2)          # residual in + output out
    cost = pl.CostEstimate(flops=flops, transcendentals=N * HW * HW,
                           bytes_accessed=bytes_accessed)

    kernel = functools.partial(self_attn_kernel, cout)

    out_ncl = pl.pallas_call(
        kernel,
        out_shape=jax.ShapeDtypeStruct((N, cout, HW), jnp.float32),
        grid_spec=pltpu.PrefetchScalarGridSpec(
            num_scalar_prefetch=0,
            grid=(N, nq, nk),
            in_specs=[
                pl.BlockSpec(memory_space=pltpu.MemorySpace.SMEM),         # gamma
                pl.BlockSpec((1, tq, csq_p), lambda n, q, k: (n, q, 0)),   # g(x) query tile
                pl.BlockSpec((1, csq_p, tk), lambda n, q, k: (n, 0, k)),   # f(x)^T key tile
                pl.BlockSpec((1, tk, cout_p), lambda n, q, k: (n, k, 0)),  # h(x) value tile
                pl.BlockSpec((1, cout, tq), lambda n, q, k: (n, 0, q)),    # residual (C,HW)
            ],
            out_specs=pl.BlockSpec((1, cout, tq), lambda n, q, k: (n, 0, q)),
            scratch_shapes=[
                pltpu.VMEM((tq, 1), jnp.float32),        # running max
                pltpu.VMEM((tq, 1), jnp.float32),        # running denom
                pltpu.VMEM((tq, cout_p), jnp.float32),   # output accumulator
            ],
        ),
        compiler_params=pltpu.CompilerParams(
            dimension_semantics=("parallel", "parallel", "arbitrary"),
            # sized to stay well under v7x's 64 MiB VMEM, above the 16/32 MiB
            # scoped defaults so the 256-wide tiles are not capped.
            vmem_limit_bytes=48 * 1024 * 1024,
        ),
        cost_estimate=cost,
    )(gamma, gq, fT, hv, x_ncl)
    return out_ncl


# ---------------------------------------------------------------------------
# Deterministic parameter construction (xavier uniform + spectral norm),
# mirroring Self_Attn.__init__ with sn=True.
# ---------------------------------------------------------------------------
def xavier_uniform(key, out_c, in_c):
    bound = math.sqrt(6.0 / (in_c + out_c))
    return jax.random.uniform(key, (out_c, in_c), jnp.float32, -bound, bound)


def spectral_normalize(w_mat, u, n_iters=1, eps=1e-12):
    def l2norm(v):
        return v / jnp.maximum(jnp.linalg.norm(v), eps)
    v = None
    for _ in range(n_iters):
        v = l2norm(w_mat.T @ u)
        u = l2norm(w_mat @ v)
    sigma = u @ (w_mat @ v)
    return w_mat / sigma


def make_params(key, in_channels, out_channels):
    csq = int(math.sqrt(out_channels))
    keys = jax.random.split(key, 9)
    params = {}
    for name, oc, kw, kb, ku in (
        ("f", csq, keys[0], keys[1], keys[2]),
        ("g", csq, keys[3], keys[4], keys[5]),
        ("h", out_channels, keys[6], keys[7], keys[8]),
    ):
        w = xavier_uniform(kw, oc, in_channels)            # (out, in) 1x1 kernel
        u = jax.random.normal(ku, (oc,), jnp.float32)
        u = u / jnp.maximum(jnp.linalg.norm(u), 1e-12)
        w_sn = spectral_normalize(w, u, n_iters=1)
        b_bound = 1.0 / math.sqrt(in_channels)             # torch conv bias init
        b = jax.random.uniform(kb, (1, oc), jnp.float32, -b_bound, b_bound)
        params[name] = (w_sn.T, b)                         # store transposed (in, out)
    params["gamma"] = jnp.zeros((1,), jnp.float32)         # attention_multiplier = 0.0
    return params


def self_attn_forward(x_nchw, params, *, block_q=256, block_k=256):
    """Full module forward. x_nchw: (N, C, H, W) float32."""
    N, C, H, W = x_nchw.shape
    x_ncl = x_nchw.reshape(N, C, H * W)                    # free reshape (NCHW flatten)
    x_nlc = jnp.transpose(x_ncl, (0, 2, 1))                # rows for the channel matmuls
    wf_t, bf = params["f"]
    wg_t, bg = params["g"]
    wh_t, bh = params["h"]
    out_ncl = self_attn_pallas(x_nlc, x_ncl, wf_t, bf, wg_t, bg, wh_t, bh,
                               params["gamma"], block_q=block_q, block_k=block_k)
    return out_ncl.reshape(N, C, H, W)                     # no post-kernel transpose


# Pure-JAX reference mirroring the kernel's bf16-input / f32-accumulate numerics.
def self_attn_reference(x_nlc, wf_t, bf, wg_t, bg, wh_t, bh, gamma):
    r = lambda a: a.astype(jnp.bfloat16).astype(jnp.float32)
    xb = r(x_nlc)
    fx = r(xb @ r(wf_t) + bf)
    gx = r(xb @ r(wg_t) + bg)
    hx = r(xb @ r(wh_t) + bh)
    s = jnp.einsum("nic,njc->nij", gx, fx)
    beta = jax.nn.softmax(s, axis=-1)
    o = jnp.einsum("nij,njc->nic", beta, hx)
    return gamma[0] * o + x_nlc


if __name__ == "__main__":
    key = jax.random.PRNGKey(0)
    k_x, k_p = jax.random.split(key)

    # out_channels must equal in_channels for the module's final reshape.
    N, C, H, W = 2, 4, 16, 16                 # HW = 256
    x = jax.random.normal(k_x, (N, C, H, W), jnp.float32)
    params = make_params(k_p, in_channels=C, out_channels=C)

    # Module-faithful forward (default 256 tiles): attention_multiplier == 0.0
    # -> output == input exactly.
    out = jax.block_until_ready(self_attn_forward(x, params))
    assert out.shape == x.shape
    assert jnp.allclose(out, x, atol=1e-5), "gamma=0 residual path mismatch"

    # Kernel math vs pure-JAX reference with a nonzero multiplier, using 128
    # tiles so the multi-tile online-softmax path (2x2 q/k grid) is exercised.
    gamma_test = jnp.array([0.5], jnp.float32)
    x_ncl = x.reshape(N, C, H * W)
    x_nlc = jnp.transpose(x_ncl, (0, 2, 1))
    wf_t, bf = params["f"]; wg_t, bg = params["g"]; wh_t, bh = params["h"]
    got_ncl = self_attn_pallas(x_nlc, x_ncl, wf_t, bf, wg_t, bg, wh_t, bh,
                               gamma_test, block_q=128, block_k=128)
    got = jnp.transpose(got_ncl, (0, 2, 1))   # back to (N, HW, C) for comparison
    want = self_attn_reference(x_nlc, wf_t, bf, wg_t, bg, wh_t, bh, gamma_test)
    got = jax.block_until_ready(got)
    assert jnp.allclose(got, want, atol=2e-2, rtol=2e-2), "kernel mismatch vs reference"

    print("KERNEL_OK")
</pallas_src>

<mosaic_0001>
module attributes {stable_mosaic.version = 11 : i64} {
  func.func @self_attn_kernel(%arg0: i32, %arg1: i32, %arg2: i32, %arg3: memref<1xf32, #tpu.memory_space<smem>>, %arg4: memref<1x256x128xbf16, #tpu.memory_space<vmem>>, %arg5: memref<1x128x256xbf16, #tpu.memory_space<vmem>>, %arg6: memref<1x256x128xbf16, #tpu.memory_space<vmem>>, %arg7: memref<1x4x256xf32, #tpu.memory_space<vmem>>, %arg8: memref<1x4x256xf32, #tpu.memory_space<vmem>>, %arg9: memref<256x1xf32, #tpu.memory_space<vmem>>, %arg10: memref<256x1xf32, #tpu.memory_space<vmem>>, %arg11: memref<256x128xf32, #tpu.memory_space<vmem>>) attributes {dimension_semantics = [#tpu.dimension_semantics<parallel>, #tpu.dimension_semantics<parallel>, #tpu.dimension_semantics<arbitrary>], iteration_bounds = array<i64: 2, 1, 1>, scalar_prefetch = 0 : i64, scratch_operands = 3 : i64, tpu.core_type = #tpu.core_type<tc>, window_params = [{transform_indices = @transform_0, window_bounds = array<i64: 1>}, {transform_indices = @transform_1, window_bounds = array<i64: 1, 256, 128>}, {transform_indices = @transform_2, window_bounds = array<i64: 1, 128, 256>}, {transform_indices = @transform_3, window_bounds = array<i64: 1, 256, 128>}, {transform_indices = @transform_4, window_bounds = array<i64: 1, 4, 256>}, {transform_indices = @transform_5, window_bounds = array<i64: 1, 4, 256>}]} {
    %c0_i32 = arith.constant 0 : i32
    %0 = arith.cmpi eq, %arg2, %c0_i32 : i32
    %1 = arith.extui %0 : i1 to i32
    %c0_i32_0 = arith.constant 0 : i32
    %2 = arith.cmpi ne, %1, %c0_i32_0 : i32
    scf.if %2 {
      %cst_26 = arith.constant 0xFF800000 : f32
      %36 = vector.broadcast %cst_26 : f32 to vector<256x1xf32>
      %c0_27 = arith.constant 0 : index
      %c0_28 = arith.constant 0 : index
      %37 = vector.load %arg9[%c0_27, %c0_28] : memref<256x1xf32, #tpu.memory_space<vmem>>, vector<256x1xf32>
      tpu.vector_store %arg9[%c0_27, %c0_28], %36 {strides = array<i32>} : memref<256x1xf32, #tpu.memory_space<vmem>>, vector<256x1xf32>,
      %cst_29 = arith.constant 0.000000e+00 : f32
      %38 = vector.broadcast %cst_29 : f32 to vector<256x1xf32>
      %c0_30 = arith.constant 0 : index
      %c0_31 = arith.constant 0 : index
      %39 = vector.load %arg10[%c0_30, %c0_31] : memref<256x1xf32, #tpu.memory_space<vmem>>, vector<256x1xf32>
      tpu.vector_store %arg10[%c0_30, %c0_31], %38 {strides = array<i32>} : memref<256x1xf32, #tpu.memory_space<vmem>>, vector<256x1xf32>,
      %cst_32 = arith.constant 0.000000e+00 : f32
      %40 = vector.broadcast %cst_32 : f32 to vector<256x128xf32>
      %c0_33 = arith.constant 0 : index
      %c0_34 = arith.constant 0 : index
      %41 = vector.load %arg11[%c0_33, %c0_34] : memref<256x128xf32, #tpu.memory_space<vmem>>, vector<256x128xf32>
      tpu.vector_store %arg11[%c0_33, %c0_34], %40 {strides = array<i32>} : memref<256x128xf32, #tpu.memory_space<vmem>>, vector<256x128xf32>,
    } else {
    }
    %c0 = arith.constant 0 : index
    %c0_1 = arith.constant 0 : index
    %c0_2 = arith.constant 0 : index
    %3 = vector.load %arg4[%c0, %c0_1, %c0_2] : memref<1x256x128xbf16, #tpu.memory_space<vmem>>, vector<1x256x128xbf16>
    %4 = vector.shape_cast %3 : vector<1x256x128xbf16> to vector<256x128xbf16>
    %c0_3 = arith.constant 0 : index
    %c0_4 = arith.constant 0 : index
    %c0_5 = arith.constant 0 : index
    %5 = vector.load %arg5[%c0_3, %c0_4, %c0_5] : memref<1x128x256xbf16, #tpu.memory_space<vmem>>, vector<1x128x256xbf16>
    %6 = vector.shape_cast %5 : vector<1x128x256xbf16> to vector<128x256xbf16>
    %cst = arith.constant dense<0.000000e+00> : vector<256x256xf32>
    %7 = tpu.matmul %4, %6, %cst {dimension_numbers = #tpu.dot_dimension_numbers<[1], [0], [0], [1], [0, 0, 1, 1], [], []>} : vector<256x128xbf16>, vector<128x256xbf16>, vector<256x256xf32> -> vector<256x256xf32>
    %c0_6 = arith.constant 0 : index
    %c0_7 = arith.constant 0 : index
    %8 = vector.load %arg9[%c0_6, %c0_7] : memref<256x1xf32, #tpu.memory_space<vmem>>, vector<256x1xf32>
    %cst_8 = arith.constant dense<0xFF800000> : vector<256xf32>
    %9 = vector.multi_reduction <maximumf>, %7, %cst_8 [1] : vector<256x256xf32> to vector<256xf32>
    %10 = vector.shape_cast %9 : vector<256xf32> to vector<256x1xf32>
    %11 = arith.maximumf %8, %10 : vector<256x1xf32>
    %12 = arith.subf %8, %11 : vector<256x1xf32>
    %13 = math.exp %12 : vector<256x1xf32>
    %14 = vector.broadcast %11 : vector<256x1xf32> to vector<256x256xf32>
    %15 = arith.subf %7, %14 : vector<256x256xf32>
    %16 = math.exp %15 : vector<256x256xf32>
    %c0_9 = arith.constant 0 : index
    %c0_10 = arith.constant 0 : index
    %17 = vector.load %arg10[%c0_9, %c0_10] : memref<256x1xf32, #tpu.memory_space<vmem>>, vector<256x1xf32>
    %18 = arith.mulf %13, %17 : vector<256x1xf32>
    %cst_11 = arith.constant dense<0.000000e+00> : vector<256xf32>
    %19 = vector.multi_reduction <add>, %16, %cst_11 [1] : vector<256x256xf32> to vector<256xf32>
    %20 = vector.shape_cast %19 : vector<256xf32> to vector<256x1xf32>
    %21 = arith.addf %18, %20 : vector<256x1xf32>
    %c0_12 = arith.constant 0 : index
    %c0_13 = arith.constant 0 : index
    %22 = vector.load %arg10[%c0_12, %c0_13] : memref<256x1xf32, #tpu.memory_space<vmem>>, vector<256x1xf32>
    tpu.vector_store %arg10[%c0_12, %c0_13], %21 {strides = array<i32>} : memref<256x1xf32, #tpu.memory_space<vmem>>, vector<256x1xf32>,
    %c0_14 = arith.constant 0 : index
    %c0_15 = arith.constant 0 : index
    %23 = vector.load %arg11[%c0_14, %c0_15] : memref<256x128xf32, #tpu.memory_space<vmem>>, vector<256x128xf32>
    %24 = vector.broadcast %13 : vector<256x1xf32> to vector<256x128xf32>
    %25 = arith.mulf %24, %23 : vector<256x128xf32>
    %26 = arith.truncf %16 : vector<256x256xf32> to vector<256x256xbf16>
    %c0_16 = arith.constant 0 : index
    %c0_17 = arith.constant 0 : index
    %c0_18 = arith.constant 0 : index
    %27 = vector.load %arg6[%c0_16, %c0_17, %c0_18] : memref<1x256x128xbf16, #tpu.memory_space<vmem>>, vector<1x256x128xbf16>
    %28 = vector.shape_cast %27 : vector<1x256x128xbf16> to vector<256x128xbf16>
    %cst_19 = arith.constant dense<0.000000e+00> : vector<256x128xf32>
    %29 = tpu.matmul %26, %28, %cst_19 {dimension_numbers = #tpu.dot_dimension_numbers<[1], [0], [0], [1], [0, 0, 1, 1], [], []>} : vector<256x256xbf16>, vector<256x128xbf16>, vector<256x128xf32> -> vector<256x128xf32>
    %30 = arith.addf %25, %29 : vector<256x128xf32>
    %c0_20 = arith.constant 0 : index
    %c0_21 = arith.constant 0 : index
    %31 = vector.load %arg11[%c0_20, %c0_21] : memref<256x128xf32, #tpu.memory_space<vmem>>, vector<256x128xf32>
    tpu.vector_store %arg11[%c0_20, %c0_21], %30 {strides = array<i32>} : memref<256x128xf32, #tpu.memory_space<vmem>>, vector<256x128xf32>,
    %c0_22 = arith.constant 0 : index
    %c0_23 = arith.constant 0 : index
    %32 = vector.load %arg9[%c0_22, %c0_23] : memref<256x1xf32, #tpu.memory_space<vmem>>, vector<256x1xf32>
    tpu.vector_store %arg9[%c0_22, %c0_23], %11 {strides = array<i32>} : memref<256x1xf32, #tpu.memory_space<vmem>>, vector<256x1xf32>,
    %c0_i32_24 = arith.constant 0 : i32
    %33 = arith.cmpi eq, %arg2, %c0_i32_24 : i32
    %34 = arith.extui %33 : i1 to i32
    %c0_i32_25 = arith.constant 0 : i32
    %35 = arith.cmpi ne, %34, %c0_i32_25 : i32
    scf.if %35 {
      %c0_26 = arith.constant 0 : index
      %c0_27 = arith.constant 0 : index
      %36 = vector.load %arg10[%c0_26, %c0_27] : memref<256x1xf32, #tpu.memory_space<vmem>>, vector<256x1xf32>
      %37 = tpu.reciprocal %36 {approx = true} : vector<256x1xf32> -> vector<256x1xf32>
      %c0_28 = arith.constant 0 : index
      %38 = memref.load %arg3[%c0_28] : memref<1xf32, #tpu.memory_space<smem>>
      %39 = vector.broadcast %38 : f32 to vector<256x1xf32>
      %40 = arith.mulf %39, %37 : vector<256x1xf32>
      %c0_29 = arith.constant 0 : index
      %c0_30 = arith.constant 0 : index
      %41 = vector.load %arg11[%c0_29, %c0_30] : memref<256x128xf32, #tpu.memory_space<vmem>>, vector<256x128xf32>
      %42 = vector.broadcast %40 : vector<256x1xf32> to vector<256x128xf32>
      %43 = arith.mulf %41, %42 : vector<256x128xf32>
      %44 = tpu.transpose %43, [1, 0] : vector<256x128xf32> -> vector<128x256xf32>
      %45 = vector.extract_strided_slice %44 {offsets = [0, 0], sizes = [4, 256], strides = [1, 1]} : vector<128x256xf32> to vector<4x256xf32>
      %c0_31 = arith.constant 0 : index
      %c0_32 = arith.constant 0 : index
      %c0_33 = arith.constant 0 : index
      %46 = vector.load %arg7[%c0_31, %c0_32, %c0_33] : memref<1x4x256xf32, #tpu.memory_space<vmem>>, vector<1x4x256xf32>
      %47 = vector.shape_cast %46 : vector<1x4x256xf32> to vector<4x256xf32>
      %48 = arith.addf %45, %47 : vector<4x256xf32>
      %c0_34 = arith.constant 0 : index
      %c0_35 = arith.constant 0 : index
      %c0_36 = arith.constant 0 : index
      %49 = vector.load %arg8[%c0_34, %c0_35, %c0_36] : memref<1x4x256xf32, #tpu.memory_space<vmem>>, vector<1x4x256xf32>
      %50 = vector.shape_cast %49 : vector<1x4x256xf32> to vector<4x256xf32>
      %51 = vector.shape_cast %48 : vector<4x256xf32> to vector<1x4x256xf32>
      tpu.vector_store %arg8[%c0_34, %c0_35, %c0_36], %51 {strides = array<i32>} : memref<1x4x256xf32, #tpu.memory_space<vmem>>, vector<1x4x256xf32>,
    } else {
    }
    return
  }
  func.func @transform_0(%arg0: i32, %arg1: i32, %arg2: i32) -> i32 {
    %c0_i32 = arith.constant 0 : i32
    %c0_i32_0 = arith.constant 0 : i32
    return %c0_i32 : i32
  }
  func.func @transform_1(%arg0: i32, %arg1: i32, %arg2: i32) -> (i32, i32, i32) {
    %c0_i32 = arith.constant 0 : i32
    %c0_i32_0 = arith.constant 0 : i32
    return %arg0, %arg1, %c0_i32 : i32, i32, i32
  }
  func.func @transform_2(%arg0: i32, %arg1: i32, %arg2: i32) -> (i32, i32, i32) {
    %c0_i32 = arith.constant 0 : i32
    %c0_i32_0 = arith.constant 0 : i32
    return %arg0, %c0_i32, %arg2 : i32, i32, i32
  }
  func.func @transform_3(%arg0: i32, %arg1: i32, %arg2: i32) -> (i32, i32, i32) {
    %c0_i32 = arith.constant 0 : i32
    %c0_i32_0 = arith.constant 0 : i32
    return %arg0, %arg2, %c0_i32 : i32, i32, i32
  }
  func.func @transform_4(%arg0: i32, %arg1: i32, %arg2: i32) -> (i32, i32, i32) {
    %c0_i32 = arith.constant 0 : i32
    %c0_i32_0 = arith.constant 0 : i32
    return %arg0, %c0_i32, %arg1 : i32, i32, i32
  }
  func.func @transform_5(%arg0: i32, %arg1: i32, %arg2: i32) -> (i32, i32, i32) {
    %c0_i32 = arith.constant 0 : i32
    %c0_i32_0 = arith.constant 0 : i32
    return %arg0, %c0_i32, %arg1 : i32, i32, i32
  }
}

</mosaic_0001>

<bundles_post_ra>
// kernel: tpu_custom_call.1
= control target key start
LH: loop header
LB: loop body
LE: loop exit
PB: predicated region body
PF: predicated region fallthrough
CT: control target
= control target key end

     0   :  { %s5326_s0 = inlined_call_operand.<no memory space> [shape: f32[1], index: 0, kind: input, shape index: {}]   ;;  %s5327_s1 = inlined_call_operand.hbm [shape: bf16[2,256,128], index: 1, kind: input, shape index: {}]   ;;  %s5328_s2 = inlined_call_operand.hbm [shape: bf16[2,128,256], index: 2, kind: input, shape index: {}]   ;;  %s5329_s3 = inlined_call_operand.hbm [shape: bf16[2,256,128], index: 3, kind: input, shape index: {}]   ;;  %s5330_s4 = inlined_call_operand.hbm [shape: f32[2,4,256], index: 4, kind: input, shape index: {}]   ;;  %s5331_s5 = inlined_call_operand.hbm [shape: f32[2,4,256], index: 5, kind: output, shape index: {}]  }
   0x1   :  { %5390 = sst [smem:[#allocation75_spill]] %s5327_s1 }
   0x2   :  { %5391 = sst [smem:[#allocation76_spill]] %s5328_s2 }
   0x3   :  { %10 = sst [smem:[#allocation5]] %s5326_s0 }
   0x4   :  { %11 = vsyncpa [#allocation7], 0 }
   0x5   :  { %13 = vsyncpa [#allocation7 + $0x1], 0 }
   0x6   :  { %14 = vsyncpa [#allocation10], 0 }
   0x7   :  { %16 = vsyncpa [#allocation10 + $0x1], 0 }
   0x8   :  { %17 = vsyncpa [#allocation13], 0 }
   0x9   :  { %19 = vsyncpa [#allocation13 + $0x1], 0 }
   0xa   :  { %20 = vsyncpa [#allocation8], 0 }
   0xb   :  { %22 = vsyncpa [#allocation8 + $0x1], 0  ;;  %s3821_s20 = smov 0   ;;  %s3823_s21 = smov 0  }
   0xc   :  { %s3825_s22 = smov 0   ;;  %s3827_s23 = smov 0  }
   0xd   :  { %s3829_s24 = smov 0   ;;  %s3831_s25 = smov 0  }
   0xe LB: > { %5392 = sst [smem:[#allocation19_spill]] %s3762_s22  ;;  %s3852_s0 = sadd.s32 4294967295, %s3774_s25   ;;  %s3774_s25 = sphi %s3831_s25, %s28_s25   ;;  %s3770_s24 = sphi %s3829_s24, %s5560_s24   ;;  %s3766_s23 = sphi %s3827_s23, %s5559_s23   ;;  %s3762_s22 = sphi %s3825_s22, %s5555_s22   ;;  %s3758_s21 = sphi %s3823_s21, %s5558_s21   ;;  %s3754_s20 = sphi %s3821_s20, %s5557_s20  }
   0xf   : > { %s2974_s26 = sadd.s32 4294967294, %s3774_s25   ;;  %s47_s27 = sadd.s32 1, %s3770_s24 }
  0x10   : > { %s77_s28 = sadd.s32 1, %s3762_s22  ;;  %p49_p0 = scmp.ge.s32.totalorder %s47_s27, 2 }
  0x11   : > { %p84_p1 = scmp.ne.s32.totalorder %s3762_s22, %s3758_s21  ;;  %p85_p2 = scmp.eq.s32.totalorder %s3774_s25, 0 }
  0x12   : > { %p90_p3 = scmp.ne.s32.totalorder %s3758_s21, %s3754_s20  ;;  %s5562_s27 = smov (%p49_p0, %s47_s27), 0 }
  0x13   : > { %5393 = sst [smem:[#allocation20_spill]] %s5562_s27  ;;  %p3864_p4 = por %p85_p2, %p84_p1 }
  0x14   : > { %p91_p5 = scmp.eq.s32.totalorder %s3852_s0, 0  ;;  %s72_s30 = ssub.s32 %s3770_s24, %s5562_s27 }
  0x15   : > { %p200_p6 = scmp.eq.s32.totalorder %s3852_s0, 1  ;;  %p75_p7 = scmp.eq.s32.totalorder %s72_s30, 0 }
  0x16   : > { %p3872_p8 = por %p91_p5, %p90_p3  ;;  %p206_p10 = scmp.eq.s32.totalorder %s2974_s26, 1 }
  0x17   : > { %p3876_p9 = por %p200_p6, %p84_p1  ;;  %p3192_p13 = scmp.lt.s32.totalorder %s3774_s25, 2 }
  0x18   : > { %s5395_s6 = scalar_select %p3872_p8, 1, 0 }
  0x19   : > { %s5396_s7 = scalar_select %p3876_p9, 1, 0 }
  0x1a   : > { %s3881_s8 = scalar_select %p75_p7, %s3762_s22, %s77_s28  }
  0x1b   : > { %p3883_p11 = por %p206_p10, %p90_p3  ;;  %s3890_s10 = sand.u32 1, %s3762_s22  }
  0x1c   : > { %5397 = sst [smem:[#allocation21_spill]] %s3881_s8  ;;  %s3893_s11 = sshll.u32 %s3890_s10, 7 }
  0x1d   : > { %s5398_s9 = scalar_select %p3883_p11, 1, 0 }
  0x1e   : > { %s3896_s12 = sshll.u32 %s3770_s24, 11  ;;  %p3900_p0 = pnand %p3192_p13, %p3864_p4 }
  0x1f   : > { %s252_s14 = sand.u32 1, %s3774_s25   ;;  %s5400_s2 = sld [smem:[#allocation76_spill]] }
  0x20   : > { %s5399_s13 = scalar_select %p3900_p0, 1, 0 }
  0x21   : > { %s256_s18 = scalar_lea.vmem [#allocation9], %s3893_s11  ;;  %s3914_s26 = scalar_lea.sflag [#allocation10], %s252_s14 }
  0x22   : > { %s265_s19 = sshll.u32 %s256_s18, 4  ;;  %p3920_p2 = pneg %p3900_p0  ;;  %s3912_s19 = int_to_ptr.vmem [resolvable:$true] %s265_s19 }
  0x25   : > { %s3909_s17 = scalar_lea.hbm %s5400_s2, %s3896_s12  ;;  %s3569_s16 = scalar_lea.hbm %s5400_s2, 4096 }
  0x26   : > { %s3564_s28 = scalar_lea.hbm %s3909_s17, 2048  ;;  %p3570_p5 = scmp.lt.u32.totalorder %s3909_s17, %s5400_s2 }
  0x27   : > { %p3565_p1 = scmp.ne.s32.totalorder %s3909_s17, %s3564_s28  ;;  %p3571_p6 = scmp.lt.u32.totalorder %s3569_s16, %s3564_s28 }
  0x28   : > { %p3573_p10 = scmp.lt.u32.totalorder %s3564_s28, %s3909_s17 }
  0x29   : > { %p3567_p3 = pnand %p3920_p2, %p3565_p1  ;;  %p3572_p7 = por %p3571_p6, %p3570_p5 }
  0x2b   : > { %p3568_p4 = pneg %p3567_p3  ;;  %p3574_p13 = por %p3573_p10, %p3572_p7 }
  0x2d   : > { %p3575_p12 = pnand %p3574_p13, %p3568_p4 }
  0x2f   : > { %3578 = shalt.err (!%p3575_p12)
}
  0x30   : > { %s3579_s14 = scalar_lea.vmem %s3912_s19, 2048  ;;  %s3776_s30 = smov [#allocation9]  }
  0x31   : > { %p3580_p1 = scmp.ne.s32.totalorder %s3912_s19, %s3579_s14  ;;  %s3584_s15 = sshll.u32 %s3776_s30, 4  ;;  %s3585_s15 = int_to_ptr.vmem [resolvable:$false] %s3584_s15 }
  0x32   : > { %s3586_s27 = scalar_lea.vmem %s3585_s15, 4096  ;;  %p3587_p9 = scmp.lt.s32.totalorder %s3912_s19, %s3585_s15 }
  0x33   : > { %p3582_p3 = pnand %p3580_p1, %p3920_p2  ;;  %p3588_p8 = scmp.lt.s32.totalorder %s3586_s27, %s3579_s14 }
  0x35   : > { %p3583_p11 = pneg %p3582_p3  ;;  %p3589_p5 = por %p3588_p8, %p3587_p9 }
  0x37   : > { %p3590_p6 = pnand %p3589_p5, %p3583_p11 }
  0x39   : > { %3593 = shalt.err (!%p3590_p6)
}
  0x3a   : > { %s3777_s28 = smov 128   ;;  %s3778_s16 = smov 8  }
  0x3b   : > { %3181 = dma.hbm_to_vmem [thread:$0]  (!%p3900_p0), %s3909_s17, 2048, %s3912_s19, %s3914_s26, %s3777_s28, %s3777_s28, %s3778_s16  }
  0x3c   : > { %p2989_p12 = scmp.ge.s32.totalorder %s3774_s25, 1  ;;  %p317_p4 = scmp.lt.s32.totalorder %s3774_s25, 3 }
  0x3d   : > { %s5403_s1 = sld [smem:[#allocation75_spill]]  ;;  %s233_s27 = scalar_lea.vmem [#allocation6], %s3893_s11 }
  0x3e   : > { %p3946_p7 = pnand %p2989_p12, %p317_p4  ;;  %s242_s2 = sshll.u32 %s233_s27, 4  ;;  %s3957_s2 = int_to_ptr.vmem [resolvable:$true] %s242_s2 }
  0x3f   : > { %s230_s17 = scalar_lea.sflag [#allocation7], %s3890_s10 }
  0x40   : > { %s5402_s18 = scalar_select %p3946_p7, 1, 0 }
  0x43   : > { %s3954_s15 = scalar_lea.hbm %s5403_s1, %s3896_s12  ;;  %s3599_s14 = scalar_lea.hbm %s5403_s1, 4096 }
  0x44   : > { %s3594_s19 = scalar_lea.hbm %s3954_s15, 2048  ;;  %p3600_p10 = scmp.lt.u32.totalorder %s3954_s15, %s5403_s1 }
  0x45   : > { %p3595_p8 = scmp.ne.s32.totalorder %s3954_s15, %s3594_s19  ;;  %p3601_p13 = scmp.lt.u32.totalorder %s3599_s14, %s3594_s19 }
  0x46   : > { %p3603_p3 = scmp.lt.u32.totalorder %s3594_s19, %s3954_s15 }
  0x47   : > { %p3597_p9 = pnand %p3595_p8, %p3920_p2  ;;  %p3602_p1 = por %p3601_p13, %p3600_p10 }
  0x49   : > { %p3598_p11 = pneg %p3597_p9  ;;  %p3604_p5 = por %p3603_p3, %p3602_p1 }
  0x4b   : > { %p3605_p6 = pnand %p3604_p5, %p3598_p11 }
  0x4d   : > { %3608 = shalt.err (!%p3605_p6)
}
  0x4e   : > { %s3609_s27 = scalar_lea.vmem %s3957_s2, 2048  ;;  %s3779_s28 = smov [#allocation6]  }
  0x4f   : > { %p3610_p12 = scmp.ne.s32.totalorder %s3957_s2, %s3609_s27  ;;  %s3614_s16 = sshll.u32 %s3779_s28, 4  ;;  %s3615_s16 = int_to_ptr.vmem [resolvable:$false] %s3614_s16 }
  0x50   : > { %s3616_s8 = scalar_lea.vmem %s3615_s16, 4096  ;;  %p3617_p9 = scmp.lt.s32.totalorder %s3957_s2, %s3615_s16 }
  0x51   : > { %p3612_p4 = pnand %p3610_p12, %p3920_p2  ;;  %p3618_p7 = scmp.lt.s32.totalorder %s3616_s8, %s3609_s27 }
  0x53   : > { %p3613_p8 = pneg %p3612_p4  ;;  %p3619_p10 = por %p3618_p7, %p3617_p9 }
  0x55   : > { %p3620_p13 = pnand %p3619_p10, %p3613_p8 }
  0x57   : > { %3623 = shalt.err (!%p3620_p13)
}
  0x58   : > { %s3780_s19 = smov 64   ;;  %s3781_s14 = smov 4  }
  0x59   : > { %3178 = dma.hbm_to_vmem [thread:$0]  (!%p3900_p0), %s3954_s15, 2048, %s3957_s2, %s230_s17, %s3780_s19, %s3780_s19, %s3781_s14  }
  0x5a   : > { %s3990_s28 = scalar_lea.hbm %s5329_s3, %s3896_s12  ;;  %s279_s16 = scalar_lea.vmem [#allocation11], %s3893_s11 }
  0x5b   : > { %s288_s8 = sshll.u32 %s279_s16, 4  ;;  %s2986_s1 = sshll.u32 %s3890_s10, 3  ;;  %s3993_s8 = int_to_ptr.vmem [resolvable:$true] %s288_s8 }
  0x5c   : > { %s3624_s22 = scalar_lea.hbm %s3990_s28, 2048  ;;  %s3629_s17 = scalar_lea.hbm %s5329_s3, 4096 }
  0x5d   : > { %p3625_p7 = scmp.ne.s32.totalorder %s3990_s28, %s3624_s22  ;;  %p3630_p3 = scmp.lt.u32.totalorder %s3990_s28, %s5329_s3 }
  0x5e   : > { %p3631_p5 = scmp.lt.u32.totalorder %s3629_s17, %s3624_s22  ;;  %p3633_p12 = scmp.lt.u32.totalorder %s3624_s22, %s3990_s28 }
  0x5f   : > { %p3627_p11 = pnand %p3625_p7, %p3920_p2 }
  0x60   : > { %p3632_p6 = por %p3631_p5, %p3630_p3 }
  0x61   : > { %p3628_p1 = pneg %p3627_p11 }
  0x62   : > { %p3634_p4 = por %p3633_p12, %p3632_p6 }
  0x64   : > { %p3635_p8 = pnand %p3634_p4, %p3628_p1 }
  0x66   : > { %3638 = shalt.err (!%p3635_p8)
}
  0x67   : > { %s3639_s11 = scalar_lea.vmem %s3993_s8, 2048  ;;  %s3782_s27 = smov [#allocation11]  }
  0x68   : > { %p3640_p9 = scmp.ne.s32.totalorder %s3993_s8, %s3639_s11  ;;  %s3644_s16 = sshll.u32 %s3782_s27, 4  ;;  %s3645_s16 = int_to_ptr.vmem [resolvable:$false] %s3644_s16 }
  0x69   : > { %s3646_s2 = scalar_lea.vmem %s3645_s16, 4096  ;;  %p3647_p7 = scmp.lt.s32.totalorder %s3993_s8, %s3645_s16 }
  0x6a   : > { %p3642_p10 = pnand %p3640_p9, %p3920_p2  ;;  %p3648_p11 = scmp.lt.s32.totalorder %s3646_s2, %s3639_s11 }
  0x6c   : > { %p3643_p13 = pneg %p3642_p10  ;;  %p3649_p3 = por %p3648_p11, %p3647_p7 }
  0x6e   : > { %p3650_p5 = pnand %p3649_p3, %p3643_p13 }
  0x70   : > { %3653 = shalt.err (!%p3650_p5)
}
  0x71   : > { %3184 = dma.hbm_to_vmem [thread:$0]  (!%p3900_p0), %s3990_s28, 2048, %s3993_s8, %s3914_s26, %s3780_s19, %s3780_s19, %s3781_s14  }
  0x72   : > { %s3051_s22 = sshll.u32 %s3770_s24, 7  ;;  %s302_s30 = scalar_lea.vmem [#allocation12], %s2986_s1 }
  0x73   : > { %s4025_s12 = scalar_lea.hbm %s5330_s4, %s3051_s22  ;;  %s312_s11 = sshll.u32 %s302_s30, 4  ;;  %s313_s11 = int_to_ptr.vmem [resolvable:$true] %s312_s11 }
  0x74   : > { %s299_s27 = scalar_lea.sflag [#allocation13], %s3890_s10  ;;  %s3654_s16 = scalar_lea.hbm %s4025_s12, 128 }
  0x75   : > { %p3655_p1 = scmp.ne.s32.totalorder %s4025_s12, %s3654_s16  ;;  %s3659_s14 = scalar_lea.hbm %s5330_s4, 256 }
  0x76   : > { %p3660_p4 = scmp.lt.u32.totalorder %s4025_s12, %s5330_s4  ;;  %p3661_p8 = scmp.lt.u32.totalorder %s3659_s14, %s3654_s16 }
  0x77   : > { %p3657_p6 = pnand %p3655_p1, %p3920_p2  ;;  %p3663_p10 = scmp.lt.u32.totalorder %s3654_s16, %s4025_s12 }
  0x78   : > { %p3662_p9 = por %p3661_p8, %p3660_p4 }
  0x79   : > { %p3658_p12 = pneg %p3657_p6 }
  0x7a   : > { %p3664_p13 = por %p3663_p10, %p3662_p9 }
  0x7c   : > { %p3665_p7 = pnand %p3664_p13, %p3658_p12 }
  0x7e   : > { %3668 = shalt.err (!%p3665_p7)
}
  0x7f   : > { %s3669_s1 = scalar_lea.vmem %s313_s11, 128  ;;  %s3783_s10 = smov [#allocation12]  }
  0x80   : > { %p3670_p11 = scmp.ne.s32.totalorder %s313_s11, %s3669_s1  ;;  %s3674_s2 = sshll.u32 %s3783_s10, 4  ;;  %s3675_s2 = int_to_ptr.vmem [resolvable:$false] %s3674_s2 }
  0x81   : > { %s3676_s22 = scalar_lea.vmem %s3675_s2, 256  ;;  %p3677_p1 = scmp.lt.s32.totalorder %s313_s11, %s3675_s2 }
  0x82   : > { %p3672_p3 = pnand %p3670_p11, %p3920_p2  ;;  %p3678_p6 = scmp.lt.s32.totalorder %s3676_s22, %s3669_s1 }
  0x84   : > { %p3673_p5 = pneg %p3672_p3  ;;  %p3679_p0 = por %p3678_p6, %p3677_p1 }
  0x86   : > { %p3680_p4 = pnand %p3679_p0, %p3673_p5 }
  0x88   : > { %3683 = shalt.err (!%p3680_p4)
}
  0x89   : > { %p5404_p8 = scmp.ne.s32.totalorder %s5399_s13, 0  ;;  %p5405_p12 = scmp.ne.s32.totalorder %s5402_s18, 0 }
  0x8b   : > { %3187 = dma.hbm_to_vmem [thread:$0]  (!%p5404_p8), %s4025_s12, 128, %s313_s11, %s299_s27  }
  0x8c   : > { %321 = sbr.rel (%p5405_p12) target bundleno = 1224 (0x4c8), region = 40 }
  0x93   : > { %s4050_s29 = sand.u32 1, %s3758_s21   ;;  %p5406_p2 = scmp.ne.s32.totalorder %s5395_s6, 0 }
  0x94   : > { %s2990_s15 = sshll.u32 %s4050_s29, 7  ;;  %s324_s17 = scalar_lea.sflag [#allocation7], %s4050_s29 }
  0x95   : > { %s4054_s30 = scalar_lea.vmem [#allocation6], %s2990_s15 }
  0x96   : > { %3737 = dma.done.wait (%p5406_p2), %s324_s17, 2048  }
  0x97   : > { %3739 = vsyncadd (%p5406_p2), %s324_s17, 4294965248  ;;  %s332_s13 = sand.u32 1, %s3852_s0   ;;  %s4061_s12 = scalar_lea.vmem [#allocation9], %s2990_s15 }
  0x98   : > { %s333_s18 = scalar_lea.sflag [#allocation10], %s332_s13 }
  0x99   : > { %3741 = dma.done.wait (%p5406_p2), %s333_s18, 4096  }
  0x9a   : > { %3743 = vsyncadd (%p5406_p2), %s333_s18, 4294963200  ;;  %s2993_s11 = sshll.u32 %s4050_s29, 3  ;;  %s4068_s27 = scalar_lea.vmem [#allocation11], %s2990_s15 }
  0x9b   : > { %s351_s16 = scalar_lea.sflag [#allocation13], %s4050_s29  ;;  %s4073_s26 = scalar_lea.vmem [#allocation12], %s2993_s11 }
  0x9c   : > { %3745 = dma.done.wait (%p5406_p2), %s351_s16, 128  }
  0x9d   : > { %3747 = vsyncadd (%p5406_p2), %s351_s16, 4294967168  ;;  %v3784_v0 = vmov 0   ;;  %v3251_v1 = vld [vmem:[%s4061_s12 + $0x4] ss:$8 sps:$4 sm:$0xff]   ;;  %v3253_v2 = vld [vmem:[%s4061_s12] ss:$8 sps:$4 sm:$0xff]  }
  0x9e   : > { %759 = vmatprep.mubr.bf16.mxu0 %v3784_v0  ;;  %3249 = vset.pattern.permute.xlu0 %v3784_v0  ;;  %v3254_v3 = vld [vmem:[%s4061_s12 + $0x14] ss:$8 sps:$4 sm:$0xff]   ;;  %v3256_v4 = vld [vmem:[%s4061_s12 + $0x10] ss:$8 sps:$4 sm:$0xff]   ;;  %v3257_v5 = vld [vmem:[%s4061_s12 + $0x24] ss:$8 sps:$4 sm:$0xff]  }
  0x9f   : > { %3250 = vset.pattern.permute.xlu1 %v3784_v0  ;;  %727 = vmatprep.subr.bf16.mxu0 %v3251_v1  ;;  %v3259_v6 = vld [vmem:[%s4061_s12 + $0x20] ss:$8 sps:$4 sm:$0xff]   ;;  %v3260_v7 = vld [vmem:[%s4061_s12 + $0x34] ss:$8 sps:$4 sm:$0xff]   ;;  %v3262_v8 = vld [vmem:[%s4061_s12 + $0x30] ss:$8 sps:$4 sm:$0xff]  }
  0xa0   : > { %728 = vmatpush1.bf16.msra.mxu0 %v3253_v2  ;;  %v3263_v9 = vld [vmem:[%s4061_s12 + $0x44] ss:$8 sps:$4 sm:$0xff]   ;;  %v3265_v10 = vld [vmem:[%s4061_s12 + $0x40] ss:$8 sps:$4 sm:$0xff]   ;;  %v3266_v11 = vld [vmem:[%s4061_s12 + $0x54] ss:$8 sps:$4 sm:$0xff]  }
  0xa1   : > { %729 = vmatprep.subr.bf16.mxu0 %v3254_v3  ;;  %v3268_v12 = vld [vmem:[%s4061_s12 + $0x50] ss:$8 sps:$4 sm:$0xff]   ;;  %v3269_v13 = vld [vmem:[%s4061_s12 + $0x64] ss:$8 sps:$4 sm:$0xff]   ;;  %v3271_v14 = vld [vmem:[%s4061_s12 + $0x60] ss:$8 sps:$4 sm:$0xff]  }
  0xa2   : > { %v3272_v15 = vld [vmem:[%s4061_s12 + $0x74] ss:$8 sps:$4 sm:$0xff]   ;;  %v3274_v16 = vld [vmem:[%s4061_s12 + $0x70] ss:$8 sps:$4 sm:$0xff]   ;;  %v3275_v17 = vld [vmem:[%s4054_s30] sm:$0xff]   ;;  %vm406_vm0 = vcmask 7168  }
  0xa3   : > { %v3276_v18 = vld [vmem:[%s4054_s30 + $0x8] sm:$0xff]   ;;  %v3277_v19 = vld [vmem:[%s4054_s30 + $0x10] sm:$0xff]   ;;  %v3278_v20 = vld [vmem:[%s4054_s30 + $0x18] sm:$0xff]   ;;  %v3785_v33 = vmov -inf   ;;  %v3786_v58 = vmov 0.0   ;;  %s2461_s0 = sld [smem:[#allocation5]] }
  0xa4   : > { %730 = vmatpush1.bf16.msra.mxu0 %v3256_v4  ;;  %v3279_v21 = vld [vmem:[%s4054_s30 + $0x20] sm:$0xff]   ;;  %v3280_v22 = vld [vmem:[%s4054_s30 + $0x28] sm:$0xff]   ;;  %v3281_v23 = vld [vmem:[%s4054_s30 + $0x30] sm:$0xff]   ;;  %407 = vst.msk [vmem:[#allocation2] sm:$0xff] %vm406_vm0, %v3785_v33  ;;  %s3052_s6 = sshll.u32 %s3766_s23, 7  ;;  %s395_s19 = scalar_lea.vmem [#allocation14], %s2993_s11 }
  0xa5   : > { %731 = vmatprep.subr.bf16.mxu0 %v3257_v5  ;;  %v3282_v24 = vld [vmem:[%s4054_s30 + $0x38] sm:$0xff]   ;;  %v3283_v25 = vld [vmem:[%s4054_s30 + $0x40] sm:$0xff]   ;;  %v3284_v26 = vld [vmem:[%s4054_s30 + $0x48] sm:$0xff]   ;;  %408 = vst.msk [vmem:[#allocation2 + $0x8] sm:$0xff] %vm406_vm0, %v3785_v33  ;;  %s2811_s14 = sshll.u32 %s395_s19, 4  ;;  %s5277_s1 = scalar_lea.hbm %s5331_s5, %s3052_s6  ;;  %s5279_s14 = int_to_ptr.vmem [resolvable:$true] %s2811_s14 }
  0xa6   : > { %v3285_v27 = vld [vmem:[%s4054_s30 + $0x50] sm:$0xff]   ;;  %v3286_v28 = vld [vmem:[%s4054_s30 + $0x58] sm:$0xff]   ;;  %v3287_v29 = vld [vmem:[%s4054_s30 + $0x60] sm:$0xff]   ;;  %409 = vst.msk [vmem:[#allocation2 + $0x10] sm:$0xff] %vm406_vm0, %v3785_v33  ;;  %s2795_s10 = scalar_lea.sflag [#allocation8], %s4050_s29  ;;  %s3684_s2 = scalar_lea.vmem %s5279_s14, 128 }
  0xa7   : > { %v3288_v30 = vld [vmem:[%s4054_s30 + $0x68] sm:$0xff]   ;;  %v3289_v31 = vld [vmem:[%s4054_s30 + $0x70] sm:$0xff]   ;;  %v3290_v32 = vld [vmem:[%s4054_s30 + $0x78] sm:$0xff]   ;;  %410 = vst.msk [vmem:[#allocation2 + $0x18] sm:$0xff] %vm406_vm0, %v3785_v33  ;;  %p3685_p0 = scmp.ne.s32.totalorder %s5279_s14, %s3684_s2  ;;  %p5551_p9 = scmp.ne.s32.totalorder %s5396_s7, 0 }
  0xa8   : > { %732 = vmatpush1.bf16.msra.mxu0 %v3259_v6  ;;  %411 = vst.msk [vmem:[#allocation2 + $0x20] sm:$0xff] %vm406_vm0, %v3785_v33  ;;  %412 = vst.msk [vmem:[#allocation2 + $0x28] sm:$0xff] %vm406_vm0, %v3785_v33  ;;  %s3787_s23 = smov [#allocation14]  }
  0xa9   : > { %733 = vmatprep.subr.bf16.mxu0 %v3260_v7  ;;  %413 = vst.msk [vmem:[#allocation2 + $0x30] sm:$0xff] %vm406_vm0, %v3785_v33  ;;  %414 = vst.msk [vmem:[#allocation2 + $0x38] sm:$0xff] %vm406_vm0, %v3785_v33  ;;  %p3686_p10 = pnand %p3685_p0, %p5551_p9  ;;  %s3688_s22 = sshll.u32 %s3787_s23, 4  ;;  %s3689_s22 = int_to_ptr.vmem [resolvable:$false] %s3688_s22 }
  0xaa   : > { %415 = vst.msk [vmem:[#allocation2 + $0x40] sm:$0xff] %vm406_vm0, %v3785_v33  ;;  %416 = vst.msk [vmem:[#allocation2 + $0x48] sm:$0xff] %vm406_vm0, %v3785_v33  ;;  %s3690_s15 = scalar_lea.vmem %s3689_s22, 256  ;;  %p3691_p7 = scmp.lt.s32.totalorder %s5279_s14, %s3689_s22 }
  0xab   : > { %417 = vst.msk [vmem:[#allocation2 + $0x50] sm:$0xff] %vm406_vm0, %v3785_v33  ;;  %418 = vst.msk [vmem:[#allocation2 + $0x58] sm:$0xff] %vm406_vm0, %v3785_v33  ;;  %p3687_p13 = pneg %p3686_p10  ;;  %p3692_p11 = scmp.lt.s32.totalorder %s3690_s15, %s3684_s2 }
  0xac   : > { %734 = vmatpush1.bf16.msra.mxu0 %v3262_v8  ;;  %419 = vst.msk [vmem:[#allocation2 + $0x60] sm:$0xff] %vm406_vm0, %v3785_v33  ;;  %420 = vst.msk [vmem:[#allocation2 + $0x68] sm:$0xff] %vm406_vm0, %v3785_v33 }
  0xad   : > { %735 = vmatprep.subr.bf16.mxu0 %v3263_v9  ;;  %421 = vst.msk [vmem:[#allocation2 + $0x70] sm:$0xff] %vm406_vm0, %v3785_v33  ;;  %422 = vst.msk [vmem:[#allocation2 + $0x78] sm:$0xff] %vm406_vm0, %v3785_v33  ;;  %p3693_p3 = por %p3692_p11, %p3691_p7 }
  0xae   : > { %423 = vst.msk [vmem:[#allocation2 + $0x80] sm:$0xff] %vm406_vm0, %v3785_v33  ;;  %424 = vst.msk [vmem:[#allocation2 + $0x88] sm:$0xff] %vm406_vm0, %v3785_v33 }
  0xaf   : > { %425 = vst.msk [vmem:[#allocation2 + $0x90] sm:$0xff] %vm406_vm0, %v3785_v33  ;;  %426 = vst.msk [vmem:[#allocation2 + $0x98] sm:$0xff] %vm406_vm0, %v3785_v33  ;;  %p3694_p5 = pnand %p3693_p3, %p3687_p13 }
  0xb0   : > { %736 = vmatpush1.bf16.msra.mxu0 %v3265_v10  ;;  %427 = vst.msk [vmem:[#allocation2 + $0xa0] sm:$0xff] %vm406_vm0, %v3785_v33  ;;  %428 = vst.msk [vmem:[#allocation2 + $0xa8] sm:$0xff] %vm406_vm0, %v3785_v33 }
  0xb1   : > { %737 = vmatprep.subr.bf16.mxu0 %v3266_v11  ;;  %429 = vst.msk [vmem:[#allocation2 + $0xb0] sm:$0xff] %vm406_vm0, %v3785_v33  ;;  %430 = vst.msk [vmem:[#allocation2 + $0xb8] sm:$0xff] %vm406_vm0, %v3785_v33 }
  0xb2   : > { %431 = vst.msk [vmem:[#allocation2 + $0xc0] sm:$0xff] %vm406_vm0, %v3785_v33  ;;  %432 = vst.msk [vmem:[#allocation2 + $0xc8] sm:$0xff] %vm406_vm0, %v3785_v33 }
  0xb3   : > { %433 = vst.msk [vmem:[#allocation2 + $0xd0] sm:$0xff] %vm406_vm0, %v3785_v33  ;;  %434 = vst.msk [vmem:[#allocation2 + $0xd8] sm:$0xff] %vm406_vm0, %v3785_v33 }
  0xb4   : > { %738 = vmatpush1.bf16.msra.mxu0 %v3268_v12  ;;  %435 = vst.msk [vmem:[#allocation2 + $0xe0] sm:$0xff] %vm406_vm0, %v3785_v33  ;;  %436 = vst.msk [vmem:[#allocation2 + $0xe8] sm:$0xff] %vm406_vm0, %v3785_v33 }
  0xb5   : > { %739 = vmatprep.subr.bf16.mxu0 %v3269_v13  ;;  %437 = vst.msk [vmem:[#allocation2 + $0xf0] sm:$0xff] %vm406_vm0, %v3785_v33  ;;  %438 = vst.msk [vmem:[#allocation2 + $0xf8] sm:$0xff] %vm406_vm0, %v3785_v33 }
  0xb6   : > { %440 = vst.msk [vmem:[#allocation3 + $0x8] sm:$0xff] %vm406_vm0, %v3786_v58  ;;  %439 = vst.msk [vmem:[#allocation3] sm:$0xff] %vm406_vm0, %v3786_v58 }
  0xb7   : > { %441 = vst.msk [vmem:[#allocation3 + $0x10] sm:$0xff] %vm406_vm0, %v3786_v58  ;;  %442 = vst.msk [vmem:[#allocation3 + $0x18] sm:$0xff] %vm406_vm0, %v3786_v58 }
  0xb8   : > { %740 = vmatpush1.bf16.msra.mxu0 %v3271_v14  ;;  %443 = vst.msk [vmem:[#allocation3 + $0x20] sm:$0xff] %vm406_vm0, %v3786_v58  ;;  %444 = vst.msk [vmem:[#allocation3 + $0x28] sm:$0xff] %vm406_vm0, %v3786_v58 }
  0xb9   : > { %741 = vmatprep.subr.bf16.mxu0 %v3272_v15  ;;  %445 = vst.msk [vmem:[#allocation3 + $0x30] sm:$0xff] %vm406_vm0, %v3786_v58  ;;  %446 = vst.msk [vmem:[#allocation3 + $0x38] sm:$0xff] %vm406_vm0, %v3786_v58 }
  0xba   : > { %447 = vst.msk [vmem:[#allocation3 + $0x40] sm:$0xff] %vm406_vm0, %v3786_v58  ;;  %448 = vst.msk [vmem:[#allocation3 + $0x48] sm:$0xff] %vm406_vm0, %v3786_v58 }
  0xbb   : > { %449 = vst.msk [vmem:[#allocation3 + $0x50] sm:$0xff] %vm406_vm0, %v3786_v58  ;;  %450 = vst.msk [vmem:[#allocation3 + $0x58] sm:$0xff] %vm406_vm0, %v3786_v58 }
  0xbc   : > { %742 = vmatpush1.bf16.msra.mxu0 %v3274_v16  ;;  %451 = vst.msk [vmem:[#allocation3 + $0x60] sm:$0xff] %vm406_vm0, %v3786_v58  ;;  %452 = vst.msk [vmem:[#allocation3 + $0x68] sm:$0xff] %vm406_vm0, %v3786_v58 }
  0xbd   : > { %453 = vst.msk [vmem:[#allocation3 + $0x70] sm:$0xff] %vm406_vm0, %v3786_v58  ;;  %454 = vst.msk [vmem:[#allocation3 + $0x78] sm:$0xff] %vm406_vm0, %v3786_v58 }
  0xbe   : > { %455 = vst.msk [vmem:[#allocation3 + $0x80] sm:$0xff] %vm406_vm0, %v3786_v58  ;;  %456 = vst.msk [vmem:[#allocation3 + $0x88] sm:$0xff] %vm406_vm0, %v3786_v58 }
  0xbf   : > { %760 = vmatmul.mubr.bf16.vlgmr.msra.gmra.mrb[0].mxu0 %v3275_v17  ;;  %457 = vst.msk [vmem:[#allocation3 + $0x90] sm:$0xff] %vm406_vm0, %v3786_v58  ;;  %458 = vst.msk [vmem:[#allocation3 + $0x98] sm:$0xff] %vm406_vm0, %v3786_v58 }
  0xc0   : > { %769 = vmatprep.mubr.bf16.mxu0 %v3784_v0  ;;  %459 = vst.msk [vmem:[#allocation3 + $0xa0] sm:$0xff] %vm406_vm0, %v3786_v58  ;;  %460 = vst.msk [vmem:[#allocation3 + $0xa8] sm:$0xff] %vm406_vm0, %v3786_v58 }
  0xc1   : > { %461 = vst.msk [vmem:[#allocation3 + $0xb0] sm:$0xff] %vm406_vm0, %v3786_v58  ;;  %462 = vst.msk [vmem:[#allocation3 + $0xb8] sm:$0xff] %vm406_vm0, %v3786_v58 }
  0xc2   : > { %463 = vst.msk [vmem:[#allocation3 + $0xc0] sm:$0xff] %vm406_vm0, %v3786_v58  ;;  %464 = vst.msk [vmem:[#allocation3 + $0xc8] sm:$0xff] %vm406_vm0, %v3786_v58 }
  0xc3   : > { %465 = vst.msk [vmem:[#allocation3 + $0xd0] sm:$0xff] %vm406_vm0, %v3786_v58  ;;  %466 = vst.msk [vmem:[#allocation3 + $0xd8] sm:$0xff] %vm406_vm0, %v3786_v58 }
  0xc4   : > { %467 = vst.msk [vmem:[#allocation3 + $0xe0] sm:$0xff] %vm406_vm0, %v3786_v58  ;;  %468 = vst.msk [vmem:[#allocation3 + $0xe8] sm:$0xff] %vm406_vm0, %v3786_v58 }
  0xc5   : > { %469 = vst.msk [vmem:[#allocation3 + $0xf0] sm:$0xff] %vm406_vm0, %v3786_v58  ;;  %470 = vst.msk [vmem:[#allocation3 + $0xf8] sm:$0xff] %vm406_vm0, %v3786_v58 }
  0xc7   : > { %770 = vmatmul.mubr.bf16.gmra.mrb[4].mxu0 %v3276_v18 }
  0xc8   : > { %779 = vmatprep.mubr.bf16.mxu0 %v3784_v0 }
  0xcf   : > { %780 = vmatmul.mubr.bf16.gmra.mrb[8].mxu0 %v3277_v19 }
  0xd0   : > { %789 = vmatprep.mubr.bf16.mxu0 %v3784_v0 }
  0xd7   : > { %790 = vmatmul.mubr.bf16.gmra.mrb[12].mxu0 %v3278_v20 }
  0xd8   : > { %799 = vmatprep.mubr.bf16.mxu0 %v3784_v0 }
  0xdf   : > { %800 = vmatmul.mubr.bf16.gmra.mrb[16].mxu0 %v3279_v21 }
  0xe0   : > { %809 = vmatprep.mubr.bf16.mxu0 %v3784_v0 }
  0xe7   : > { %810 = vmatmul.mubr.bf16.gmra.mrb[20].mxu0 %v3280_v22 }
  0xe8   : > { %819 = vmatprep.mubr.bf16.mxu0 %v3784_v0 }
  0xef   : > { %820 = vmatmul.mubr.bf16.gmra.mrb[24].mxu0 %v3281_v23 }
  0xf0   : > { %829 = vmatprep.mubr.bf16.mxu0 %v3784_v0 }
  0xf7   : > { %830 = vmatmul.mubr.bf16.gmra.mrb[28].mxu0 %v3282_v24 }
  0xf8   : > { %839 = vmatprep.mubr.bf16.mxu0 %v3784_v0 }
  0xff   : > { %840 = vmatmul.mubr.bf16.gmra.mrb[32].mxu0 %v3283_v25 }
 0x100   : > { %849 = vmatprep.mubr.bf16.mxu0 %v3784_v0 }
 0x107   : > { %850 = vmatmul.mubr.bf16.gmra.mrb[36].mxu0 %v3284_v26 }
 0x108   : > { %859 = vmatprep.mubr.bf16.mxu0 %v3784_v0 }
 0x10f   : > { %860 = vmatmul.mubr.bf16.gmra.mrb[40].mxu0 %v3285_v27 }
 0x110   : > { %869 = vmatprep.mubr.bf16.mxu0 %v3784_v0 }
 0x117   : > { %870 = vmatmul.mubr.bf16.gmra.mrb[44].mxu0 %v3286_v28 }
 0x118   : > { %879 = vmatprep.mubr.bf16.mxu0 %v3784_v0 }
 0x11f   : > { %880 = vmatmul.mubr.bf16.gmra.mrb[48].mxu0 %v3287_v29 }
 0x120   : > { %889 = vmatprep.mubr.bf16.mxu0 %v3784_v0 }
 0x127   : > { %890 = vmatmul.mubr.bf16.gmra.mrb[52].mxu0 %v3288_v30 }
 0x128   : > { %899 = vmatprep.mubr.bf16.mxu0 %v3784_v0 }
 0x12f   : > { %900 = vmatmul.mubr.bf16.gmra.mrb[56].mxu0 %v3289_v31 }
 0x130   : > { %909 = vmatprep.mubr.bf16.mxu0 %v3784_v0 }
 0x137   : > { %910 = vmatmul.mubr.bf16.gmra.mrb[60].mxu0 %v3290_v32 }
 0x192   : > { %v4161_v34 = vpop.f32.mrb[0].mxu0 }
 0x193   : > { %v4163_v35 = vpop.f32.mrb[1].mxu0 }
 0x194   : > { %v4165_v36 = vpop.f32.mrb[2].mxu0  ;;  %v952_v37 = vmax.f32 %v4161_v34, %v4163_v35 }
 0x195   : > { %v4169_v38 = vpop.f32.mrb[3].mxu0 }
 0x196   : > { %953 = vmax.xlane.f32.xlu0 %v952_v37  ;;  %v955_v39 = vmax.f32 %v4165_v36, %v4169_v38 }
 0x19a   : > { %956 = vmax.xlane.f32.xlu0 %v955_v39  ;;  %v4173_v40 = vpop.f32.mrb[4].mxu0 }
 0x19b   : > { %v4175_v41 = vpop.f32.mrb[5].mxu0 }
 0x19c   : > { %v4177_v42 = vpop.f32.mrb[6].mxu0  ;;  %v958_v43 = vmax.f32 %v4173_v40, %v4175_v41 }
 0x19d   : > { %v4181_v44 = vpop.f32.mrb[7].mxu0 }
 0x19e   : > { %959 = vmax.xlane.f32.xlu1 %v958_v43  ;;  %v961_v45 = vmax.f32 %v4177_v42, %v4181_v44 }
 0x1a2   : > { %962 = vmax.xlane.f32.xlu1 %v961_v45  ;;  %v4185_v46 = vpop.f32.mrb[8].mxu0 }
 0x1a3   : > { %v4187_v47 = vpop.f32.mrb[9].mxu0 }
 0x1a4   : > { %v4189_v48 = vpop.f32.mrb[10].mxu0  ;;  %v964_v49 = vmax.f32 %v4185_v46, %v4187_v47 }
 0x1a5   : > { %v4193_v50 = vpop.f32.mrb[11].mxu0 }
 0x1a6   : > { %965 = vmax.xlane.f32.xlu0 %v964_v49  ;;  %v967_v51 = vmax.f32 %v4189_v48, %v4193_v50 }
 0x1a8   : > { %968 = vmax.xlane.f32.xlu1 %v967_v51 }
 0x1aa   : > { %v4197_v52 = vpop.f32.mrb[12].mxu0 }
 0x1ab   : > { %v4199_v53 = vpop.f32.mrb[13].mxu0 }
 0x1ac   : > { %v4201_v54 = vpop.f32.mrb[14].mxu0  ;;  %v970_v55 = vmax.f32 %v4197_v52, %v4199_v53 }
 0x1ad   : > { %v4205_v56 = vpop.f32.mrb[15].mxu0 }
 0x1ae   : > { %971 = vmax.xlane.f32.xlu0 %v970_v55  ;;  %v973_v57 = vmax.f32 %v4201_v54, %v4205_v56 }
 0x1b0   : > { %974 = vmax.xlane.f32.xlu1 %v973_v57 }
 0x1b2   : > { %v4241_v59 = vpop.f32.mrb[16].mxu0 }
 0x1b3   : > { %v4243_v60 = vpop.f32.mrb[17].mxu0 }
 0x1b4   : > { %v4245_v61 = vpop.f32.mrb[18].mxu0  ;;  %v976_v62 = vmax.f32 %v4241_v59, %v4243_v60 }
 0x1b5   : > { %5407 = vst [vmem:[#allocation22_spill] sm:$0xff] %v4245_v61  ;;  %v4249_v63 = vpop.f32.mrb[19].mxu0 }
 0x1b6   : > { %5408 = vst [vmem:[#allocation23_spill] sm:$0xff] %v4249_v63  ;;  %977 = vmax.xlane.f32.xlu0 %v976_v62  ;;  %v979_v0 = vmax.f32 %v4245_v61, %v4249_v63 }
 0x1b8   : > { %980 = vmax.xlane.f32.xlu1 %v979_v0 }
 0x1ba   : > { %v4253_v1 = vpop.f32.mrb[20].mxu0 }
 0x1bb   : > { %5409 = vst [vmem:[#allocation24_spill] sm:$0xff] %v4253_v1  ;;  %v4255_v2 = vpop.f32.mrb[21].mxu0 }
 0x1bc   : > { %5410 = vst [vmem:[#allocation25_spill] sm:$0xff] %v4255_v2  ;;  %v4257_v3 = vpop.f32.mrb[22].mxu0  ;;  %v982_v4 = vmax.f32 %v4253_v1, %v4255_v2 }
 0x1bd   : > { %5411 = vst [vmem:[#allocation26_spill] sm:$0xff] %v4257_v3  ;;  %v4261_v5 = vpop.f32.mrb[23].mxu0 }
 0x1be   : > { %5412 = vst [vmem:[#allocation27_spill] sm:$0xff] %v4261_v5  ;;  %983 = vmax.xlane.f32.xlu0 %v982_v4  ;;  %v985_v6 = vmax.f32 %v4257_v3, %v4261_v5  ;;  %v4578_v3 = vld [vmem:[#allocation2 + $0x98] sm:$0xff] }
 0x1c0   : > { %986 = vmax.xlane.f32.xlu1 %v985_v6 }
 0x1c2   : > { %v4265_v7 = vpop.f32.mrb[24].mxu0 }
 0x1c3   : > { %5413 = vst [vmem:[#allocation28_spill] sm:$0xff] %v4265_v7  ;;  %v4267_v8 = vpop.f32.mrb[25].mxu0 }
 0x1c4   : > { %5414 = vst [vmem:[#allocation29_spill] sm:$0xff] %v4267_v8  ;;  %v4269_v9 = vpop.f32.mrb[26].mxu0  ;;  %v988_v10 = vmax.f32 %v4265_v7, %v4267_v8  ;;  %v4573_v8 = vld [vmem:[#allocation2 + $0x90] sm:$0xff] }
 0x1c5   : > { %5415 = vst [vmem:[#allocation30_spill] sm:$0xff] %v4269_v9  ;;  %v4273_v11 = vpop.f32.mrb[27].mxu0 }
 0x1c6   : > { %5416 = vst [vmem:[#allocation31_spill] sm:$0xff] %v4273_v11  ;;  %989 = vmax.xlane.f32.xlu0 %v988_v10  ;;  %v991_v12 = vmax.f32 %v4269_v9, %v4273_v11  ;;  %v4559_v11 = vld [vmem:[#allocation2 + $0x88] sm:$0xff] }
 0x1c8   : > { %992 = vmax.xlane.f32.xlu1 %v991_v12 }
 0x1ca   : > { %v4277_v13 = vpop.f32.mrb[28].mxu0 }
 0x1cb   : > { %5417 = vst [vmem:[#allocation32_spill] sm:$0xff] %v4277_v13  ;;  %v4279_v14 = vpop.f32.mrb[29].mxu0 }
 0x1cc   : > { %5418 = vst [vmem:[#allocation33_spill] sm:$0xff] %v4279_v14  ;;  %v4281_v15 = vpop.f32.mrb[30].mxu0  ;;  %v994_v16 = vmax.f32 %v4277_v13, %v4279_v14 }
 0x1cd   : > { %5419 = vst [vmem:[#allocation34_spill] sm:$0xff] %v4281_v15  ;;  %v4285_v17 = vpop.f32.mrb[31].mxu0 }
 0x1ce   : > { %5420 = vst [vmem:[#allocation35_spill] sm:$0xff] %v4285_v17  ;;  %995 = vmax.xlane.f32.xlu0 %v994_v16  ;;  %v997_v18 = vmax.f32 %v4281_v15, %v4285_v17 }
 0x1d0   : > { %998 = vmax.xlane.f32.xlu1 %v997_v18 }
 0x1d2   : > { %v4289_v19 = vpop.f32.mrb[32].mxu0 }
 0x1d3   : > { %5421 = vst [vmem:[#allocation36_spill] sm:$0xff] %v4289_v19  ;;  %v4291_v20 = vpop.f32.mrb[33].mxu0 }
 0x1d4   : > { %5422 = vst [vmem:[#allocation37_spill] sm:$0xff] %v4291_v20  ;;  %v4293_v21 = vpop.f32.mrb[34].mxu0  ;;  %v1000_v22 = vmax.f32 %v4289_v19, %v4291_v20  ;;  %v4543_v20 = vld [vmem:[#allocation2 + $0x78] sm:$0xff]  ;;  %v4557_v19 = vld [vmem:[#allocation2 + $0x80] sm:$0xff] }
 0x1d5   : > { %5423 = vst [vmem:[#allocation38_spill] sm:$0xff] %v4293_v21  ;;  %v4297_v23 = vpop.f32.mrb[35].mxu0 }
 0x1d6   : > { %5424 = vst [vmem:[#allocation39_spill] sm:$0xff] %v4297_v23  ;;  %1001 = vmax.xlane.f32.xlu0 %v1000_v22  ;;  %v1003_v24 = vmax.f32 %v4293_v21, %v4297_v23 }
 0x1d8   : > { %1004 = vmax.xlane.f32.xlu1 %v1003_v24 }
 0x1da   : > { %v4301_v25 = vpop.f32.mrb[36].mxu0 }
 0x1db   : > { %5425 = vst [vmem:[#allocation40_spill] sm:$0xff] %v4301_v25  ;;  %v4303_v26 = vpop.f32.mrb[37].mxu0 }
 0x1dc   : > { %5426 = vst [vmem:[#allocation41_spill] sm:$0xff] %v4303_v26  ;;  %v4305_v27 = vpop.f32.mrb[38].mxu0  ;;  %v1006_v28 = vmax.f32 %v4301_v25, %v4303_v26  ;;  %v4523_v26 = vld [vmem:[#allocation2 + $0x68] sm:$0xff] }
 0x1dd   : > { %5427 = vst [vmem:[#allocation42_spill] sm:$0xff] %v4305_v27  ;;  %v4309_v29 = vpop.f32.mrb[39].mxu0 }
 0x1de   : > { %5428 = vst [vmem:[#allocation43_spill] sm:$0xff] %v4309_v29  ;;  %1007 = vmax.xlane.f32.xlu0 %v1006_v28  ;;  %v1009_v30 = vmax.f32 %v4305_v27, %v4309_v29 }
 0x1e0   : > { %1010 = vmax.xlane.f32.xlu1 %v1009_v30 }
 0x1e2   : > { %v4313_v31 = vpop.f32.mrb[40].mxu0 }
 0x1e3   : > { %5429 = vst [vmem:[#allocation44_spill] sm:$0xff] %v4313_v31  ;;  %v4315_v32 = vpop.f32.mrb[41].mxu0 }
 0x1e4   : > { %5430 = vst [vmem:[#allocation45_spill] sm:$0xff] %v4315_v32  ;;  %v4317_v33 = vpop.f32.mrb[42].mxu0  ;;  %v1012_v37 = vmax.f32 %v4313_v31, %v4315_v32  ;;  %v4503_v32 = vld [vmem:[#allocation2 + $0x58] sm:$0xff] }
 0x1e5   : > { %5431 = vst [vmem:[#allocation46_spill] sm:$0xff] %v4317_v33  ;;  %v4321_v39 = vpop.f32.mrb[43].mxu0 }
 0x1e6   : > { %5432 = vst [vmem:[#allocation47_spill] sm:$0xff] %v4321_v39  ;;  %1013 = vmax.xlane.f32.xlu0 %v1012_v37  ;;  %v1015_v43 = vmax.f32 %v4317_v33, %v4321_v39 }
 0x1e8   : > { %1016 = vmax.xlane.f32.xlu1 %v1015_v43 }
 0x1ea   : > { %v4325_v45 = vpop.f32.mrb[44].mxu0 }
 0x1eb   : > { %5433 = vst [vmem:[#allocation48_spill] sm:$0xff] %v4325_v45  ;;  %v4327_v49 = vpop.f32.mrb[45].mxu0 }
 0x1ec   : > { %5434 = vst [vmem:[#allocation49_spill] sm:$0xff] %v4327_v49  ;;  %v4329_v51 = vpop.f32.mrb[46].mxu0  ;;  %v1018_v55 = vmax.f32 %v4325_v45, %v4327_v49  ;;  %v3304_v49 = vld [vmem:[%s4068_s27 + $0x30] sm:$0xff]  }
 0x1ed   : > { %5435 = vst [vmem:[#allocation50_spill] sm:$0xff] %v4329_v51  ;;  %v4333_v57 = vpop.f32.mrb[47].mxu0 }
 0x1ee   : > { %5436 = vst [vmem:[#allocation51_spill] sm:$0xff] %v4333_v57  ;;  %1019 = vmax.xlane.f32.xlu0 %v1018_v55  ;;  %v1021_v58 = vmax.f32 %v4329_v51, %v4333_v57  ;;  %v4460_v57 = vld [vmem:[#allocation2 + $0x30] sm:$0xff] }
 0x1f0   : > { %1022 = vmax.xlane.f32.xlu1 %v1021_v58 }
 0x1f2   : > { %v4337_v62 = vpop.f32.mrb[48].mxu0 }
 0x1f3   : > { %5437 = vst [vmem:[#allocation52_spill] sm:$0xff] %v4337_v62  ;;  %v4339_v0 = vpop.f32.mrb[49].mxu0 }
 0x1f4   : > { %5438 = vst [vmem:[#allocation53_spill] sm:$0xff] %v4339_v0  ;;  %v4341_v4 = vpop.f32.mrb[50].mxu0  ;;  %v1024_v6 = vmax.f32 %v4337_v62, %v4339_v0  ;;  %v3302_v62 = vld [vmem:[%s4068_s27 + $0x28] sm:$0xff]  }
 0x1f5   : > { %5439 = vst [vmem:[#allocation54_spill] sm:$0xff] %v4341_v4  ;;  %v4345_v10 = vpop.f32.mrb[51].mxu0 }
 0x1f6   : > { %5440 = vst [vmem:[#allocation55_spill] sm:$0xff] %v4345_v10  ;;  %1025 = vmax.xlane.f32.xlu0 %v1024_v6  ;;  %v1027_v12 = vmax.f32 %v4341_v4, %v4345_v10  ;;  %v4432_v10 = vld [vmem:[#allocation2 + $0x20] sm:$0xff] }
 0x1f8   : > { %1028 = vmax.xlane.f32.xlu1 %v1027_v12 }
 0x1fa   : > { %v4349_v16 = vpop.f32.mrb[52].mxu0 }
 0x1fb   : > { %5441 = vst [vmem:[#allocation56_spill] sm:$0xff] %v4349_v16  ;;  %v4351_v18 = vpop.f32.mrb[53].mxu0 }
 0x1fc   : > { %5442 = vst [vmem:[#allocation57_spill] sm:$0xff] %v4351_v18  ;;  %v4353_v22 = vpop.f32.mrb[54].mxu0  ;;  %v1030_v24 = vmax.f32 %v4349_v16, %v4351_v18 }
 0x1fd   : > { %5443 = vst [vmem:[#allocation58_spill] sm:$0xff] %v4353_v22  ;;  %v4357_v28 = vpop.f32.mrb[55].mxu0 }
 0x1fe   : > { %5444 = vst [vmem:[#allocation59_spill] sm:$0xff] %v4357_v28  ;;  %1031 = vmax.xlane.f32.xlu0 %v1030_v24  ;;  %v1033_v30 = vmax.f32 %v4353_v22, %v4357_v28  ;;  %v4389_v28 = vld [vmem:[#allocation2] sm:$0xff]  ;;  %v3296_v22 = vld [vmem:[%s4068_s27 + $0x10] sm:$0xff]  }
 0x200   : > { %1034 = vmax.xlane.f32.xlu1 %v1033_v30 }
 0x202   : > { %v4361_v37 = vpop.f32.mrb[56].mxu0 }
 0x203   : > { %5445 = vst [vmem:[#allocation60_spill] sm:$0xff] %v4361_v37  ;;  %v4363_v43 = vpop.f32.mrb[57].mxu0 }
 0x204   : > { %5446 = vst [vmem:[#allocation61_spill] sm:$0xff] %v4363_v43  ;;  %v4365_v55 = vpop.f32.mrb[58].mxu0  ;;  %v1036_v58 = vmax.f32 %v4361_v37, %v4363_v43  ;;  %v3291_v37 = vld [vmem:[%s4068_s27 + $0x40] sm:$0xff]  }
 0x205   : > { %5447 = vst [vmem:[#allocation62_spill] sm:$0xff] %v4365_v55  ;;  %v4369_v6 = vpop.f32.mrb[59].mxu0  ;;  %3053 = vmatprep.subr.bf16.mxu1 %v3291_v37  ;;  %v3299_v37 = vld [vmem:[%s4068_s27 + $0x60] sm:$0xff]  }
 0x206   : > { %5448 = vst [vmem:[#allocation63_spill] sm:$0xff] %v4369_v6  ;;  %1037 = vmax.xlane.f32.xlu0 %v1036_v58  ;;  %v1039_v12 = vmax.f32 %v4365_v55, %v4369_v6  ;;  %v3293_v6 = vld [vmem:[%s4068_s27 + $0x48] sm:$0xff]  }
 0x207   : > { %v3294_v55 = vld [vmem:[%s4068_s27 + $0x8] sm:$0xff]  }
 0x208   : > { %1040 = vmax.xlane.f32.xlu1 %v1039_v12  ;;  %v3292_v12 = vld [vmem:[%s4068_s27] sm:$0xff]  }
 0x209   : > { %3054 = vmatpush3.bf16.msra.mxu1 %v3292_v12 }
 0x20a   : > { %v4373_v24 = vpop.f32.mrb[60].mxu0  ;;  %3055 = vmatprep.subr.bf16.mxu1 %v3293_v6  ;;  %v3297_v6 = vld [vmem:[%s4068_s27 + $0x58] sm:$0xff]  }
 0x20b   : > { %5449 = vst [vmem:[#allocation64_spill] sm:$0xff] %v4373_v24  ;;  %v4375_v30 = vpop.f32.mrb[61].mxu0 }
 0x20c   : > { %5450 = vst [vmem:[#allocation65_spill] sm:$0xff] %v4375_v30  ;;  %v4377_v18 = vpop.f32.mrb[62].mxu0  ;;  %v1042_v16 = vmax.f32 %v4373_v24, %v4375_v30  ;;  %v3295_v30 = vld [vmem:[%s4068_s27 + $0x50] sm:$0xff]  }
 0x20d   : > { %5451 = vst [vmem:[#allocation66_spill] sm:$0xff] %v4377_v18  ;;  %v4381_v43 = vpop.f32.mrb[63].mxu0  ;;  %3056 = vmatpush3.bf16.msra.mxu1 %v3294_v55 }
 0x20e   : > { %5452 = vst [vmem:[#allocation67_spill] sm:$0xff] %v4381_v43  ;;  %v1045_v58 = vmax.f32 %v4377_v18, %v4381_v43  ;;  %1043 = vmax.xlane.f32.xlu0 %v1042_v16  ;;  %3057 = vmatprep.subr.bf16.mxu1 %v3295_v30  ;;  %v4396_v16 = vld [vmem:[#allocation2 + $0x8] sm:$0xff]  ;;  %v4408_v30 = vld [vmem:[#allocation2 + $0x10] sm:$0xff]  ;;  %v3300_v43 = vld [vmem:[%s4068_s27 + $0x20] sm:$0xff]  }
 0x20f   : > { %v4420_v18 = vld [vmem:[#allocation2 + $0x18] sm:$0xff] }
 0x210   : > { %1046 = vmax.xlane.f32.xlu1 %v1045_v58 }
 0x211   : > { %3058 = vmatpush3.bf16.msra.mxu1 %v3296_v22  ;;  %v3301_v22 = vld [vmem:[%s4068_s27 + $0x68] sm:$0xff]  }
 0x212   : > { %3059 = vmatprep.subr.bf16.mxu1 %v3297_v6  ;;  %v4439_v6 = vld [vmem:[#allocation2 + $0x28] sm:$0xff] }
 0x223   : > { %v954_v24 = vpop.xlane.xlu0 %953 }
 0x224   : > { %v4394_v0 = vmax.f32 %v4389_v28, %v954_v24  ;;  %v3298_v24 = vld [vmem:[%s4068_s27 + $0x18] sm:$0xff]  }
 0x225   : > { %3060 = vmatpush3.bf16.msra.mxu1 %v3298_v24 }
 0x226   : > { %2362 = vst.msk [vmem:[#allocation2] sm:$0xff] %vm406_vm0, %v4394_v0  ;;  %1178 = vperm.xlu0 %3249, %v4394_v0   ;;  %3061 = vmatprep.subr.bf16.mxu1 %v3299_v37 }
 0x227   : > { %v957_v55 = vpop.xlane.xlu0 %956 }
 0x228   : > { %v4405_v58 = vmax.f32 %v4396_v16, %v957_v55 }
 0x229   : > { %3062 = vmatpush3.bf16.msra.mxu1 %v3300_v43 }
 0x22a   : > { %2363 = vst.msk [vmem:[#allocation2 + $0x8] sm:$0xff] %vm406_vm0, %v4405_v58  ;;  %1183 = vperm.xlu1 %3250, %v4405_v58   ;;  %3063 = vmatprep.subr.bf16.mxu1 %v3301_v22 }
 0x22b   : > { %v960_v12 = vpop.xlane.xlu1 %959 }
 0x22c   : > { %v4417_v55 = vmax.f32 %v4408_v30, %v960_v12 }
 0x22d   : > { %3064 = vmatpush3.bf16.msra.mxu1 %v3302_v62  ;;  %v3305_v62 = vld [vmem:[%s4068_s27 + $0x78] sm:$0xff]  }
 0x22e   : > { %2364 = vst.msk [vmem:[#allocation2 + $0x10] sm:$0xff] %vm406_vm0, %v4417_v55  ;;  %1188 = vperm.xlu1 %3250, %v4417_v55  }
 0x22f   : > { %v963_v24 = vpop.xlane.xlu1 %962 }
 0x230   : > { %v4429_v12 = vmax.f32 %v4420_v18, %v963_v24  ;;  %v3303_v24 = vld [vmem:[%s4068_s27 + $0x70] sm:$0xff]  }
 0x231   : > { %3065 = vmatprep.subr.bf16.mxu1 %v3303_v24  ;;  %v3306_v24 = vld [vmem:[%s4068_s27 + $0x38] sm:$0xff]  }
 0x232   : > { %2365 = vst.msk [vmem:[#allocation2 + $0x18] sm:$0xff] %vm406_vm0, %v4429_v12  ;;  %1193 = vperm.xlu1 %3250, %v4429_v12   ;;  %3066 = vmatpush3.bf16.msra.mxu1 %v3304_v49 }
 0x233   : > { %v966_v43 = vpop.xlane.xlu0 %965  ;;  %3067 = vmatprep.subr.bf16.mxu1 %v3305_v62 }
 0x234   : > { %v4443_v4 = vmax.f32 %v4432_v10, %v966_v43  ;;  %v4483_v43 = vld [vmem:[#allocation2 + $0x48] sm:$0xff] }
 0x235   : > { %v969_v22 = vpop.xlane.xlu1 %968 }
 0x236   : > { %2366 = vst.msk [vmem:[#allocation2 + $0x20] sm:$0xff] %vm406_vm0, %v4443_v4  ;;  %v4451_v45 = vmax.f32 %v4439_v6, %v969_v22  ;;  %1198 = vperm.xlu1 %3250, %v4443_v4   ;;  %3068 = vmatpush3.bf16.msra.mxu1 %v3306_v24  ;;  %v4463_v22 = vld [vmem:[#allocation2 + $0x38] sm:$0xff] }
 0x238   : > { %2367 = vst.msk [vmem:[#allocation2 + $0x28] sm:$0xff] %vm406_vm0, %v4451_v45 }
 0x23a   : > { %1203 = vperm.xlu1 %3250, %v4451_v45  }
 0x23b   : > { %v972_v37 = vpop.xlane.xlu0 %971 }
 0x23c   : > { %v4466_v51 = vmax.f32 %v4460_v57, %v972_v37  ;;  %v4480_v37 = vld [vmem:[#allocation2 + $0x40] sm:$0xff] }
 0x23d   : > { %v975_v49 = vpop.xlane.xlu1 %974 }
 0x23e   : > { %2368 = vst.msk [vmem:[#allocation2 + $0x30] sm:$0xff] %vm406_vm0, %v4466_v51  ;;  %v4473_v39 = vmax.f32 %v4463_v22, %v975_v49  ;;  %1208 = vperm.xlu1 %3250, %v4466_v51  }
 0x240   : > { %2369 = vst.msk [vmem:[#allocation2 + $0x38] sm:$0xff] %vm406_vm0, %v4473_v39 }
 0x242   : > { %1213 = vperm.xlu1 %3250, %v4473_v39  }
 0x243   : > { %v978_v24 = vpop.xlane.xlu0 %977 }
 0x244   : > { %v4486_v33 = vmax.f32 %v4480_v37, %v978_v24  ;;  %v4501_v24 = vld [vmem:[#allocation2 + $0x50] sm:$0xff] }
 0x245   : > { %v981_v49 = vpop.xlane.xlu1 %980 }
 0x246   : > { %2370 = vst.msk [vmem:[#allocation2 + $0x40] sm:$0xff] %vm406_vm0, %v4486_v33  ;;  %v4493_v62 = vmax.f32 %v4483_v43, %v981_v49  ;;  %1218 = vperm.xlu1 %3250, %v4486_v33  }
 0x248   : > { %2371 = vst.msk [vmem:[#allocation2 + $0x48] sm:$0xff] %vm406_vm0, %v4493_v62  ;;  %1223 = vperm.xlu0 %3249, %v4493_v62  }
 0x24b   : > { %v984_v29 = vpop.xlane.xlu0 %983 }
 0x24c   : > { %v4506_v27 = vmax.f32 %v4501_v24, %v984_v29  ;;  %v4521_v29 = vld [vmem:[#allocation2 + $0x60] sm:$0xff] }
 0x24d   : > { %v987_v49 = vpop.xlane.xlu1 %986 }
 0x24e   : > { %2372 = vst.msk [vmem:[#allocation2 + $0x50] sm:$0xff] %vm406_vm0, %v4506_v27  ;;  %v4513_v31 = vmax.f32 %v4503_v32, %v987_v49  ;;  %1228 = vperm.xlu1 %3250, %v4506_v27  }
 0x250   : > { %2373 = vst.msk [vmem:[#allocation2 + $0x58] sm:$0xff] %vm406_vm0, %v4513_v31  ;;  %1233 = vperm.xlu0 %3249, %v4513_v31  }
 0x253   : > { %v990_v23 = vpop.xlane.xlu0 %989 }
 0x254   : > { %v4526_v21 = vmax.f32 %v4521_v29, %v990_v23  ;;  %v4541_v23 = vld [vmem:[#allocation2 + $0x70] sm:$0xff] }
 0x255   : > { %v993_v49 = vpop.xlane.xlu1 %992 }
 0x256   : > { %2374 = vst.msk [vmem:[#allocation2 + $0x60] sm:$0xff] %vm406_vm0, %v4526_v21  ;;  %v4533_v25 = vmax.f32 %v4523_v26, %v993_v49  ;;  %1238 = vperm.xlu1 %3250, %v4526_v21  }
 0x258   : > { %2375 = vst.msk [vmem:[#allocation2 + $0x68] sm:$0xff] %vm406_vm0, %v4533_v25  ;;  %1243 = vperm.xlu0 %3249, %v4533_v25  }
 0x25b   : > { %v996_v17 = vpop.xlane.xlu0 %995 }
 0x25c   : > { %v4546_v15 = vmax.f32 %v4541_v23, %v996_v17 }
 0x25d   : > { %v999_v49 = vpop.xlane.xlu1 %998 }
 0x25e   : > { %2376 = vst.msk [vmem:[#allocation2 + $0x70] sm:$0xff] %vm406_vm0, %v4546_v15  ;;  %v4551_v14 = vmax.f32 %v4543_v20, %v999_v49  ;;  %1248 = vperm.xlu1 %3250, %v4546_v15  }
 0x260   : > { %2377 = vst.msk [vmem:[#allocation2 + $0x78] sm:$0xff] %vm406_vm0, %v4551_v14  ;;  %1253 = vperm.xlu0 %3249, %v4551_v14  }
 0x263   : > { %v1002_v13 = vpop.xlane.xlu0 %1001 }
 0x264   : > { %v4562_v17 = vmax.f32 %v4557_v19, %v1002_v13  ;;  %v5453_v13 = vsub.f32 %v4396_v16, %v4405_v58  ;;  %v5455_v16 = vsub.f32 %v4408_v30, %v4417_v55 }
 0x265   : > { %v1005_v9 = vpop.xlane.xlu1 %1004 }
 0x266   : > { %2378 = vst.msk [vmem:[#allocation2 + $0x80] sm:$0xff] %vm406_vm0, %v4562_v17  ;;  %v4567_v49 = vmax.f32 %v4559_v11, %v1005_v9  ;;  %1258 = vperm.xlu1 %3250, %v4562_v17   ;;  %v1114_v7 = vmul.f32 1.442695, %v5453_v13  ;;  %v5454_v9 = vsub.f32 %v4389_v28, %v4394_v0  ;;  %v1116_v58 = vmul.f32 1.442695, %v5455_v16  ;;  %v4600_v28 = vld [vmem:[#allocation2 + $0xa8] sm:$0xff] }
 0x268   : > { %2379 = vst.msk [vmem:[#allocation2 + $0x88] sm:$0xff] %vm406_vm0, %v4567_v49  ;;  %1263 = vperm.xlu0 %3249, %v4567_v49   ;;  %v1112_v1 = vmul.f32 1.442695, %v5454_v9  ;;  %3308 = vpow2.f32 %v1114_v7  ;;  %v5456_v7 = vsub.f32 %v4420_v18, %v4429_v12  ;;  %v4622_v12 = vld [vmem:[#allocation2 + $0xb0] sm:$0xff] }
 0x26a   : > { %3310 = vpow2.f32 %v1112_v1  ;;  %v1118_v30 = vmul.f32 1.442695, %v5456_v7  ;;  %v5457_v1 = vsub.f32 %v4432_v10, %v4443_v4  ;;  %v5460_v7 = vsub.f32 %v4439_v6, %v4451_v45  ;;  %v4650_v45 = vld [vmem:[#allocation2 + $0xc0] sm:$0xff] }
 0x26b   : > { %v1008_v5 = vpop.xlane.xlu0 %1007  ;;  %3312 = vpow2.f32 %v1116_v58 }
 0x26c   : > { %v4581_v2 = vmax.f32 %v4573_v8, %v1008_v5  ;;  %v4598_v5 = vld [vmem:[#allocation2 + $0xa0] sm:$0xff]  ;;  %v1120_v9 = vmul.f32 1.442695, %v5457_v1  ;;  %3314 = vpow2.f32 %v1118_v30  ;;  %v1122_v30 = vmul.f32 1.442695, %v5460_v7 }
 0x26d   : > { %v1011_v63 = vpop.xlane.xlu1 %1010 }
 0x26e   : > { %2380 = vst.msk [vmem:[#allocation2 + $0x90] sm:$0xff] %vm406_vm0, %v4581_v2  ;;  %v4589_v61 = vmax.f32 %v4578_v3, %v1011_v63  ;;  %1268 = vperm.xlu1 %3250, %v4581_v2   ;;  %3316 = vpow2.f32 %v1120_v9  ;;  %v5461_v9 = vsub.f32 %v4460_v57, %v4466_v51 }
 0x26f   : > { %3318 = vpow2.f32 %v1122_v30  ;;  %v5464_v30 = vsub.f32 %v4463_v22, %v4473_v39  ;;  %v4678_v39 = vld [vmem:[#allocation2 + $0xd0] sm:$0xff] }
 0x270   : > { %2381 = vst.msk [vmem:[#allocation2 + $0x98] sm:$0xff] %vm406_vm0, %v4589_v61  ;;  %1273 = vperm.xlu0 %3249, %v4589_v61  }
 0x272   : > { %v4620_v18 = vpop.eup %3308 }
 0x273   : > { %v1014_v0 = vpop.xlane.xlu0 %1013 }
 0x274   : > { %v4603_v63 = vmax.f32 %v4598_v5, %v1014_v0  ;;  %v4625_v16 = vpop.eup %3310  ;;  %v4627_v0 = vld [vmem:[#allocation2 + $0xb8] sm:$0xff] }
 0x275   : > { %v1017_v55 = vpop.xlane.xlu1 %1016  ;;  %5458 = vst [vmem:[#allocation68_spill] sm:$0xff] %v4625_v16  ;;  %v4633_v10 = vpop.eup %3312 }
 0x276   : > { %2382 = vst.msk [vmem:[#allocation2 + $0xa0] sm:$0xff] %vm406_vm0, %v4603_v63  ;;  %v4611_v13 = vmax.f32 %v4600_v28, %v1017_v55  ;;  %1278 = vperm.xlu1 %3250, %v4603_v63   ;;  %5459 = vst [vmem:[#allocation69_spill] sm:$0xff] %v4633_v10  ;;  %v4653_v6 = vpop.eup %3314 }
 0x277   : > { %5462 = vst [vmem:[#allocation70_spill] sm:$0xff] %v4653_v6 }
 0x278   : > { %2383 = vst.msk [vmem:[#allocation2 + $0xa8] sm:$0xff] %vm406_vm0, %v4611_v13  ;;  %1283 = vperm.xlu0 %3249, %v4611_v13   ;;  %v4661_v57 = vpop.eup %3316 }
 0x279   : > { %5463 = vst [vmem:[#allocation71_spill] sm:$0xff] %v4661_v57  ;;  %v4681_v22 = vpop.eup %3318 }
 0x27a   : > { %1792 = vperm.xlu1 %3250, %v4620_v18   ;;  %5466 = vst [vmem:[#allocation72_spill] sm:$0xff] %v4681_v22 }
 0x27b   : > { %v1020_v58 = vpop.xlane.xlu0 %1019 }
 0x27c   : > { %1787 = vperm.xlu0 %3249, %v4625_v16   ;;  %v4631_v4 = vmax.f32 %v4622_v12, %v1020_v58  ;;  %v1124_v58 = vmul.f32 1.442695, %v5461_v9  ;;  %v1126_v9 = vmul.f32 1.442695, %v5464_v30  ;;  %v4683_v30 = vld [vmem:[#allocation2 + $0xd8] sm:$0xff]  ;;  %v1094_v16 = vsub.f32 %v4541_v23, %v4546_v15 }
 0x27d   : > { %v1023_v55 = vpop.xlane.xlu1 %1022 }
 0x27e   : > { %2384 = vst.msk [vmem:[#allocation2 + $0xb0] sm:$0xff] %vm406_vm0, %v4631_v4  ;;  %v4641_v1 = vmax.f32 %v4627_v0, %v1023_v55  ;;  %1797 = vperm.xlu1 %3250, %v4633_v10   ;;  %3320 = vpow2.f32 %v1124_v58  ;;  %v4655_v55 = vld [vmem:[#allocation2 + $0xc8] sm:$0xff]  ;;  %v1140_v15 = vmul.f32 1.442695, %v1094_v16  ;;  %v1098_v16 = vsub.f32 %v4573_v8, %v4581_v2 }
 0x27f   : > { %3322 = vpow2.f32 %v1126_v9  ;;  %v1101_v2 = vsub.f32 %v4600_v28, %v4611_v13 }
 0x280   : > { %2385 = vst.msk [vmem:[#allocation2 + $0xb8] sm:$0xff] %vm406_vm0, %v4641_v1  ;;  %1293 = vperm.xlu0 %3249, %v4641_v1   ;;  %v1103_v28 = vsub.f32 %v4627_v0, %v4641_v1 }
 0x282   : > { %1288 = vperm.xlu1 %3250, %v4631_v4   ;;  %v1158_v1 = vmul.f32 1.442695, %v1103_v28 }
 0x283   : > { %v1026_v7 = vpop.xlane.xlu0 %1025 }
 0x284   : > { %1802 = vperm.xlu0 %3249, %v4653_v6   ;;  %v4659_v51 = vmax.f32 %v4650_v45, %v1026_v7  ;;  %v5465_v6 = vsub.f32 %v4480_v37, %v4486_v33 }
 0x285   : > { %v1029_v10 = vpop.xlane.xlu1 %1028 }
 0x286   : > { %2386 = vst.msk [vmem:[#allocation2 + $0xc0] sm:$0xff] %vm406_vm0, %v4659_v51  ;;  %v4669_v58 = vmax.f32 %v4655_v55, %v1029_v10  ;;  %1807 = vperm.xlu1 %3250, %v4661_v57   ;;  %v1128_v7 = vmul.f32 1.442695, %v5465_v6  ;;  %v5468_v6 = vsub.f32 %v4483_v43, %v4493_v62  ;;  %v4706_v43 = vld [vmem:[#allocation2 + $0xe0] sm:$0xff] }
 0x288   : > { %2387 = vst.msk [vmem:[#allocation2 + $0xc8] sm:$0xff] %vm406_vm0, %v4669_v58  ;;  %1303 = vperm.xlu0 %3249, %v4669_v58   ;;  %3324 = vpow2.f32 %v1128_v7  ;;  %v4689_v37 = vpop.eup %3320  ;;  %v1130_v9 = vmul.f32 1.442695, %v5468_v6  ;;  %v4711_v6 = vld [vmem:[#allocation2 + $0xe8] sm:$0xff] }
 0x289   : > { %5467 = vst [vmem:[#allocation73_spill] sm:$0xff] %v4689_v37  ;;  %v4709_v62 = vpop.eup %3322 }
 0x28a   : > { %1298 = vperm.xlu1 %3250, %v4659_v51   ;;  %3326 = vpow2.f32 %v1130_v9  ;;  %5470 = vst [vmem:[#allocation74_spill] sm:$0xff] %v4709_v62 }
 0x28b   : > { %v1032_v10 = vpop.xlane.xlu0 %1031 }
 0x28c   : > { %1812 = vperm.xlu0 %3249, %v4681_v22   ;;  %v4687_v33 = vmax.f32 %v4678_v39, %v1032_v10  ;;  %v5469_v22 = vsub.f32 %v4501_v24, %v4506_v27 }
 0x28d   : > { %v1035_v57 = vpop.xlane.xlu1 %1034 }
 0x28e   : > { %2388 = vst.msk [vmem:[#allocation2 + $0xd0] sm:$0xff] %vm406_vm0, %v4687_v33  ;;  %v4697_v7 = vmax.f32 %v4683_v30, %v1035_v57  ;;  %1817 = vperm.xlu1 %3250, %v4689_v37   ;;  %v1132_v10 = vmul.f32 1.442695, %v5469_v22  ;;  %v5471_v22 = vsub.f32 %v4503_v32, %v4513_v31  ;;  %v5473_v31 = vsub.f32 %v4523_v26, %v4533_v25 }
 0x28f   : > { %v1097_v25 = vsub.f32 %v4559_v11, %v4567_v49  ;;  %v1100_v49 = vsub.f32 %v4598_v5, %v4603_v63  ;;  %v1102_v5 = vsub.f32 %v4622_v12, %v4631_v4  ;;  %v1104_v4 = vsub.f32 %v4650_v45, %v4659_v51 }
 0x290   : > { %2389 = vst.msk [vmem:[#allocation2 + $0xd8] sm:$0xff] %vm406_vm0, %v4697_v7  ;;  %1313 = vperm.xlu0 %3249, %v4697_v7   ;;  %3328 = vpow2.f32 %v1132_v10  ;;  %v1134_v9 = vmul.f32 1.442695, %v5471_v22  ;;  %v1138_v32 = vmul.f32 1.442695, %v5473_v31  ;;  %v4741_v22 = vld [vmem:[#allocation2 + $0xf0] sm:$0xff] }
 0x291   : > { %v1152_v31 = vmul.f32 1.442695, %v1100_v49  ;;  %v1156_v12 = vmul.f32 1.442695, %v1102_v5  ;;  %v1160_v51 = vmul.f32 1.442695, %v1104_v4 }
 0x292   : > { %1308 = vperm.xlu1 %3250, %v4687_v33   ;;  %v4717_v24 = vpop.eup %3324  ;;  %3330 = vpow2.f32 %v1134_v9 }
 0x293   : > { %v1038_v57 = vpop.xlane.xlu0 %1037 }
 0x294   : > { %1822 = vperm.xlu0 %3249, %v4709_v62   ;;  %v4715_v27 = vmax.f32 %v4706_v43, %v1038_v57  ;;  %v5472_v62 = vsub.f32 %v4521_v29, %v4526_v21  ;;  %v4744_v21 = vpop.eup %3326  ;;  %v1096_v29 = vsub.f32 %v4557_v19, %v4562_v17  ;;  %v1099_v19 = vsub.f32 %v4578_v3, %v4589_v61 }
 0x295   : > { %v1041_v37 = vpop.xlane.xlu1 %1040  ;;  %v1148_v61 = vmul.f32 1.442695, %v1098_v16 }
 0x296   : > { %2390 = vst.msk [vmem:[#allocation2 + $0xe0] sm:$0xff] %vm406_vm0, %v4715_v27  ;;  %v4725_v10 = vmax.f32 %v4711_v6, %v1041_v37  ;;  %1827 = vperm.xlu1 %3250, %v4717_v24   ;;  %v1136_v57 = vmul.f32 1.442695, %v5472_v62  ;;  %v1095_v37 = vsub.f32 %v4543_v20, %v4551_v14  ;;  %v4748_v62 = vld [vmem:[#allocation2 + $0xf8] sm:$0xff]  ;;  %v1144_v17 = vmul.f32 1.442695, %v1096_v29 }
 0x297   : > { %v1150_v3 = vmul.f32 1.442695, %v1099_v19 }
 0x298   : > { %2391 = vst.msk [vmem:[#allocation2 + $0xe8] sm:$0xff] %vm406_vm0, %v4725_v10  ;;  %1323 = vperm.xlu0 %3249, %v4725_v10   ;;  %3332 = vpow2.f32 %v1136_v57  ;;  %v1142_v26 = vmul.f32 1.442695, %v1095_v37  ;;  %v1146_v57 = vmul.f32 1.442695, %v1097_v25 }
 0x299   : > { %3334 = vpow2.f32 %v1138_v32  ;;  %v1154_v32 = vmul.f32 1.442695, %v1101_v2 }
 0x29a   : > { %1318 = vperm.xlu1 %3250, %v4715_v27   ;;  %v4756_v20 = vpop.eup %3328  ;;  %3336 = vpow2.f32 %v1140_v15 }
 0x29b   : > { %v1044_v23 = vpop.xlane.xlu0 %1043  ;;  %3338 = vpow2.f32 %v1142_v26 }
 0x29c   : > { %1832 = vperm.xlu0 %3249, %v4744_v21   ;;  %v4754_v14 = vmax.f32 %v4741_v22, %v1044_v23  ;;  %v4776_v8 = vpop.eup %3330  ;;  %3340 = vpow2.f32 %v1144_v17 }
 0x29d   : > { %v1047_v9 = vpop.xlane.xlu1 %1046  ;;  %3342 = vpow2.f32 %v1146_v57 }
 0x29e   : > { %2392 = vst.msk [vmem:[#allocation2 + $0xf0] sm:$0xff] %vm406_vm0, %v4754_v14  ;;  %v4765_v11 = vmax.f32 %v4748_v62, %v1047_v9  ;;  %1837 = vperm.xlu1 %3250, %v4756_v20   ;;  %3344 = vpow2.f32 %v1148_v61 }
 0x29f   : > { %3346 = vpow2.f32 %v1150_v3  ;;  %v1107_v3 = vsub.f32 %v4683_v30, %v4697_v7 }
 0x2a0   : > { %2393 = vst.msk [vmem:[#allocation2 + $0xf8] sm:$0xff] %vm406_vm0, %v4765_v11  ;;  %1333 = vperm.xlu0 %3249, %v4765_v11   ;;  %3348 = vpow2.f32 %v1152_v31 }
 0x2a1   : > { %3350 = vpow2.f32 %v1154_v32 }
 0x2a2   : > { %1328 = vperm.xlu1 %3250, %v4754_v14   ;;  %v4781_v63 = vpop.eup %3332 }
 0x2a3   : > { %v4788_v29 = vpop.eup %3334 }
 0x2a4   : > { %1842 = vperm.xlu0 %3249, %v4776_v8   ;;  %v4793_v0 = vpop.eup %3336 }
 0x2a5   : > { %v1179_v13 = vpop.permute.xlu0 %1178  ;;  %v4800_v45 = vpop.eup %3338 }
 0x2a6   : > { %v1336_v37 = vsub.f32 %v4161_v34, %v1179_v13  ;;  %v1337_v15 = vsub.f32 %v4163_v35, %v1179_v13  ;;  %1847 = vperm.xlu1 %3250, %v4781_v63   ;;  %v1105_v34 = vsub.f32 %v4655_v55, %v4669_v58  ;;  %v4803_v17 = vpop.eup %3340  ;;  %v1166_v13 = vmul.f32 1.442695, %v1107_v3 }
 0x2a8   : > { %v1400_v23 = vmul.f32 1.442695, %v1336_v37  ;;  %v1402_v25 = vmul.f32 1.442695, %v1337_v15  ;;  %1852 = vperm.xlu0 %3249, %v4788_v29   ;;  %v1162_v55 = vmul.f32 1.442695, %v1105_v34  ;;  %v1109_v37 = vsub.f32 %v4711_v6, %v4725_v10 }
 0x2a9   : > { %v1184_v35 = vpop.permute.xlu1 %1183 }
 0x2aa   : > { %3352 = vpow2.f32 %v1400_v23  ;;  %v1338_v26 = vsub.f32 %v4165_v36, %v1184_v35  ;;  %v1339_v16 = vsub.f32 %v4169_v38, %v1184_v35  ;;  %1857 = vperm.xlu1 %3250, %v4793_v0   ;;  %v1106_v36 = vsub.f32 %v4678_v39, %v4687_v33  ;;  %v4807_v38 = vpop.eup %3342 }
 0x2ab   : > { %3354 = vpow2.f32 %v1402_v25  ;;  %v4812_v61 = vpop.eup %3344  ;;  %v1170_v34 = vmul.f32 1.442695, %v1109_v37 }
 0x2ac   : > { %3356 = vpow2.f32 %v1156_v12  ;;  %v1404_v9 = vmul.f32 1.442695, %v1338_v26  ;;  %v1406_v19 = vmul.f32 1.442695, %v1339_v16  ;;  %1862 = vperm.xlu0 %3249, %v4800_v45   ;;  %v4814_v2 = vpop.eup %3346 }
 0x2ad   : > { %3358 = vpow2.f32 %v1158_v1  ;;  %v1189_v58 = vpop.permute.xlu1 %1188  ;;  %v4819_v31 = vpop.eup %3348 }
 0x2ae   : > { %3360 = vpow2.f32 %v1404_v9  ;;  %v1340_v49 = vsub.f32 %v4173_v40, %v1189_v58  ;;  %v1341_v57 = vsub.f32 %v4175_v41, %v1189_v58  ;;  %1867 = vperm.xlu1 %3250, %v4803_v17   ;;  %v1164_v40 = vmul.f32 1.442695, %v1106_v36  ;;  %v4826_v30 = vpop.eup %3350 }
 0x2af   : > { %3362 = vpow2.f32 %v1406_v19  ;;  %v1108_v41 = vsub.f32 %v4706_v43, %v4715_v27 }
 0x2b0   : > { %3364 = vpow2.f32 %v1160_v51  ;;  %v1408_v39 = vmul.f32 1.442695, %v1340_v49  ;;  %v1410_v33 = vmul.f32 1.442695, %v1341_v57  ;;  %1872 = vperm.xlu0 %3249, %v4807_v38  }
 0x2b1   : > { %3366 = vpow2.f32 %v1162_v55  ;;  %v1194_v5 = vpop.permute.xlu1 %1193  ;;  %v1168_v27 = vmul.f32 1.442695, %v1108_v41 }
 0x2b2   : > { %3368 = vpow2.f32 %v1408_v39  ;;  %v1342_v32 = vsub.f32 %v4177_v42, %v1194_v5  ;;  %v1343_v28 = vsub.f32 %v4181_v44, %v1194_v5  ;;  %1877 = vperm.xlu1 %3250, %v4812_v61   ;;  %v1110_v42 = vsub.f32 %v4741_v22, %v4754_v14 }
 0x2b3   : > { %3370 = vpow2.f32 %v1410_v33 }
 0x2b4   : > { %v3353_v7 = vpop.eup %3352  ;;  %v1412_v15 = vmul.f32 1.442695, %v1342_v32  ;;  %v1414_v12 = vmul.f32 1.442695, %v1343_v28  ;;  %1882 = vperm.xlu0 %3249, %v4814_v2   ;;  %3372 = vpow2.f32 %v1164_v40  ;;  %v1172_v26 = vmul.f32 1.442695, %v1110_v42 }
 0x2b5   : > { %v3355_v43 = vpop.eup %3354  ;;  %v1199_v44 = vpop.permute.xlu1 %1198 }
 0x2b6   : > { %v4833_v4 = vpop.eup %3356  ;;  %3374 = vpow2.f32 %v1412_v15  ;;  %v1344_v23 = vsub.f32 %v4185_v46, %v1199_v44  ;;  %v1345_v25 = vsub.f32 %v4187_v47, %v1199_v44  ;;  %1887 = vperm.xlu1 %3250, %v4819_v31   ;;  %v4838_v6 = vadd.f32 %v3355_v43, %v3353_v7 }
 0x2b7   : > { %v4840_v10 = vpop.eup %3358  ;;  %3376 = vpow2.f32 %v1414_v12  ;;  %v1111_v46 = vsub.f32 %v4748_v62, %v4765_v11 }
 0x2b8   : > { %v3361_v1 = vpop.eup %3360  ;;  %3378 = vpow2.f32 %v1166_v13  ;;  %v1416_v35 = vmul.f32 1.442695, %v1344_v23  ;;  %v1418_v22 = vmul.f32 1.442695, %v1345_v25  ;;  %1892 = vperm.xlu0 %3249, %v4826_v30  }
 0x2b9   : > { %v3363_v14 = vpop.eup %3362  ;;  %3380 = vpow2.f32 %v1168_v27  ;;  %v1204_v47 = vpop.permute.xlu1 %1203  ;;  %v1977_v16 = vpack.c.bf16 %v3361_v1, %v3353_v7 }
 0x2ba   : > { %v4845_v51 = vpop.eup %3364  ;;  %3382 = vpow2.f32 %v1416_v35  ;;  %v1346_v9 = vsub.f32 %v4189_v48, %v1204_v47  ;;  %v1347_v19 = vsub.f32 %v4193_v50, %v1204_v47  ;;  %1897 = vperm.xlu1 %3250, %v4833_v4   ;;  %v1978_v55 = vpack.c.bf16 %v3363_v14, %v3355_v43  ;;  %v5474_v47 = vld [vmem:[#allocation22_spill] sm:$0xff] }
 0x2bb   : > { %v4850_v36 = vpop.eup %3366  ;;  %3384 = vpow2.f32 %v1418_v22  ;;  %v4852_v58 = vadd.f32 %v3363_v14, %v3361_v1  ;;  %v1174_v48 = vmul.f32 1.442695, %v1111_v46 }
 0x2bc   : > { %v3369_v49 = vpop.eup %3368  ;;  %3386 = vpow2.f32 %v1170_v34  ;;  %v1420_v62 = vmul.f32 1.442695, %v1346_v9  ;;  %v1422_v11 = vmul.f32 1.442695, %v1347_v19  ;;  %2169 = vmatprep.mubr.bf16.mxu1 %v1978_v55  ;;  %1902 = vperm.xlu0 %3249, %v4840_v10   ;;  %v5475_v9 = vld [vmem:[#allocation23_spill] sm:$0xff] }
 0x2bd   : > { %v3371_v57 = vpop.eup %3370  ;;  %3388 = vpow2.f32 %v1172_v26  ;;  %2170 = vmatmul.mubr.bf16.vlgmr.msra.gmra.mrb[0].mxu1 %v1977_v16  ;;  %v1209_v50 = vpop.permute.xlu1 %1208 }
 0x2be   : > { %3390 = vpow2.f32 %v1420_v62  ;;  %v1348_v3 = vsub.f32 %v4197_v52, %v1209_v50  ;;  %v1349_v39 = vsub.f32 %v4199_v53, %v1209_v50  ;;  %1907 = vperm.xlu1 %3250, %v4845_v51   ;;  %v4858_v33 = vadd.f32 %v3371_v57, %v3369_v49  ;;  %v4860_v40 = vpop.eup %3372 }
 0x2bf   : > { %3392 = vpow2.f32 %v1422_v11 }
 0x2c0   : > { %v3375_v41 = vpop.eup %3374  ;;  %v1424_v5 = vmul.f32 1.442695, %v1348_v3  ;;  %v1426_v32 = vmul.f32 1.442695, %v1349_v39  ;;  %1912 = vperm.xlu0 %3249, %v4850_v36   ;;  %3394 = vpow2.f32 %v1174_v48  ;;  %v5476_v39 = vld [vmem:[#allocation24_spill] sm:$0xff] }
 0x2c1   : > { %v3377_v28 = vpop.eup %3376  ;;  %v1214_v7 = vpop.permute.xlu1 %1213  ;;  %v1979_v13 = vpack.c.bf16 %v3375_v41, %v3369_v49 }
 0x2c2   : > { %v4863_v37 = vpop.eup %3378  ;;  %3396 = vpow2.f32 %v1424_v5  ;;  %v1350_v52 = vsub.f32 %v4201_v54, %v1214_v7  ;;  %v1351_v53 = vsub.f32 %v4205_v56, %v1214_v7  ;;  %1917 = vperm.xlu1 %3250, %v4860_v40   ;;  %v1980_v15 = vpack.c.bf16 %v3377_v28, %v3371_v57  ;;  %v5477_v5 = vld [vmem:[#allocation25_spill] sm:$0xff] }
 0x2c3   : > { %v4868_v12 = vpop.eup %3380  ;;  %3398 = vpow2.f32 %v1426_v32  ;;  %v4870_v43 = vadd.f32 %v3377_v28, %v3375_v41 }
 0x2c4   : > { %v3383_v27 = vpop.eup %3382  ;;  %v1428_v42 = vmul.f32 1.442695, %v1350_v52  ;;  %v1430_v44 = vmul.f32 1.442695, %v1351_v53  ;;  %2177 = vmatprep.mubr.bf16.mxu1 %v1980_v15  ;;  %1922 = vperm.xlu0 %3249, %v4863_v37   ;;  %v5478_v15 = vld [vmem:[#allocation26_spill] sm:$0xff] }
 0x2c5   : > { %v3385_v23 = vpop.eup %3384  ;;  %2178 = vmatmul.mubr.bf16.gmra.mrb[4].mxu1 %v1979_v13  ;;  %v1219_v25 = vpop.permute.xlu1 %1218 }
 0x2c6   : > { %v4873_v54 = vpop.eup %3386  ;;  %3400 = vpow2.f32 %v1428_v42  ;;  %v1352_v56 = vsub.f32 %v4241_v59, %v1219_v25  ;;  %v1353_v1 = vsub.f32 %v4243_v60, %v1219_v25  ;;  %1927 = vperm.xlu1 %3250, %v4868_v12   ;;  %v4878_v34 = vadd.f32 %v3385_v23, %v3383_v27  ;;  %v5479_v42 = vld [vmem:[#allocation27_spill] sm:$0xff] }
 0x2c7   : > { %v4880_v35 = vpop.eup %3388  ;;  %3402 = vpow2.f32 %v1430_v44  ;;  %v1224_v22 = vpop.permute.xlu0 %1223 }
 0x2c8   : > { %v3391_v14 = vpop.eup %3390  ;;  %v1432_v26 = vmul.f32 1.442695, %v1352_v56  ;;  %v1434_v46 = vmul.f32 1.442695, %v1353_v1  ;;  %v1354_v16 = vsub.f32 %v5474_v47, %v1224_v22  ;;  %v1355_v19 = vsub.f32 %v5475_v9, %v1224_v22  ;;  %1932 = vperm.xlu0 %3249, %v4873_v54   ;;  %v5480_v9 = vld [vmem:[#allocation28_spill] sm:$0xff] }
 0x2c9   : > { %v3393_v59 = vpop.eup %3392  ;;  %v1981_v55 = vpack.c.bf16 %v3391_v14, %v3383_v27 }
 0x2ca   : > { %3404 = vpow2.f32 %v1432_v26  ;;  %v1436_v60 = vmul.f32 1.442695, %v1354_v16  ;;  %v1438_v49 = vmul.f32 1.442695, %v1355_v19  ;;  %1937 = vperm.xlu1 %3250, %v4880_v35   ;;  %v1982_v62 = vpack.c.bf16 %v3393_v59, %v3385_v23  ;;  %v4886_v11 = vpop.eup %3394 }
 0x2cb   : > { %3406 = vpow2.f32 %v1434_v46  ;;  %v4888_v57 = vadd.f32 %v3393_v59, %v3391_v14  ;;  %v5481_v59 = vld [vmem:[#allocation29_spill] sm:$0xff] }
 0x2cc   : > { %v3397_v48 = vpop.eup %3396  ;;  %3408 = vpow2.f32 %v1436_v60  ;;  %2185 = vmatprep.mubr.bf16.mxu1 %v1982_v62  ;;  %1942 = vperm.xlu0 %3249, %v4886_v11  }
 0x2cd   : > { %v3399_v50 = vpop.eup %3398  ;;  %3410 = vpow2.f32 %v1438_v49  ;;  %2186 = vmatmul.mubr.bf16.gmra.mrb[8].mxu1 %v1981_v55  ;;  %v1229_v3 = vpop.permute.xlu1 %1228 }
 0x2ce   : > { %v1356_v41 = vsub.f32 %v5476_v39, %v1229_v3  ;;  %v1357_v32 = vsub.f32 %v5477_v5, %v1229_v3  ;;  %v4893_v28 = vadd.f32 %v3399_v50, %v3397_v48  ;;  %v5482_v39 = vld [vmem:[#allocation30_spill] sm:$0xff]  ;;  %v5483_v5 = vld [vmem:[#allocation31_spill] sm:$0xff] }
 0x2cf   : > { %v1234_v7 = vpop.permute.xlu0 %1233 }
 0x2d0   : > { %v3401_v13 = vpop.eup %3400  ;;  %v1440_v52 = vmul.f32 1.442695, %v1356_v41  ;;  %v1442_v53 = vmul.f32 1.442695, %v1357_v32  ;;  %v1358_v27 = vsub.f32 %v5478_v15, %v1234_v7  ;;  %v1359_v44 = vsub.f32 %v5479_v42, %v1234_v7 }
 0x2d1   : > { %v3403_v23 = vpop.eup %3402  ;;  %v1983_v25 = vpack.c.bf16 %v3401_v13, %v3397_v48 }
 0x2d2   : > { %3412 = vpow2.f32 %v1440_v52  ;;  %v1444_v56 = vmul.f32 1.442695, %v1358_v27  ;;  %v1446_v1 = vmul.f32 1.442695, %v1359_v44  ;;  %v1984_v22 = vpack.c.bf16 %v3403_v23, %v3399_v50 }
 0x2d3   : > { %3414 = vpow2.f32 %v1442_v53  ;;  %v4897_v14 = vadd.f32 %v3403_v23, %v3401_v13  ;;  %v5484_v23 = vld [vmem:[#allocation32_spill] sm:$0xff] }
 0x2d4   : > { %v3405_v26 = vpop.eup %3404  ;;  %3416 = vpow2.f32 %v1444_v56  ;;  %2193 = vmatprep.mubr.bf16.mxu1 %v1984_v22  ;;  %v5485_v56 = vld [vmem:[#allocation33_spill] sm:$0xff] }
 0x2d5   : > { %v3407_v46 = vpop.eup %3406  ;;  %3418 = vpow2.f32 %v1446_v1  ;;  %2194 = vmatmul.mubr.bf16.gmra.mrb[12].mxu1 %v1983_v25  ;;  %v1239_v47 = vpop.permute.xlu1 %1238 }
 0x2d6   : > { %v3409_v16 = vpop.eup %3408  ;;  %v1360_v19 = vsub.f32 %v5480_v9, %v1239_v47  ;;  %v1361_v55 = vsub.f32 %v5481_v59, %v1239_v47  ;;  %v4901_v60 = vadd.f32 %v3407_v46, %v3405_v26 }
 0x2d7   : > { %v3411_v49 = vpop.eup %3410  ;;  %v1244_v62 = vpop.permute.xlu0 %1243  ;;  %v1985_v48 = vpack.c.bf16 %v3409_v16, %v3405_v26 }
 0x2d8   : > { %v1448_v50 = vmul.f32 1.442695, %v1360_v19  ;;  %v1450_v3 = vmul.f32 1.442695, %v1361_v55  ;;  %v1362_v41 = vsub.f32 %v5482_v39, %v1244_v62  ;;  %v1363_v32 = vsub.f32 %v5483_v5, %v1244_v62  ;;  %v5486_v19 = vld [vmem:[#allocation34_spill] sm:$0xff]  ;;  %v5487_v55 = vld [vmem:[#allocation35_spill] sm:$0xff] }
 0x2d9   : > { %v1986_v7 = vpack.c.bf16 %v3411_v49, %v3407_v46  ;;  %v4905_v13 = vadd.f32 %v3411_v49, %v3409_v16 }
 0x2da   : > { %3420 = vpow2.f32 %v1448_v50  ;;  %v1452_v52 = vmul.f32 1.442695, %v1362_v41  ;;  %v1454_v53 = vmul.f32 1.442695, %v1363_v32 }
 0x2db   : > { %3422 = vpow2.f32 %v1450_v3  ;;  %2201 = vmatprep.mubr.bf16.mxu1 %v1986_v7  ;;  %v5488_v7 = vld [vmem:[#allocation36_spill] sm:$0xff] }
 0x2dc   : > { %v3413_v15 = vpop.eup %3412  ;;  %3424 = vpow2.f32 %v1452_v52 }
 0x2dd   : > { %v3415_v27 = vpop.eup %3414  ;;  %3426 = vpow2.f32 %v1454_v53  ;;  %2202 = vmatmul.mubr.bf16.gmra.mrb[16].mxu1 %v1985_v48  ;;  %v1249_v42 = vpop.permute.xlu1 %1248  ;;  %v5489_v53 = vld [vmem:[#allocation37_spill] sm:$0xff] }
 0x2de   : > { %v3417_v44 = vpop.eup %3416  ;;  %v1364_v25 = vsub.f32 %v5484_v23, %v1249_v42  ;;  %v1365_v1 = vsub.f32 %v5485_v56, %v1249_v42  ;;  %v4909_v22 = vadd.f32 %v3415_v27, %v3413_v15 }
 0x2df   : > { %v3419_v26 = vpop.eup %3418  ;;  %v1254_v46 = vpop.permute.xlu0 %1253  ;;  %v1987_v47 = vpack.c.bf16 %v3417_v44, %v3413_v15 }
 0x2e0   : > { %v1456_v16 = vmul.f32 1.442695, %v1364_v25  ;;  %v1458_v9 = vmul.f32 1.442695, %v1365_v1  ;;  %v1366_v59 = vsub.f32 %v5486_v19, %v1254_v46  ;;  %v1367_v49 = vsub.f32 %v5487_v55, %v1254_v46  ;;  %v5490_v1 = vld [vmem:[#allocation38_spill] sm:$0xff]  ;;  %v5491_v46 = vld [vmem:[#allocation39_spill] sm:$0xff] }
 0x2e1   : > { %v1988_v62 = vpack.c.bf16 %v3419_v26, %v3415_v27  ;;  %v4913_v50 = vadd.f32 %v3419_v26, %v3417_v44 }
 0x2e2   : > { %3428 = vpow2.f32 %v1456_v16  ;;  %v1460_v48 = vmul.f32 1.442695, %v1366_v59  ;;  %v1462_v3 = vmul.f32 1.442695, %v1367_v49 }
 0x2e3   : > { %3430 = vpow2.f32 %v1458_v9  ;;  %2209 = vmatprep.mubr.bf16.mxu1 %v1988_v62 }
 0x2e4   : > { %v3421_v39 = vpop.eup %3420  ;;  %3432 = vpow2.f32 %v1460_v48 }
 0x2e5   : > { %v3423_v41 = vpop.eup %3422  ;;  %3434 = vpow2.f32 %v1462_v3  ;;  %2210 = vmatmul.mubr.bf16.gmra.mrb[20].mxu1 %v1987_v47  ;;  %v1259_v5 = vpop.permute.xlu1 %1258  ;;  %v5492_v3 = vld [vmem:[#allocation40_spill] sm:$0xff] }
 0x2e6   : > { %v3425_v32 = vpop.eup %3424  ;;  %v1368_v52 = vsub.f32 %v5488_v7, %v1259_v5  ;;  %v1369_v15 = vsub.f32 %v5489_v53, %v1259_v5  ;;  %v4917_v42 = vadd.f32 %v3423_v41, %v3421_v39  ;;  %v5493_v5 = vld [vmem:[#allocation41_spill] sm:$0xff] }
 0x2e7   : > { %v3427_v27 = vpop.eup %3426  ;;  %v1264_v44 = vpop.permute.xlu0 %1263  ;;  %v1989_v23 = vpack.c.bf16 %v3425_v32, %v3421_v39 }
 0x2e8   : > { %v1464_v25 = vmul.f32 1.442695, %v1368_v52  ;;  %v1466_v56 = vmul.f32 1.442695, %v1369_v15  ;;  %v1370_v26 = vsub.f32 %v5490_v1, %v1264_v44  ;;  %v1371_v16 = vsub.f32 %v5491_v46, %v1264_v44 }
 0x2e9   : > { %v1990_v9 = vpack.c.bf16 %v3427_v27, %v3423_v41  ;;  %v4921_v19 = vadd.f32 %v3427_v27, %v3425_v32  ;;  %v5494_v27 = vld [vmem:[#allocation42_spill] sm:$0xff] }
 0x2ea   : > { %3436 = vpow2.f32 %v1464_v25  ;;  %v1468_v47 = vmul.f32 1.442695, %v1370_v26  ;;  %v1470_v59 = vmul.f32 1.442695, %v1371_v16 }
 0x2eb   : > { %3438 = vpow2.f32 %v1466_v56  ;;  %2217 = vmatprep.mubr.bf16.mxu1 %v1990_v9  ;;  %1596 = vadd.xlane.f32.xlu0 %v4852_v58 }
 0x2ec   : > { %v3429_v55 = vpop.eup %3428  ;;  %3440 = vpow2.f32 %v1468_v47  ;;  %v5496_v47 = vld [vmem:[#allocation44_spill] sm:$0xff] }
 0x2ed   : > { %v3431_v49 = vpop.eup %3430  ;;  %3442 = vpow2.f32 %v1470_v59  ;;  %2218 = vmatmul.mubr.bf16.gmra.mrb[24].mxu1 %v1989_v23  ;;  %v1269_v62 = vpop.permute.xlu1 %1268  ;;  %v5495_v23 = vld [vmem:[#allocation43_spill] sm:$0xff] }
 0x2ee   : > { %v3433_v48 = vpop.eup %3432  ;;  %v1372_v39 = vsub.f32 %v5492_v3, %v1269_v62  ;;  %v1373_v41 = vsub.f32 %v5493_v5, %v1269_v62  ;;  %1593 = vadd.xlane.f32.xlu1 %v4838_v6  ;;  %v4927_v32 = vadd.f32 %v3431_v49, %v3429_v55  ;;  %v5498_v5 = vld [vmem:[#allocation46_spill] sm:$0xff] }
 0x2ef   : > { %v3435_v7 = vpop.eup %3434  ;;  %v1274_v52 = vpop.permute.xlu0 %1273  ;;  %1599 = vadd.xlane.f32.xlu0 %v4858_v33  ;;  %v1991_v58 = vpack.c.bf16 %v3433_v48, %v3429_v55  ;;  %v5497_v55 = vld [vmem:[#allocation45_spill] sm:$0xff] }
 0x2f0   : > { %v1472_v53 = vmul.f32 1.442695, %v1372_v39  ;;  %v1474_v15 = vmul.f32 1.442695, %v1373_v41  ;;  %v1374_v44 = vsub.f32 %v5494_v27, %v1274_v52  ;;  %v1375_v25 = vsub.f32 %v5495_v23, %v1274_v52 }
 0x2f1   : > { %v1992_v56 = vpack.c.bf16 %v3435_v7, %v3431_v49  ;;  %v4932_v1 = vadd.f32 %v3435_v7, %v3433_v48  ;;  %v5499_v7 = vld [vmem:[#allocation47_spill] sm:$0xff] }
 0x2f2   : > { %3444 = vpow2.f32 %v1472_v53  ;;  %v1476_v26 = vmul.f32 1.442695, %v1374_v44  ;;  %v1478_v46 = vmul.f32 1.442695, %v1375_v25  ;;  %1602 = vadd.xlane.f32.xlu1 %v4870_v43 }
 0x2f3   : > { %3446 = vpow2.f32 %v1474_v15  ;;  %2225 = vmatprep.mubr.bf16.mxu1 %v1992_v56  ;;  %1605 = vadd.xlane.f32.xlu0 %v4878_v34 }
 0x2f4   : > { %v3437_v6 = vpop.eup %3436  ;;  %3448 = vpow2.f32 %v1476_v26 }
 0x2f5   : > { %v3439_v33 = vpop.eup %3438  ;;  %3450 = vpow2.f32 %v1478_v46  ;;  %2226 = vmatmul.mubr.bf16.gmra.mrb[28].mxu1 %v1991_v58  ;;  %v1279_v16 = vpop.permute.xlu1 %1278 }
 0x2f6   : > { %v3441_v9 = vpop.eup %3440  ;;  %v1376_v59 = vsub.f32 %v5496_v47, %v1279_v16  ;;  %v1377_v49 = vsub.f32 %v5497_v55, %v1279_v16  ;;  %1608 = vadd.xlane.f32.xlu1 %v4888_v57  ;;  %v4939_v62 = vadd.f32 %v3439_v33, %v3437_v6  ;;  %v5504_v16 = vld [vmem:[#allocation51_spill] sm:$0xff] }
 0x2f7   : > { %v3443_v43 = vpop.eup %3442  ;;  %v1284_v48 = vpop.permute.xlu0 %1283  ;;  %1611 = vadd.xlane.f32.xlu0 %v4893_v28  ;;  %v1993_v34 = vpack.c.bf16 %v3441_v9, %v3437_v6 }
 0x2f8   : > { %v1480_v3 = vmul.f32 1.442695, %v1376_v59  ;;  %v1482_v39 = vmul.f32 1.442695, %v1377_v49  ;;  %v1378_v41 = vsub.f32 %v5498_v5, %v1284_v48  ;;  %v1379_v52 = vsub.f32 %v5499_v7, %v1284_v48  ;;  %v5505_v48 = vld [vmem:[#allocation48_spill] sm:$0xff] }
 0x2f9   : > { %v4944_v58 = vpop.permute.xlu1 %1792  ;;  %v1994_v53 = vpack.c.bf16 %v3443_v43, %v3439_v33  ;;  %v4946_v15 = vadd.f32 %v3443_v43, %v3441_v9  ;;  %v5503_v33 = vld [vmem:[#allocation50_spill] sm:$0xff] }
 0x2fa   : > { %5500 = vst [vmem:[#allocation22_spill] sm:$0xff] %v4944_v58  ;;  %3452 = vpow2.f32 %v1480_v3  ;;  %v1484_v57 = vmul.f32 1.442695, %v1378_v41  ;;  %v1486_v27 = vmul.f32 1.442695, %v1379_v52  ;;  %1614 = vadd.xlane.f32.xlu1 %v4897_v14  ;;  %v5506_v3 = vld [vmem:[#allocation49_spill] sm:$0xff] }
 0x2fb   : > { %3454 = vpow2.f32 %v1482_v39  ;;  %2233 = vmatprep.mubr.bf16.mxu1 %v1994_v53  ;;  %1617 = vadd.xlane.f32.xlu0 %v4901_v60  ;;  %v4950_v28 = vpop.permute.xlu0 %1787  ;;  %v1531_v58 = vld [vmem:[#allocation3 + $0x18] sm:$0xff] }
 0x2fc   : > { %5501 = vst [vmem:[#allocation23_spill] sm:$0xff] %v4950_v28  ;;  %v3445_v44 = vpop.eup %3444  ;;  %3456 = vpow2.f32 %v1484_v57 }
 0x2fd   : > { %v3447_v23 = vpop.eup %3446  ;;  %3458 = vpow2.f32 %v1486_v27  ;;  %2234 = vmatmul.mubr.bf16.gmra.mrb[32].mxu1 %v1993_v34  ;;  %v4952_v25 = vpop.permute.xlu1 %1797 }
 0x2fe   : > { %5502 = vst [vmem:[#allocation24_spill] sm:$0xff] %v4952_v25  ;;  %v3449_v56 = vpop.eup %3448  ;;  %1620 = vadd.xlane.f32.xlu1 %v4905_v13  ;;  %v1646_v26 = vadd.f32 %v3447_v23, %v3445_v44 }
 0x2ff   : > { %v3451_v46 = vpop.eup %3450  ;;  %1623 = vadd.xlane.f32.xlu0 %v4909_v22  ;;  %v1294_v14 = vpop.permute.xlu0 %1293  ;;  %v1995_v6 = vpack.c.bf16 %v3449_v56, %v3445_v44  ;;  %v5509_v44 = vld [vmem:[#allocation54_spill] sm:$0xff] }
 0x300   : > { %v1382_v60 = vsub.f32 %v5503_v33, %v1294_v14  ;;  %v1383_v9 = vsub.f32 %v5504_v16, %v1294_v14  ;;  %v1996_v47 = vpack.c.bf16 %v3451_v46, %v3447_v23  ;;  %v4958_v59 = vadd.f32 %v3451_v46, %v3449_v56  ;;  %v5510_v56 = vld [vmem:[#allocation55_spill] sm:$0xff] }
 0x301   : > { %v1289_v55 = vpop.permute.xlu1 %1288 }
 0x302   : > { %v1492_v49 = vmul.f32 1.442695, %v1382_v60  ;;  %v1494_v43 = vmul.f32 1.442695, %v1383_v9  ;;  %v1380_v34 = vsub.f32 %v5505_v48, %v1289_v55  ;;  %v1381_v13 = vsub.f32 %v5506_v3, %v1289_v55  ;;  %2241 = vmatprep.mubr.bf16.mxu1 %v1996_v47  ;;  %1626 = vadd.xlane.f32.xlu1 %v4913_v50  ;;  %v5511_v9 = vld [vmem:[#allocation52_spill] sm:$0xff]  ;;  %v5512_v55 = vld [vmem:[#allocation53_spill] sm:$0xff] }
 0x303   : > { %1629 = vadd.xlane.f32.xlu0 %v4917_v42  ;;  %v4964_v22 = vpop.permute.xlu0 %1802 }
 0x304   : > { %5507 = vst [vmem:[#allocation25_spill] sm:$0xff] %v4964_v22  ;;  %v3453_v39 = vpop.eup %3452  ;;  %3460 = vpow2.f32 %v1492_v49  ;;  %v1488_v5 = vmul.f32 1.442695, %v1380_v34  ;;  %v1490_v41 = vmul.f32 1.442695, %v1381_v13  ;;  %v5533_v22 = vld [vmem:[#allocation69_spill] sm:$0xff] }
 0x305   : > { %v3455_v7 = vpop.eup %3454  ;;  %3462 = vpow2.f32 %v1494_v43  ;;  %2242 = vmatmul.mubr.bf16.gmra.mrb[36].mxu1 %v1995_v6  ;;  %v4966_v52 = vpop.permute.xlu1 %1807 }
 0x306   : > { %5508 = vst [vmem:[#allocation26_spill] sm:$0xff] %v4966_v52  ;;  %v3457_v53 = vpop.eup %3456  ;;  %3464 = vpow2.f32 %v1488_v5  ;;  %1632 = vadd.xlane.f32.xlu1 %v4921_v19  ;;  %v1652_v57 = vadd.f32 %v3455_v7, %v3453_v39  ;;  %v5515_v5 = vld [vmem:[#allocation59_spill] sm:$0xff] }
 0x307   : > { %v3459_v27 = vpop.eup %3458  ;;  %3466 = vpow2.f32 %v1490_v41  ;;  %1635 = vadd.xlane.f32.xlu0 %v4927_v32  ;;  %v1304_v50 = vpop.permute.xlu0 %1303  ;;  %v1997_v42 = vpack.c.bf16 %v3457_v53, %v3453_v39  ;;  %v5514_v39 = vld [vmem:[#allocation58_spill] sm:$0xff] }
 0x308   : > { %v1386_v23 = vsub.f32 %v5509_v44, %v1304_v50  ;;  %v1387_v46 = vsub.f32 %v5510_v56, %v1304_v50  ;;  %v1998_v14 = vpack.c.bf16 %v3459_v27, %v3455_v7  ;;  %v1655_v33 = vadd.f32 %v3459_v27, %v3457_v53 }
 0x309   : > { %v1299_v6 = vpop.permute.xlu1 %1298 }
 0x30a   : > { %v1500_v60 = vmul.f32 1.442695, %v1386_v23  ;;  %v1502_v16 = vmul.f32 1.442695, %v1387_v46  ;;  %v1384_v47 = vsub.f32 %v5511_v9, %v1299_v6  ;;  %v1385_v19 = vsub.f32 %v5512_v55, %v1299_v6  ;;  %2249 = vmatprep.mubr.bf16.mxu1 %v1998_v14  ;;  %1638 = vadd.xlane.f32.xlu1 %v4932_v1  ;;  %v5516_v23 = vld [vmem:[#allocation56_spill] sm:$0xff]  ;;  %v5517_v46 = vld [vmem:[#allocation57_spill] sm:$0xff] }
 0x30b   : > { %1641 = vadd.xlane.f32.xlu0 %v4939_v62  ;;  %v4976_v32 = vpop.permute.xlu0 %1812 }
 0x30c   : > { %5513 = vst [vmem:[#allocation27_spill] sm:$0xff] %v4976_v32  ;;  %3468 = vpow2.f32 %v1500_v60  ;;  %v1496_v49 = vmul.f32 1.442695, %v1384_v47  ;;  %v1498_v43 = vmul.f32 1.442695, %v1385_v19  ;;  %v5518_v19 = vld [vmem:[#allocation62_spill] sm:$0xff] }
 0x30d   : > { %3470 = vpow2.f32 %v1502_v16  ;;  %2250 = vmatmul.mubr.bf16.gmra.mrb[40].mxu1 %v1997_v42  ;;  %v4978_v48 = vpop.permute.xlu1 %1817 }
 0x30e   : > { %v3461_v34 = vpop.eup %3460  ;;  %3472 = vpow2.f32 %v1496_v49  ;;  %1644 = vadd.xlane.f32.xlu1 %v4946_v15 }
 0x30f   : > { %v3463_v3 = vpop.eup %3462  ;;  %3474 = vpow2.f32 %v1498_v43  ;;  %1647 = vadd.xlane.f32.xlu0 %v1646_v26  ;;  %v1314_v13 = vpop.permute.xlu0 %1313  ;;  %v5519_v43 = vld [vmem:[#allocation63_spill] sm:$0xff] }
 0x310   : > { %v3465_v1 = vpop.eup %3464  ;;  %v1390_v62 = vsub.f32 %v5514_v39, %v1314_v13  ;;  %v1391_v41 = vsub.f32 %v5515_v5, %v1314_v13  ;;  %v1661_v7 = vadd.f32 %v3463_v3, %v3461_v34 }
 0x311   : > { %v3467_v53 = vpop.eup %3466  ;;  %v1309_v27 = vpop.permute.xlu1 %1308  ;;  %v1999_v50 = vpack.c.bf16 %v3461_v34, %v3465_v1 }
 0x312   : > { %v1508_v42 = vmul.f32 1.442695, %v1390_v62  ;;  %v1510_v44 = vmul.f32 1.442695, %v1391_v41  ;;  %v1388_v56 = vsub.f32 %v5516_v23, %v1309_v27  ;;  %v1389_v14 = vsub.f32 %v5517_v46, %v1309_v27  ;;  %1650 = vadd.xlane.f32.xlu1 %v4958_v59  ;;  %v5520_v41 = vld [vmem:[#allocation60_spill] sm:$0xff]  ;;  %v5521_v27 = vld [vmem:[#allocation61_spill] sm:$0xff] }
 0x313   : > { %1653 = vadd.xlane.f32.xlu0 %v1652_v57  ;;  %v2000_v15 = vpack.c.bf16 %v3463_v3, %v3467_v53  ;;  %v4986_v26 = vpop.permute.xlu0 %1822  ;;  %v1658_v6 = vadd.f32 %v3467_v53, %v3465_v1 }
 0x314   : > { %3476 = vpow2.f32 %v1508_v42  ;;  %v1504_v60 = vmul.f32 1.442695, %v1388_v56  ;;  %v1506_v16 = vmul.f32 1.442695, %v1389_v14 }
 0x315   : > { %3478 = vpow2.f32 %v1510_v44  ;;  %2257 = vmatprep.mubr.bf16.mxu1 %v2000_v15  ;;  %v4988_v9 = vpop.permute.xlu1 %1827 }
 0x316   : > { %v3469_v47 = vpop.eup %3468  ;;  %3480 = vpow2.f32 %v1504_v60  ;;  %2258 = vmatmul.mubr.bf16.gmra.mrb[44].mxu1 %v1999_v50  ;;  %1656 = vadd.xlane.f32.xlu1 %v1655_v33  ;;  %v5522_v60 = vld [vmem:[#allocation66_spill] sm:$0xff] }
 0x317   : > { %v3471_v55 = vpop.eup %3470  ;;  %3482 = vpow2.f32 %v1506_v16  ;;  %1659 = vadd.xlane.f32.xlu0 %v1658_v6  ;;  %v1324_v59 = vpop.permute.xlu0 %1323 }
 0x318   : > { %v3473_v57 = vpop.eup %3472  ;;  %v1394_v49 = vsub.f32 %v5518_v19, %v1324_v59  ;;  %v1395_v34 = vsub.f32 %v5519_v43, %v1324_v59  ;;  %v1667_v3 = vadd.f32 %v3471_v55, %v3469_v47 }
 0x319   : > { %v3475_v13 = vpop.eup %3474  ;;  %v1319_v1 = vpop.permute.xlu1 %1318  ;;  %v2001_v39 = vpack.c.bf16 %v3469_v47, %v3473_v57  ;;  %v5523_v47 = vld [vmem:[#allocation67_spill] sm:$0xff] }
 0x31a   : > { %v1516_v62 = vmul.f32 1.442695, %v1394_v49  ;;  %v1518_v5 = vmul.f32 1.442695, %v1395_v34  ;;  %v1392_v53 = vsub.f32 %v5520_v41, %v1319_v1  ;;  %v1393_v50 = vsub.f32 %v5521_v27, %v1319_v1  ;;  %1662 = vadd.xlane.f32.xlu1 %v1661_v7 }
 0x31b   : > { %v1664_v33 = vadd.f32 %v3475_v13, %v3473_v57  ;;  %v2002_v42 = vpack.c.bf16 %v3471_v55, %v3475_v13  ;;  %v4994_v44 = vpop.permute.xlu0 %1832  ;;  %v5524_v13 = vld [vmem:[#allocation64_spill] sm:$0xff] }
 0x31c   : > { %3484 = vpow2.f32 %v1516_v62  ;;  %v1512_v23 = vmul.f32 1.442695, %v1392_v53  ;;  %v1514_v56 = vmul.f32 1.442695, %v1393_v50  ;;  %v5525_v62 = vld [vmem:[#allocation65_spill] sm:$0xff] }
 0x31d   : > { %3486 = vpow2.f32 %v1518_v5  ;;  %1665 = vadd.xlane.f32.xlu0 %v1664_v33  ;;  %2265 = vmatprep.mubr.bf16.mxu1 %v2002_v42  ;;  %v4996_v46 = vpop.permute.xlu1 %1837 }
 0x31e   : > { %v3477_v14 = vpop.eup %3476  ;;  %3488 = vpow2.f32 %v1512_v23  ;;  %2266 = vmatmul.mubr.bf16.gmra.mrb[48].mxu1 %v2001_v39  ;;  %1668 = vadd.xlane.f32.xlu1 %v1667_v3 }
 0x31f   : > { %v3479_v15 = vpop.eup %3478  ;;  %3490 = vpow2.f32 %v1514_v56  ;;  %v1334_v6 = vpop.permute.xlu0 %1333 }
 0x320   : > { %v3481_v7 = vpop.eup %3480  ;;  %v1398_v16 = vsub.f32 %v5522_v60, %v1334_v6  ;;  %v1399_v55 = vsub.f32 %v5523_v47, %v1334_v6  ;;  %v1673_v59 = vadd.f32 %v3479_v15, %v3477_v14 }
 0x321   : > { %v3483_v57 = vpop.eup %3482  ;;  %v1329_v19 = vpop.permute.xlu1 %1328  ;;  %v2003_v49 = vpack.c.bf16 %v3477_v14, %v3481_v7 }
 0x322   : > { %v1524_v43 = vmul.f32 1.442695, %v1398_v16  ;;  %v1526_v34 = vmul.f32 1.442695, %v1399_v55  ;;  %v1396_v1 = vsub.f32 %v5524_v13, %v1329_v19  ;;  %v1397_v5 = vsub.f32 %v5525_v62, %v1329_v19  ;;  %1674 = vadd.xlane.f32.xlu1 %v1673_v59 }
 0x323   : > { %v1670_v3 = vadd.f32 %v3483_v57, %v3481_v7  ;;  %v2004_v39 = vpack.c.bf16 %v3479_v15, %v3483_v57  ;;  %v5002_v19 = vpop.permute.xlu0 %1842 }
 0x324   : > { %3492 = vpow2.f32 %v1524_v43  ;;  %v1520_v41 = vmul.f32 1.442695, %v1396_v1  ;;  %v1522_v53 = vmul.f32 1.442695, %v1397_v5 }
 0x325   : > { %3494 = vpow2.f32 %v1526_v34  ;;  %1671 = vadd.xlane.f32.xlu0 %v1670_v3  ;;  %2273 = vmatprep.mubr.bf16.mxu1 %v2004_v39  ;;  %v5006_v43 = vpop.permute.xlu1 %1847 }
 0x326   : > { %v3485_v27 = vpop.eup %3484  ;;  %3496 = vpow2.f32 %v1520_v41  ;;  %2274 = vmatmul.mubr.bf16.gmra.mrb[52].mxu1 %v2003_v49 }
 0x327   : > { %v3487_v50 = vpop.eup %3486  ;;  %3498 = vpow2.f32 %v1522_v53  ;;  %v5004_v49 = vpop.permute.xlu0 %1852 }
 0x328   : > { %v3489_v33 = vpop.eup %3488  ;;  %v1679_v42 = vadd.f32 %v3487_v50, %v3485_v27 }
 0x329   : > { %v3491_v23 = vpop.eup %3490  ;;  %v2005_v56 = vpack.c.bf16 %v3485_v27, %v3489_v33  ;;  %v5010_v13 = vpop.permute.xlu1 %1857 }
 0x32a   : > { %1680 = vadd.xlane.f32.xlu1 %v1679_v42  ;;  %v1676_v14 = vadd.f32 %v3491_v23, %v3489_v33  ;;  %v2006_v6 = vpack.c.bf16 %v3487_v50, %v3491_v23 }
 0x32b   : > { %v5008_v34 = vpop.permute.xlu0 %1862 }
 0x32c   : > { %1677 = vadd.xlane.f32.xlu0 %v1676_v14  ;;  %2281 = vmatprep.mubr.bf16.mxu1 %v2006_v6 }
 0x32d   : > { %v5014_v62 = vpop.permute.xlu1 %1867 }
 0x32e   : > { %v3493_v15 = vpop.eup %3492  ;;  %2282 = vmatmul.mubr.bf16.gmra.mrb[56].mxu1 %v2005_v56 }
 0x32f   : > { %v3495_v7 = vpop.eup %3494  ;;  %v5012_v1 = vpop.permute.xlu0 %1872 }
 0x330   : > { %v3497_v60 = vpop.eup %3496  ;;  %v1685_v16 = vadd.f32 %v3495_v7, %v3493_v15 }
 0x331   : > { %v3499_v47 = vpop.eup %3498  ;;  %v2007_v55 = vpack.c.bf16 %v3493_v15, %v3497_v60  ;;  %v5018_v3 = vpop.permute.xlu1 %1877  ;;  %v1529_v15 = vld [vmem:[#allocation3 + $0x8] sm:$0xff] }
 0x332   : > { %1686 = vadd.xlane.f32.xlu1 %v1685_v16  ;;  %v1682_v59 = vadd.f32 %v3499_v47, %v3497_v60  ;;  %v2008_v57 = vpack.c.bf16 %v3495_v7, %v3499_v47  ;;  %v1561_v60 = vmul.f32 %v4620_v18, %v1529_v15  ;;  %v1528_v16 = vld [vmem:[#allocation3] sm:$0xff] }
 0x333   : > { %v5016_v5 = vpop.permute.xlu0 %1882 }
 0x334   : > { %1683 = vadd.xlane.f32.xlu0 %v1682_v59  ;;  %2289 = vmatprep.mubr.bf16.mxu1 %v2008_v57  ;;  %v5532_v57 = vld [vmem:[#allocation68_spill] sm:$0xff] }
 0x335   : > { %v5022_v41 = vpop.permute.xlu1 %1887  ;;  %v1560_v32 = vmul.f32 %v5532_v57, %v1528_v16  ;;  %v1533_v16 = vld [vmem:[#allocation3 + $0x28] sm:$0xff] }
 0x336   : > { %2290 = vmatmul.mubr.bf16.gmra.mrb[60].mxu1 %v2007_v55  ;;  %v1530_v55 = vld [vmem:[#allocation3 + $0x10] sm:$0xff] }
 0x337   : > { %v5020_v39 = vpop.permute.xlu0 %1892  ;;  %v1562_v25 = vmul.f32 %v5533_v22, %v1530_v55  ;;  %v5536_v22 = vld [vmem:[#allocation72_spill] sm:$0xff] }
 0x339   : > { %v5026_v27 = vpop.permute.xlu1 %1897 }
 0x33b   : > { %v5024_v53 = vpop.permute.xlu0 %1902 }
 0x33d   : > { %v5030_v33 = vpop.permute.xlu1 %1907 }
 0x33f   : > { %v5028_v50 = vpop.permute.xlu0 %1912 }
 0x341   : > { %v5034_v23 = vpop.permute.xlu1 %1917 }
 0x342   : > { %5527 = vst [vmem:[#allocation29_spill] sm:$0xff] %v5034_v23 }
 0x343   : > { %v5032_v42 = vpop.permute.xlu0 %1922 }
 0x344   : > { %5526 = vst [vmem:[#allocation28_spill] sm:$0xff] %v5032_v42  ;;  %v1534_v42 = vld [vmem:[#allocation3 + $0x30] sm:$0xff] }
 0x345   : > { %v5038_v14 = vpop.permute.xlu1 %1927 }
 0x346   : > { %5529 = vst [vmem:[#allocation31_spill] sm:$0xff] %v5038_v14 }
 0x347   : > { %v5036_v56 = vpop.permute.xlu0 %1932 }
 0x348   : > { %5528 = vst [vmem:[#allocation30_spill] sm:$0xff] %v5036_v56 }
 0x349   : > { %v5042_v7 = vpop.permute.xlu1 %1937 }
 0x34a   : > { %5531 = vst [vmem:[#allocation33_spill] sm:$0xff] %v5042_v7  ;;  %v5534_v7 = vld [vmem:[#allocation70_spill] sm:$0xff] }
 0x34b   : > { %v5040_v6 = vpop.permute.xlu0 %1942  ;;  %v1563_v18 = vmul.f32 %v5534_v7, %v1531_v58  ;;  %v1536_v7 = vld [vmem:[#allocation3 + $0x40] sm:$0xff] }
 0x34c   : > { %5530 = vst [vmem:[#allocation32_spill] sm:$0xff] %v5040_v6  ;;  %v1532_v6 = vld [vmem:[#allocation3 + $0x20] sm:$0xff] }
 0x378   : > { %v1597_v47 = vpop.xlane.xlu0 %1596 }
 0x379   : > { %v1689_v59 = vadd.f32 %v1597_v47, %v1561_v60  ;;  %v5535_v60 = vld [vmem:[#allocation71_spill] sm:$0xff] }
 0x37a   : > { %v1564_v47 = vmul.f32 %v5535_v60, %v1532_v6 }
 0x37b   : > { %1722 = vst.msk [vmem:[#allocation3 + $0x8] sm:$0xff] %vm406_vm0, %v1689_v59  ;;  %v1594_v52 = vpop.xlane.xlu1 %1593 }
 0x37c   : > { %v1688_v28 = vadd.f32 %v1594_v52, %v1560_v32  ;;  %v1600_v56 = vpop.xlane.xlu0 %1599  ;;  %v1565_v52 = vmul.f32 %v5536_v22, %v1533_v16  ;;  %v1568_v16 = vmul.f32 %v4717_v24, %v1536_v7  ;;  %v1538_v22 = vld [vmem:[#allocation3 + $0x50] sm:$0xff]  ;;  %v5064_v24 = vstv %s2461_s0 }
 0x37d   : > { %v1690_v14 = vadd.f32 %v1600_v56, %v1562_v25  ;;  %v5537_v25 = vld [vmem:[#allocation73_spill] sm:$0xff] }
 0x37e   : > { %1721 = vst.msk [vmem:[#allocation3] sm:$0xff] %vm406_vm0, %v1688_v28  ;;  %v1566_v58 = vmul.f32 %v5537_v25, %v1534_v42  ;;  %v1535_v56 = vld [vmem:[#allocation3 + $0x38] sm:$0xff]  ;;  %v1537_v42 = vld [vmem:[#allocation3 + $0x48] sm:$0xff] }
 0x37f   : > { %1723 = vst.msk [vmem:[#allocation3 + $0x10] sm:$0xff] %vm406_vm0, %v1690_v14  ;;  %v1603_v15 = vpop.xlane.xlu1 %1602 }
 0x380   : > { %v1691_v57 = vadd.f32 %v1603_v15, %v1563_v18  ;;  %v1606_v59 = vpop.xlane.xlu0 %1605  ;;  %v5538_v15 = vld [vmem:[#allocation74_spill] sm:$0xff] }
 0x381   : > { %v1692_v23 = vadd.f32 %v1606_v59, %v1564_v47  ;;  %v1567_v60 = vmul.f32 %v5538_v15, %v1535_v56  ;;  %v1570_v56 = vmul.f32 %v4756_v20, %v1538_v22 }
 0x382   : > { %1724 = vst.msk [vmem:[#allocation3 + $0x18] sm:$0xff] %vm406_vm0, %v1691_v57  ;;  %v2398_v32 = vld [vmem:[#allocation3 + $0x8] sm:$0xff] }
 0x383   : > { %1725 = vst.msk [vmem:[#allocation3 + $0x20] sm:$0xff] %vm406_vm0, %v1692_v23  ;;  %v1609_v28 = vpop.xlane.xlu1 %1608  ;;  %3500 = vrcp.f32 %v2398_v32 }
 0x384   : > { %v1693_v14 = vadd.f32 %v1609_v28, %v1565_v52  ;;  %v1612_v6 = vpop.xlane.xlu0 %1611  ;;  %v1569_v28 = vmul.f32 %v4744_v21, %v1537_v42  ;;  %v1541_v42 = vld [vmem:[#allocation3 + $0x68] sm:$0xff] }
 0x385   : > { %v1694_v55 = vadd.f32 %v1612_v6, %v1566_v58  ;;  %v2397_v18 = vld [vmem:[#allocation3] sm:$0xff] }
 0x386   : > { %1726 = vst.msk [vmem:[#allocation3 + $0x28] sm:$0xff] %vm406_vm0, %v1693_v14  ;;  %3502 = vrcp.f32 %v2397_v18  ;;  %v2399_v47 = vld [vmem:[#allocation3 + $0x10] sm:$0xff]  ;;  %v1539_v14 = vld [vmem:[#allocation3 + $0x58] sm:$0xff] }
 0x387   : > { %1727 = vst.msk [vmem:[#allocation3 + $0x30] sm:$0xff] %vm406_vm0, %v1694_v55  ;;  %v1615_v23 = vpop.xlane.xlu1 %1614  ;;  %3504 = vrcp.f32 %v2399_v47  ;;  %v1540_v55 = vld [vmem:[#allocation3 + $0x60] sm:$0xff]  ;;  %v1571_v21 = vmul.f32 %v4776_v8, %v1539_v14 }
 0x388   : > { %v1695_v57 = vadd.f32 %v1615_v23, %v1567_v60  ;;  %v1618_v59 = vpop.xlane.xlu0 %1617 }
 0x389   : > { %v1696_v52 = vadd.f32 %v1618_v59, %v1568_v16  ;;  %v2400_v32 = vld [vmem:[#allocation3 + $0x18] sm:$0xff]  ;;  %v1572_v16 = vmul.f32 %v4781_v63, %v1540_v55  ;;  %v1573_v63 = vmul.f32 %v4788_v29, %v1541_v42 }
 0x38a   : > { %1728 = vst.msk [vmem:[#allocation3 + $0x38] sm:$0xff] %vm406_vm0, %v1695_v57  ;;  %3506 = vrcp.f32 %v2400_v32  ;;  %v2401_v25 = vld [vmem:[#allocation3 + $0x20] sm:$0xff]  ;;  %v1542_v32 = vld [vmem:[#allocation3 + $0x70] sm:$0xff] }
 0x38b   : > { %1729 = vst.msk [vmem:[#allocation3 + $0x40] sm:$0xff] %vm406_vm0, %v1696_v52  ;;  %v1621_v58 = vpop.xlane.xlu1 %1620  ;;  %3508 = vrcp.f32 %v2401_v25 }
 0x38c   : > { %v1697_v6 = vadd.f32 %v1621_v58, %v1569_v28  ;;  %v1624_v7 = vpop.xlane.xlu0 %1623 }
 0x38d   : > { %v3501_v18 = vpop.eup %3500  ;;  %v1698_v15 = vadd.f32 %v1624_v7, %v1570_v56  ;;  %v2402_v60 = vld [vmem:[#allocation3 + $0x28] sm:$0xff] }
 0x38e   : > { %1730 = vst.msk [vmem:[#allocation3 + $0x48] sm:$0xff] %vm406_vm0, %v1697_v6  ;;  %v2464_v47 = vmul.f32 %v3501_v18, %v5064_v24  ;;  %3510 = vrcp.f32 %v2402_v60  ;;  %v2403_v23 = vld [vmem:[#allocation3 + $0x30] sm:$0xff]  ;;  %v1543_v60 = vld [vmem:[#allocation3 + $0x78] sm:$0xff] }
 0x38f   : > { %1731 = vst.msk [vmem:[#allocation3 + $0x50] sm:$0xff] %vm406_vm0, %v1698_v15  ;;  %v1627_v20 = vpop.xlane.xlu1 %1626  ;;  %3512 = vrcp.f32 %v2403_v23  ;;  %v1574_v15 = vmul.f32 %v4793_v0, %v1542_v32 }
 0x390   : > { %v3503_v57 = vpop.eup %3502  ;;  %v3069_v59 = vpop.f32.mrb[0].mxu1  ;;  %v1699_v22 = vadd.f32 %v1627_v20, %v1571_v21  ;;  %2534 = vperm.xlu0 %3249, %v2464_v47  }
 0x391   : > { %v1630_v52 = vpop.xlane.xlu0 %1629  ;;  %v3070_v28 = vpop.f32.mrb[1].mxu1  ;;  %v2463_v8 = vmul.f32 %v3503_v57, %v5064_v24  ;;  %v2404_v58 = vld [vmem:[#allocation3 + $0x38] sm:$0xff] }
 0x392   : > { %v1700_v25 = vadd.f32 %v1630_v52, %v1572_v16  ;;  %v3505_v56 = vpop.eup %3504  ;;  %1732 = vst.msk [vmem:[#allocation3 + $0x58] sm:$0xff] %vm406_vm0, %v1699_v22  ;;  %v5073_v14 = vadd.f32 %v3070_v28, %v3069_v59  ;;  %v3072_v6 = vpop.f32.mrb[2].mxu1  ;;  %3514 = vrcp.f32 %v2404_v58  ;;  %v2405_v7 = vld [vmem:[#allocation3 + $0x40] sm:$0xff]  ;;  %v1575_v52 = vmul.f32 %v4800_v45, %v1543_v60 }
 0x393   : > { %v3073_v55 = vpop.f32.mrb[3].mxu1  ;;  %v1633_v18 = vpop.xlane.xlu1 %1632  ;;  %2529 = vperm.xlu1 %3250, %v2463_v8   ;;  %v1544_v16 = vld [vmem:[#allocation3 + $0x80] sm:$0xff]  ;;  %3516 = vrcp.f32 %v2405_v7  ;;  %v2465_v42 = vmul.f32 %v3505_v56, %v5064_v24 }
 0x394   : > { %1733 = vst.msk [vmem:[#allocation3 + $0x60] sm:$0xff] %vm406_vm0, %v1700_v25  ;;  %v3507_v21 = vpop.eup %3506  ;;  %v5078_v47 = vadd.f32 %v3073_v55, %v3072_v6  ;;  %v1701_v23 = vadd.f32 %v1633_v18, %v1573_v63  ;;  %v1576_v28 = vmul.f32 %v4803_v17, %v1544_v16  ;;  %v1545_v25 = vld [vmem:[#allocation3 + $0x88] sm:$0xff]  ;;  %v1546_v63 = vld [vmem:[#allocation3 + $0x90] sm:$0xff] }
 0x395   : > { %v1636_v20 = vpop.xlane.xlu0 %1635  ;;  %v2466_v29 = vmul.f32 %v3507_v21, %v5064_v24  ;;  %v2406_v59 = vld [vmem:[#allocation3 + $0x48] sm:$0xff]  ;;  %v3509_v22 = vpop.eup %3508 }
 0x396   : > { %v1702_v57 = vadd.f32 %v1636_v20, %v1574_v15  ;;  %1734 = vst.msk [vmem:[#allocation3 + $0x68] sm:$0xff] %vm406_vm0, %v1701_v23  ;;  %3518 = vrcp.f32 %v2406_v59  ;;  %v2407_v0 = vld [vmem:[#allocation3 + $0x50] sm:$0xff]  ;;  %v2467_v18 = vmul.f32 %v3509_v22, %v5064_v24  ;;  %v1577_v23 = vmul.f32 %v4807_v38, %v1545_v25 }
 0x397   : > { %v1639_v32 = vpop.xlane.xlu1 %1638  ;;  %2544 = vperm.xlu0 %3249, %v2466_v29   ;;  %2539 = vperm.xlu1 %3250, %v2465_v42   ;;  %3520 = vrcp.f32 %v2407_v0  ;;  %v1578_v29 = vmul.f32 %v4812_v61, %v1546_v63  ;;  %v1547_v42 = vld [vmem:[#allocation3 + $0x98] sm:$0xff] }
 0x398   : > { %1735 = vst.msk [vmem:[#allocation3 + $0x70] sm:$0xff] %vm406_vm0, %v1702_v57  ;;  %v3511_v8 = vpop.eup %3510  ;;  %v3075_v58 = vpop.f32.mrb[4].mxu1  ;;  %v1703_v6 = vadd.f32 %v1639_v32, %v1575_v52  ;;  %v1548_v32 = vld [vmem:[#allocation3 + $0xa0] sm:$0xff] }
 0x399   : > { %v1642_v56 = vpop.xlane.xlu0 %1641  ;;  %v3076_v7 = vpop.f32.mrb[5].mxu1  ;;  %v2468_v45 = vmul.f32 %v3511_v8, %v5064_v24  ;;  %v2408_v15 = vld [vmem:[#allocation3 + $0x58] sm:$0xff]  ;;  %v1580_v63 = vmul.f32 %v4819_v31, %v1548_v32 }
 0x39a   : > { %v1704_v55 = vadd.f32 %v1642_v56, %v1576_v28  ;;  %v3513_v60 = vpop.eup %3512  ;;  %1736 = vst.msk [vmem:[#allocation3 + $0x78] sm:$0xff] %vm406_vm0, %v1703_v6  ;;  %v5089_v21 = vadd.f32 %v3076_v7, %v3075_v58  ;;  %v3078_v17 = vpop.f32.mrb[6].mxu1  ;;  %3522 = vrcp.f32 %v2408_v15  ;;  %v1579_v6 = vmul.f32 %v4814_v2, %v1547_v42  ;;  %v1549_v7 = vld [vmem:[#allocation3 + $0xa8] sm:$0xff] }
 0x39b   : > { %v2409_v20 = vld [vmem:[#allocation3 + $0x60] sm:$0xff]  ;;  %v3079_v16 = vpop.f32.mrb[7].mxu1  ;;  %v1645_v57 = vpop.xlane.xlu1 %1644  ;;  %2554 = vperm.xlu0 %3249, %v2468_v45   ;;  %2549 = vperm.xlu1 %3250, %v2467_v18   ;;  %v2469_v25 = vmul.f32 %v3513_v60, %v5064_v24  ;;  %v1550_v60 = vld [vmem:[#allocation3 + $0xb0] sm:$0xff]  ;;  %v1581_v42 = vmul.f32 %v4826_v30, %v1549_v7 }
 0x39c   : > { %1737 = vst.msk [vmem:[#allocation3 + $0x80] sm:$0xff] %vm406_vm0, %v1704_v55  ;;  %v3515_v59 = vpop.eup %3514  ;;  %v5094_v22 = vadd.f32 %v3079_v16, %v3078_v17  ;;  %v1705_v52 = vadd.f32 %v1645_v57, %v1577_v23  ;;  %3524 = vrcp.f32 %v2409_v20  ;;  %v1582_v32 = vmul.f32 %v4833_v4, %v1550_v60 }
 0x39d   : > { %v1648_v0 = vpop.xlane.xlu0 %1647  ;;  %v2470_v38 = vmul.f32 %v3515_v59, %v5064_v24  ;;  %v2410_v8 = vld [vmem:[#allocation3 + $0x68] sm:$0xff]  ;;  %v3517_v58 = vpop.eup %3516 }
 0x39e   : > { %v1706_v28 = vadd.f32 %v1648_v0, %v1578_v29  ;;  %1738 = vst.msk [vmem:[#allocation3 + $0x88] sm:$0xff] %vm406_vm0, %v1705_v52  ;;  %3526 = vrcp.f32 %v2410_v8  ;;  %v2471_v20 = vmul.f32 %v3517_v58, %v5064_v24 }
 0x39f   : > { %v2411_v61 = vld [vmem:[#allocation3 + $0x70] sm:$0xff]  ;;  %v1651_v56 = vpop.xlane.xlu1 %1650  ;;  %2564 = vperm.xlu0 %3249, %v2470_v38   ;;  %2559 = vperm.xlu1 %3250, %v2469_v25  }
 0x3a0   : > { %1739 = vst.msk [vmem:[#allocation3 + $0x90] sm:$0xff] %vm406_vm0, %v1706_v28  ;;  %v3519_v55 = vpop.eup %3518  ;;  %v3081_v45 = vpop.f32.mrb[8].mxu1  ;;  %v1707_v18 = vadd.f32 %v1651_v56, %v1579_v6  ;;  %3528 = vrcp.f32 %v2411_v61  ;;  %v1551_v28 = vld [vmem:[#allocation3 + $0xb8] sm:$0xff] }
 0x3a1   : > { %v1654_v15 = vpop.xlane.xlu0 %1653  ;;  %v3082_v17 = vpop.f32.mrb[9].mxu1  ;;  %v2472_v2 = vmul.f32 %v3519_v55, %v5064_v24  ;;  %v2412_v16 = vld [vmem:[#allocation3 + $0x78] sm:$0xff]  ;;  %v1583_v7 = vmul.f32 %v4840_v10, %v1551_v28  ;;  %v1552_v55 = vld [vmem:[#allocation3 + $0xc0] sm:$0xff]  ;;  %v1952_v28 = vmul.f32 0.0, %v4986_v26 }
 0x3a2   : > { %v1708_v23 = vadd.f32 %v1654_v15, %v1580_v63  ;;  %v3521_v57 = vpop.eup %3520  ;;  %1740 = vst.msk [vmem:[#allocation3 + $0x98] sm:$0xff] %vm406_vm0, %v1707_v18  ;;  %v5105_v29 = vadd.f32 %v3082_v17, %v3081_v45  ;;  %v3084_v31 = vpop.f32.mrb[10].mxu1  ;;  %3530 = vrcp.f32 %v2412_v16  ;;  %v1553_v18 = vld [vmem:[#allocation3 + $0xc8] sm:$0xff] }
 0x3a3   : > { %v2413_v59 = vld [vmem:[#allocation3 + $0x80] sm:$0xff]  ;;  %v3085_v52 = vpop.f32.mrb[11].mxu1  ;;  %v1657_v0 = vpop.xlane.xlu1 %1656  ;;  %2574 = vperm.xlu0 %3249, %v2472_v2   ;;  %2569 = vperm.xlu1 %3250, %v2471_v20   ;;  %v2473_v61 = vmul.f32 %v3521_v57, %v5064_v24  ;;  %v1584_v2 = vmul.f32 %v4845_v51, %v1552_v55  ;;  %v1554_v55 = vld [vmem:[#allocation3 + $0xd0] sm:$0xff] }
 0x3a4   : > { %1741 = vst.msk [vmem:[#allocation3 + $0xa0] sm:$0xff] %vm406_vm0, %v1708_v23  ;;  %v3523_v38 = vpop.eup %3522  ;;  %v5110_v25 = vadd.f32 %v3085_v52, %v3084_v31  ;;  %v1709_v8 = vadd.f32 %v1657_v0, %v1581_v42  ;;  %3532 = vrcp.f32 %v2413_v59  ;;  %v1951_v31 = vmul.f32 0.0, %v4978_v48 }
 0x3a5   : > { %v1660_v58 = vpop.xlane.xlu0 %1659  ;;  %v2474_v30 = vmul.f32 %v3523_v38, %v5064_v24  ;;  %v2414_v56 = vld [vmem:[#allocation3 + $0x88] sm:$0xff]  ;;  %v1585_v0 = vmul.f32 %v4850_v36, %v1553_v18 }
 0x3a6   : > { %v1710_v6 = vadd.f32 %v1660_v58, %v1582_v32  ;;  %v3525_v63 = vpop.eup %3524  ;;  %1742 = vst.msk [vmem:[#allocation3 + $0xa8] sm:$0xff] %vm406_vm0, %v1709_v8  ;;  %3534 = vrcp.f32 %v2414_v56  ;;  %v1555_v58 = vld [vmem:[#allocation3 + $0xd8] sm:$0xff] }
 0x3a7   : > { %v2415_v4 = vld [vmem:[#allocation3 + $0x90] sm:$0xff]  ;;  %v1663_v45 = vpop.xlane.xlu1 %1662  ;;  %2584 = vperm.xlu0 %3249, %v2474_v30   ;;  %2579 = vperm.xlu1 %3250, %v2473_v61   ;;  %v2475_v10 = vmul.f32 %v3525_v63, %v5064_v24 }
 0x3a8   : > { %1743 = vst.msk [vmem:[#allocation3 + $0xb0] sm:$0xff] %vm406_vm0, %v1710_v6  ;;  %v3527_v15 = vpop.eup %3526  ;;  %v3087_v60 = vpop.f32.mrb[12].mxu1  ;;  %v1711_v17 = vadd.f32 %v1663_v45, %v1583_v7  ;;  %3536 = vrcp.f32 %v2415_v4  ;;  %v1587_v7 = vmul.f32 %v4863_v37, %v1555_v58 }
 0x3a9   : > { %v3088_v23 = vpop.f32.mrb[13].mxu1  ;;  %v2476_v20 = vmul.f32 %v3527_v15, %v5064_v24  ;;  %v2416_v16 = vld [vmem:[#allocation3 + $0x98] sm:$0xff] }
 0x3aa   : > { %v3529_v57 = vpop.eup %3528  ;;  %1744 = vst.msk [vmem:[#allocation3 + $0xb8] sm:$0xff] %vm406_vm0, %v1711_v17  ;;  %v3089_v42 = vadd.f32 %v3088_v23, %v3087_v60  ;;  %v1666_v59 = vpop.xlane.xlu0 %1665  ;;  %3538 = vrcp.f32 %v2416_v16 }
 0x3ab   : > { %v3090_v52 = vpop.f32.mrb[14].mxu1  ;;  %v2417_v32 = vld [vmem:[#allocation3 + $0xa0] sm:$0xff]  ;;  %v1712_v51 = vadd.f32 %v1666_v59, %v1584_v2  ;;  %v1669_v8 = vpop.xlane.xlu1 %1668  ;;  %2594 = vperm.xlu0 %3249, %v2476_v20   ;;  %2589 = vperm.xlu1 %3250, %v2475_v10   ;;  %v2477_v56 = vmul.f32 %v3529_v57, %v5064_v24  ;;  %v1586_v2 = vmul.f32 %v4860_v40, %v1554_v55  ;;  %v1953_v57 = vmul.f32 0.0, %v4988_v9 }
 0x3ac   : > { %v3091_v38 = vpop.f32.mrb[15].mxu1  ;;  %v3531_v6 = vpop.eup %3530  ;;  %v1713_v48 = vadd.f32 %v1669_v8, %v1585_v0  ;;  %3540 = vrcp.f32 %v2417_v32  ;;  %v5124_v61 = vadd.f32 %v3089_v42, %v1951_v31  ;;  %v1557_v32 = vld [vmem:[#allocation3 + $0xe8] sm:$0xff] }
 0x3ad   : > { %v3092_v30 = vadd.f32 %v3091_v38, %v3090_v52  ;;  %1745 = vst.msk [vmem:[#allocation3 + $0xc0] sm:$0xff] %vm406_vm0, %v1712_v51  ;;  %v2478_v36 = vmul.f32 %v3531_v6, %v5064_v24  ;;  %v2418_v63 = vld [vmem:[#allocation3 + $0xa8] sm:$0xff]  ;;  %v1556_v6 = vld [vmem:[#allocation3 + $0xe0] sm:$0xff] }
 0x3ae   : > { %v3533_v26 = vpop.eup %3532  ;;  %1746 = vst.msk [vmem:[#allocation3 + $0xc8] sm:$0xff] %vm406_vm0, %v1713_v48  ;;  %3542 = vrcp.f32 %v2418_v63  ;;  %v1588_v55 = vmul.f32 %v4868_v12, %v1556_v6  ;;  %v1559_v12 = vld [vmem:[#allocation3 + $0xf8] sm:$0xff] }
 0x3af   : > { %v2419_v4 = vld [vmem:[#allocation3 + $0xb0] sm:$0xff]  ;;  %v5131_v45 = vadd.f32 %v3092_v30, %v1952_v28  ;;  %v1675_v18 = vpop.xlane.xlu1 %1674  ;;  %2604 = vperm.xlu0 %3249, %v2478_v36   ;;  %2599 = vperm.xlu1 %3250, %v2477_v56   ;;  %v2479_v10 = vmul.f32 %v3533_v26, %v5064_v24  ;;  %v1954_v28 = vmul.f32 0.0, %v4994_v44  ;;  %v1589_v36 = vmul.f32 %v4873_v54, %v1557_v32 }
 0x3b0   : > { %v3535_v15 = vpop.eup %3534  ;;  %v3093_v60 = vpop.f32.mrb[16].mxu1  ;;  %v1715_v17 = vadd.f32 %v1675_v18, %v1587_v7  ;;  %3544 = vrcp.f32 %v2419_v4  ;;  %v1955_v54 = vmul.f32 0.0, %v4996_v46  ;;  %v1591_v32 = vmul.f32 %v4886_v11, %v1559_v12 }
 0x3b1   : > { %v3094_v23 = vpop.f32.mrb[17].mxu1  ;;  %v2480_v20 = vmul.f32 %v3535_v15, %v5064_v24  ;;  %v2420_v37 = vld [vmem:[#allocation3 + $0xb8] sm:$0xff]  ;;  %v1957_v11 = vmul.f32 0.0, %v5006_v43 }
 0x3b2   : > { %v3537_v16 = vpop.eup %3536  ;;  %1748 = vst.msk [vmem:[#allocation3 + $0xd8] sm:$0xff] %vm406_vm0, %v1715_v17  ;;  %v3095_v31 = vadd.f32 %v3094_v23, %v3093_v60  ;;  %v1672_v42 = vpop.xlane.xlu0 %1671  ;;  %3546 = vrcp.f32 %v2420_v37 }
 0x3b3   : > { %v3096_v59 = vpop.f32.mrb[18].mxu1  ;;  %v1714_v52 = vadd.f32 %v1672_v42, %v1586_v2  ;;  %2614 = vperm.xlu0 %3249, %v2480_v20   ;;  %2609 = vperm.xlu1 %3250, %v2479_v10   ;;  %v2481_v58 = vmul.f32 %v3537_v16, %v5064_v24 }
 0x3b4   : > { %v3097_v0 = vpop.f32.mrb[19].mxu1  ;;  %v3539_v40 = vpop.eup %3538  ;;  %v2421_v38 = vld [vmem:[#allocation3 + $0xc0] sm:$0xff]  ;;  %v5139_v8 = vadd.f32 %v3095_v31, %v1953_v57  ;;  %v1956_v57 = vmul.f32 0.0, %v5002_v19 }
 0x3b5   : > { %v3098_v51 = vadd.f32 %v3097_v0, %v3096_v59  ;;  %1747 = vst.msk [vmem:[#allocation3 + $0xd0] sm:$0xff] %vm406_vm0, %v1714_v52  ;;  %v2482_v9 = vmul.f32 %v3539_v40, %v5064_v24  ;;  %v2422_v30 = vld [vmem:[#allocation3 + $0xc8] sm:$0xff]  ;;  %3548 = vrcp.f32 %v2421_v38  ;;  %v1558_v0 = vld [vmem:[#allocation3 + $0xf0] sm:$0xff] }
 0x3b6   : > { %v3541_v48 = vpop.eup %3540  ;;  %3550 = vrcp.f32 %v2422_v30 }
 0x3b7   : > { %v5145_v56 = vadd.f32 %v3098_v51, %v1954_v28  ;;  %v1681_v44 = vpop.xlane.xlu1 %1680  ;;  %2624 = vperm.xlu0 %3249, %v2482_v9   ;;  %2619 = vperm.xlu1 %3250, %v2481_v58   ;;  %v2483_v60 = vmul.f32 %v3541_v48, %v5064_v24  ;;  %v1590_v58 = vmul.f32 %v4880_v35, %v1558_v0 }
 0x3b8   : > { %v3543_v63 = vpop.eup %3542  ;;  %v1717_v26 = vadd.f32 %v1681_v44, %v1589_v36  ;;  %v3099_v7 = vpop.f32.mrb[20].mxu1 }
 0x3b9   : > { %v3100_v4 = vpop.f32.mrb[21].mxu1  ;;  %v1678_v18 = vpop.xlane.xlu0 %1677  ;;  %v2484_v15 = vmul.f32 %v3543_v63, %v5064_v24  ;;  %v2424_v17 = vld [vmem:[#allocation3 + $0xd8] sm:$0xff] }
 0x3ba   : > { %v3545_v23 = vpop.eup %3544  ;;  %1750 = vst.msk [vmem:[#allocation3 + $0xe8] sm:$0xff] %vm406_vm0, %v1717_v26  ;;  %v3101_v2 = vadd.f32 %v3100_v4, %v3099_v7  ;;  %v1716_v20 = vadd.f32 %v1678_v18, %v1588_v55  ;;  %v3102_v10 = vpop.f32.mrb[22].mxu1  ;;  %3552 = vrcp.f32 %v2424_v17  ;;  %v1958_v18 = vmul.f32 0.0, %v5004_v49 }
 0x3bb   : > { %v3103_v37 = vpop.f32.mrb[23].mxu1  ;;  %2634 = vperm.xlu0 %3249, %v2484_v15   ;;  %2629 = vperm.xlu1 %3250, %v2483_v60   ;;  %v2485_v52 = vmul.f32 %v3545_v23, %v5064_v24 }
 0x3bc   : > { %v3547_v16 = vpop.eup %3546  ;;  %1749 = vst.msk [vmem:[#allocation3 + $0xe0] sm:$0xff] %vm406_vm0, %v1716_v20  ;;  %v3104_v31 = vadd.f32 %v3103_v37, %v3102_v10  ;;  %v2423_v42 = vld [vmem:[#allocation3 + $0xd0] sm:$0xff]  ;;  %v5154_v59 = vadd.f32 %v3101_v2, %v1955_v54  ;;  %v1959_v37 = vmul.f32 0.0, %v5010_v13 }
 0x3bd   : > { %v2486_v46 = vmul.f32 %v3547_v16, %v5064_v24  ;;  %3554 = vrcp.f32 %v2423_v42  ;;  %v1960_v42 = vmul.f32 0.0, %v5008_v34 }
 0x3be   : > { %v5159_v40 = vadd.f32 %v3104_v31, %v1956_v57 }
 0x3bf   : > { %v3549_v28 = vpop.eup %3548  ;;  %v1687_v51 = vpop.xlane.xlu1 %1686  ;;  %2644 = vperm.xlu0 %3249, %v2486_v46   ;;  %2639 = vperm.xlu1 %3250, %v2485_v52  }
 0x3c0   : > { %v3551_v19 = vpop.eup %3550  ;;  %v1719_v38 = vadd.f32 %v1687_v51, %v1591_v32  ;;  %v3105_v9 = vpop.f32.mrb[24].mxu1  ;;  %v2487_v36 = vmul.f32 %v3549_v28, %v5064_v24 }
 0x3c1   : > { %v3106_v6 = vpop.f32.mrb[25].mxu1  ;;  %v1684_v30 = vpop.xlane.xlu0 %1683  ;;  %v2488_v48 = vmul.f32 %v3551_v19, %v5064_v24  ;;  %v2426_v44 = vld [vmem:[#allocation3 + $0xe8] sm:$0xff] }
 0x3c2   : > { %1752 = vst.msk [vmem:[#allocation3 + $0xf8] sm:$0xff] %vm406_vm0, %v1719_v38  ;;  %v3107_v63 = vadd.f32 %v3106_v6, %v3105_v9  ;;  %v1718_v26 = vadd.f32 %v1684_v30, %v1590_v58  ;;  %v3108_v7 = vpop.f32.mrb[26].mxu1  ;;  %3556 = vrcp.f32 %v2426_v44  ;;  %v1961_v38 = vmul.f32 0.0, %v5014_v62 }
 0x3c3   : > { %v3109_v55 = vpop.f32.mrb[27].mxu1  ;;  %2654 = vperm.xlu0 %3249, %v2488_v48   ;;  %2649 = vperm.xlu1 %3250, %v2487_v36   ;;  %v2425_v4 = vld [vmem:[#allocation3 + $0xe0] sm:$0xff]  ;;  %v1962_v30 = vmul.f32 0.0, %v5012_v1  ;;  %v1963_v62 = vmul.f32 0.0, %v5018_v3  ;;  %v1964_v1 = vmul.f32 0.0, %v5016_v5 }
 0x3c4   : > { %v3553_v35 = vpop.eup %3552  ;;  %1751 = vst.msk [vmem:[#allocation3 + $0xf0] sm:$0xff] %vm406_vm0, %v1718_v26  ;;  %v3110_v15 = vadd.f32 %v3109_v55, %v3108_v7  ;;  %3558 = vrcp.f32 %v2425_v4  ;;  %v5168_v60 = vadd.f32 %v3107_v63, %v1957_v11 }
 0x3c5   : > { %v2490_v43 = vmul.f32 %v3553_v35, %v5064_v24 }
 0x3c6   : > { %v5171_v17 = vadd.f32 %v3110_v15, %v1958_v18 }
 0x3c7   : > { %v3555_v23 = vpop.eup %3554  ;;  %2664 = vperm.xlu0 %3249, %v2490_v43  }
 0x3c8   : > { %v3111_v54 = vpop.f32.mrb[28].mxu1  ;;  %v2489_v2 = vmul.f32 %v3555_v23, %v5064_v24 }
 0x3c9   : > { %v3112_v20 = vpop.f32.mrb[29].mxu1  ;;  %v2428_v10 = vld [vmem:[#allocation3 + $0xf8] sm:$0xff] }
 0x3ca   : > { %v3113_v49 = vadd.f32 %v3112_v20, %v3111_v54  ;;  %2659 = vperm.xlu1 %3250, %v2489_v2   ;;  %v3114_v12 = vpop.f32.mrb[30].mxu1  ;;  %3560 = vrcp.f32 %v2428_v10  ;;  %v1965_v20 = vmul.f32 0.0, %v5022_v41 }
 0x3cb   : > { %v3115_v16 = vpop.f32.mrb[31].mxu1  ;;  %v2427_v57 = vld [vmem:[#allocation3 + $0xf0] sm:$0xff] }
 0x3cc   : > { %v3557_v31 = vpop.eup %3556  ;;  %v3116_v46 = vadd.f32 %v3115_v16, %v3114_v12  ;;  %3562 = vrcp.f32 %v2427_v57  ;;  %v5176_v52 = vadd.f32 %v3113_v49, %v1959_v37  ;;  %v1966_v49 = vmul.f32 0.0, %v5020_v39 }
 0x3cd   : > { %v2492_v0 = vmul.f32 %v3557_v31, %v5064_v24  ;;  %v1967_v31 = vmul.f32 0.0, %v5026_v27 }
 0x3ce   : > { %v3559_v32 = vpop.eup %3558  ;;  %v5179_v28 = vadd.f32 %v3116_v46, %v1960_v42 }
 0x3cf   : > { %2674 = vperm.xlu0 %3249, %v2492_v0   ;;  %v2491_v13 = vmul.f32 %v3559_v32, %v5064_v24  ;;  %v1968_v32 = vmul.f32 0.0, %v5024_v53 }
 0x3d0   : > { %v3117_v51 = vpop.f32.mrb[32].mxu1 }
 0x3d1   : > { %v3118_v19 = vpop.f32.mrb[33].mxu1  ;;  %2669 = vperm.xlu1 %3250, %v2491_v13  }
 0x3d2   : > { %v3119_v9 = vadd.f32 %v3118_v19, %v3117_v51  ;;  %v3120_v58 = vpop.f32.mrb[34].mxu1 }
 0x3d3   : > { %v3121_v34 = vpop.f32.mrb[35].mxu1 }
 0x3d4   : > { %v3561_v6 = vpop.eup %3560  ;;  %v3122_v48 = vadd.f32 %v3121_v34, %v3120_v58  ;;  %v5184_v36 = vadd.f32 %v3119_v9, %v1961_v38  ;;  %v1969_v38 = vmul.f32 0.0, %v5030_v33 }
 0x3d5   : > { %v2494_v44 = vmul.f32 %v3561_v6, %v5064_v24  ;;  %v1970_v6 = vmul.f32 0.0, %v5028_v50 }
 0x3d6   : > { %v3563_v11 = vpop.eup %3562  ;;  %v5187_v63 = vadd.f32 %v3122_v48, %v1962_v30 }
 0x3d7   : > { %2684 = vperm.xlu0 %3249, %v2494_v44   ;;  %v2493_v26 = vmul.f32 %v3563_v11, %v5064_v24  ;;  %v5539_v11 = vld [vmem:[#allocation29_spill] sm:$0xff] }
 0x3d8   : > { %v3123_v7 = vpop.f32.mrb[36].mxu1 }
 0x3d9   : > { %v3124_v55 = vpop.f32.mrb[37].mxu1  ;;  %2679 = vperm.xlu1 %3250, %v2493_v26   ;;  %v1971_v26 = vmul.f32 0.0, %v5539_v11 }
 0x3da   : > { %v3125_v4 = vadd.f32 %v3124_v55, %v3123_v7  ;;  %v3126_v35 = vpop.f32.mrb[38].mxu1 }
 0x3db   : > { %v3127_v18 = vpop.f32.mrb[39].mxu1 }
 0x3dc   : > { %v3128_v15 = vadd.f32 %v3127_v18, %v3126_v35  ;;  %v5192_v43 = vadd.f32 %v3125_v4, %v1963_v62  ;;  %v5540_v4 = vld [vmem:[#allocation28_spill] sm:$0xff] }
 0x3dd   : > { %v1972_v35 = vmul.f32 0.0, %v5540_v4 }
 0x3de   : > { %v5194_v23 = vadd.f32 %v3128_v15, %v1964_v1 }
 0x3e0   : > { %v3129_v54 = vpop.f32.mrb[40].mxu1 }
 0x3e1   : > { %v3130_v2 = vpop.f32.mrb[41].mxu1 }
 0x3e2   : > { %v3131_v24 = vadd.f32 %v3130_v2, %v3129_v54  ;;  %v3132_v10 = vpop.f32.mrb[42].mxu1  ;;  %v5541_v54 = vld [vmem:[#allocation31_spill] sm:$0xff] }
 0x3e3   : > { %v3133_v37 = vpop.f32.mrb[43].mxu1  ;;  %v1973_v2 = vmul.f32 0.0, %v5541_v54 }
 0x3e4   : > { %v3134_v3 = vadd.f32 %v3133_v37, %v3132_v10  ;;  %v5198_v12 = vadd.f32 %v3131_v24, %v1965_v20  ;;  %v5542_v37 = vld [vmem:[#allocation30_spill] sm:$0xff] }
 0x3e6   : > { %v5200_v16 = vadd.f32 %v3134_v3, %v1966_v49  ;;  %v1974_v49 = vmul.f32 0.0, %v5542_v37 }
 0x3e9   : > { %v3135_v5 = vpop.f32.mrb[44].mxu1 }
 0x3ea   : > { %v3136_v57 = vpop.f32.mrb[45].mxu1 }
 0x3eb   : > { %v3137_v42 = vadd.f32 %v3136_v57, %v3135_v5  ;;  %v3138_v46 = vpop.f32.mrb[46].mxu1 }
 0x3ec   : > { %v3139_v0 = vpop.f32.mrb[47].mxu1 }
 0x3ed   : > { %v3140_v41 = vadd.f32 %v3139_v0, %v3138_v46  ;;  %v5204_v13 = vadd.f32 %v3137_v42, %v1967_v31  ;;  %v5543_v46 = vld [vmem:[#allocation33_spill] sm:$0xff] }
 0x3ee   : > { %v1975_v0 = vmul.f32 0.0, %v5543_v46 }
 0x3ef   : > { %v5206_v51 = vadd.f32 %v3140_v41, %v1968_v32 }
 0x3f1   : > { %v3141_v39 = vpop.f32.mrb[48].mxu1 }
 0x3f2   : > { %v3142_v19 = vpop.f32.mrb[49].mxu1 }
 0x3f3   : > { %v3143_v9 = vadd.f32 %v3142_v19, %v3141_v39  ;;  %v3144_v58 = vpop.f32.mrb[50].mxu1  ;;  %v5544_v19 = vld [vmem:[#allocation32_spill] sm:$0xff] }
 0x3f4   : > { %v3145_v34 = vpop.f32.mrb[51].mxu1 }
 0x3f5   : > { %v3146_v27 = vadd.f32 %v3145_v34, %v3144_v58  ;;  %v5210_v30 = vadd.f32 %v3143_v9, %v1969_v38  ;;  %v1976_v38 = vmul.f32 0.0, %v5544_v19  ;;  %v5545_v34 = vld [vmem:[#allocation23_spill] sm:$0xff] }
 0x3f7   : > { %v5212_v48 = vadd.f32 %v3146_v27, %v1970_v6  ;;  %v1945_v6 = vmul.f32 0.0, %v5545_v34 }
 0x3f9   : > { %v3147_v53 = vpop.f32.mrb[52].mxu1 }
 0x3fa   : > { %v3148_v44 = vpop.f32.mrb[53].mxu1 }
 0x3fb   : > { %v3149_v7 = vadd.f32 %v3148_v44, %v3147_v53  ;;  %v3150_v55 = vpop.f32.mrb[54].mxu1  ;;  %v2298_v53 = vadd.f32 %v5073_v14, %v1945_v6 }
 0x3fc   : > { %v3151_v62 = vpop.f32.mrb[55].mxu1 }
 0x3fd   : > { %v3152_v33 = vadd.f32 %v3151_v62, %v3150_v55  ;;  %v5216_v18 = vadd.f32 %v3149_v7, %v1971_v26  ;;  %v5546_v26 = vld [vmem:[#allocation22_spill] sm:$0xff] }
 0x3fe   : > { %v1946_v7 = vmul.f32 0.0, %v5546_v26 }
 0x3ff   : > { %v5218_v1 = vadd.f32 %v3152_v33, %v1972_v35  ;;  %v5547_v33 = vld [vmem:[#allocation24_spill] sm:$0xff] }
 0x400   : > { %v2299_v62 = vadd.f32 %v5078_v47, %v1946_v7  ;;  %v5549_v47 = vld [vmem:[#allocation26_spill] sm:$0xff] }
 0x401   : > { %v3153_v50 = vpop.f32.mrb[56].mxu1 }
 0x402   : > { %v3154_v15 = vpop.f32.mrb[57].mxu1 }
 0x403   : > { %v3155_v20 = vadd.f32 %v3154_v15, %v3153_v50  ;;  %v3156_v24 = vpop.f32.mrb[58].mxu1  ;;  %v1947_v50 = vmul.f32 0.0, %v5547_v33 }
 0x404   : > { %v3157_v10 = vpop.f32.mrb[59].mxu1 }
 0x405   : > { %v3158_v3 = vadd.f32 %v3157_v10, %v3156_v24  ;;  %v5222_v5 = vadd.f32 %v3155_v20, %v1973_v2  ;;  %v2300_v54 = vadd.f32 %v5089_v21, %v1947_v50  ;;  %v5548_v24 = vld [vmem:[#allocation25_spill] sm:$0xff]  ;;  %v5550_v21 = vld [vmem:[#allocation27_spill] sm:$0xff] }
 0x406   : > { %v1948_v14 = vmul.f32 0.0, %v5548_v24 }
 0x407   : > { %v5224_v57 = vadd.f32 %v3158_v3, %v1974_v49 }
 0x408   : > { %v2301_v37 = vadd.f32 %v5094_v22, %v1948_v14 }
 0x409   : > { %v3159_v31 = vpop.f32.mrb[60].mxu1 }
 0x40a   : > { %v3160_v42 = vpop.f32.mrb[61].mxu1 }
 0x40b   : > { %v3161_v32 = vadd.f32 %v3160_v42, %v3159_v31  ;;  %v3162_v41 = vpop.f32.mrb[62].mxu1  ;;  %v1949_v31 = vmul.f32 0.0, %v5549_v47 }
 0x40c   : > { %v3163_v39 = vpop.f32.mrb[63].mxu1 }
 0x40d   : > { %v3164_v9 = vadd.f32 %v3163_v39, %v3162_v41  ;;  %v5228_v58 = vadd.f32 %v3161_v32, %v1975_v0  ;;  %v2302_v46 = vadd.f32 %v5105_v29, %v1949_v31  ;;  %v1950_v41 = vmul.f32 0.0, %v5550_v21 }
 0x40f   : > { %v5231_v27 = vadd.f32 %v3164_v9, %v1976_v38  ;;  %v2535_v44 = vpop.permute.xlu0 %2534  ;;  %v2303_v19 = vadd.f32 %v5110_v25, %v1950_v41 }
 0x410   : > { %v2688_v15 = vmul.f32 %v2535_v44, %v2299_v62 }
 0x412   : > { %v2530_v11 = vpop.permute.xlu1 %2529 }
 0x413   : > { %v2687_v55 = vmul.f32 %v2530_v11, %v2298_v53 }
 0x415   : > { %2719 = vxpose.xlu1.b32.start [1/16] (narrow) %v2687_v55, 8 }
 0x416   : > { %v2545_v4 = vpop.permute.xlu0 %2544  ;;  %v2540_v35 = vpop.permute.xlu1 %2539 }
 0x417   : > { %v2689_v10 = vmul.f32 %v2540_v35, %v2300_v54  ;;  %v2690_v42 = vmul.f32 %v2545_v4, %v2301_v37 }
 0x419   : > { %2720 = vxpose.xlu1.b32.cont [2/16] (narrow) %v2688_v15, 8 }
 0x41a   : > { %v2555_v2 = vpop.permute.xlu0 %2554  ;;  %v2550_v20 = vpop.permute.xlu1 %2549 }
 0x41b   : > { %v2691_v39 = vmul.f32 %v2550_v20, %v2302_v46  ;;  %v2692_v22 = vmul.f32 %v2555_v2, %v2303_v19 }
 0x41d   : > { %2721 = vxpose.xlu1.b32.cont [3/16] (narrow) %v2689_v10, 8 }
 0x41e   : > { %v2565_v49 = vpop.permute.xlu0 %2564  ;;  %v2560_v3 = vpop.permute.xlu1 %2559 }
 0x41f   : > { %v2693_v53 = vmul.f32 %v2560_v3, %v5124_v61  ;;  %v2694_v11 = vmul.f32 %v2565_v49, %v5131_v45 }
 0x421   : > { %2722 = vxpose.xlu1.b32.cont [4/16] (narrow) %v2690_v42, 8 }
 0x422   : > { %v2575_v0 = vpop.permute.xlu0 %2574  ;;  %v2570_v32 = vpop.permute.xlu1 %2569 }
 0x423   : > { %v2695_v7 = vmul.f32 %v2570_v32, %v5139_v8  ;;  %v2696_v62 = vmul.f32 %v2575_v0, %v5145_v56 }
 0x425   : > { %2723 = vxpose.xlu1.b32.cont [5/16] (narrow) %v2691_v39, 8 }
 0x426   : > { %v2585_v38 = vpop.permute.xlu0 %2584  ;;  %v2580_v9 = vpop.permute.xlu1 %2579 }
 0x427   : > { %v2697_v61 = vmul.f32 %v2580_v9, %v5154_v59  ;;  %v2698_v8 = vmul.f32 %v2585_v38, %v5159_v40 }
 0x429   : > { %2724 = vxpose.xlu1.b32.cont [6/16] (narrow) %v2692_v22, 8 }
 0x42a   : > { %v2595_v34 = vpop.permute.xlu0 %2594  ;;  %v2590_v6 = vpop.permute.xlu1 %2589 }
 0x42b   : > { %v2699_v56 = vmul.f32 %v2590_v6, %v5168_v60  ;;  %v2700_v59 = vmul.f32 %v2595_v34, %v5171_v17 }
 0x42d   : > { %2725 = vxpose.xlu1.b32.cont [7/16] (narrow) %v2693_v53, 8 }
 0x42e   : > { %v2605_v44 = vpop.permute.xlu0 %2604  ;;  %v2600_v29 = vpop.permute.xlu1 %2599 }
 0x42f   : > { %v2701_v40 = vmul.f32 %v2600_v29, %v5176_v52  ;;  %v2702_v60 = vmul.f32 %v2605_v44, %v5179_v28 }
 0x431   : > { %2726 = vxpose.xlu1.b32.cont [8/16] (narrow) %v2694_v11, 8 }
 0x432   : > { %v2610_v26 = vpop.permute.xlu1 %2609  ;;  %v2615_v55 = vpop.permute.xlu0 %2614 }
 0x433   : > { %v2703_v25 = vmul.f32 %v2610_v26, %v5184_v36  ;;  %v2704_v4 = vmul.f32 %v2615_v55, %v5187_v63 }
 0x435   : > { %2727 = vxpose.xlu1.b32.cont [9/16] (narrow) %v2695_v7, 8  ;;  %2751 = vxpose.xlu0.b32.start [1/16] (narrow) %v2703_v25, 8 }
 0x436   : > { %v2620_v35 = vpop.permute.xlu1 %2619  ;;  %v2625_v33 = vpop.permute.xlu0 %2624 }
 0x437   : > { %v2705_v45 = vmul.f32 %v2620_v35, %v5192_v43  ;;  %v2706_v36 = vmul.f32 %v2625_v33, %v5194_v23 }
 0x439   : > { %2728 = vxpose.xlu1.b32.cont [10/16] (narrow) %v2696_v62, 8  ;;  %2752 = vxpose.xlu0.b32.cont [2/16] (narrow) %v2704_v4, 8 }
 0x43a   : > { %v2630_v50 = vpop.permute.xlu1 %2629  ;;  %v2635_v15 = vpop.permute.xlu0 %2634 }
 0x43b   : > { %v2707_v63 = vmul.f32 %v2630_v50, %v5198_v12  ;;  %v2708_v43 = vmul.f32 %v2635_v15, %v5200_v16 }
 0x43d   : > { %2729 = vxpose.xlu1.b32.cont [11/16] (narrow) %v2697_v61, 8  ;;  %2753 = vxpose.xlu0.b32.cont [3/16] (narrow) %v2705_v45, 8 }
 0x43e   : > { %v2640_v54 = vpop.permute.xlu1 %2639  ;;  %v2645_v2 = vpop.permute.xlu0 %2644 }
 0x43f   : > { %v2709_v23 = vmul.f32 %v2640_v54, %v5204_v13  ;;  %v2710_v12 = vmul.f32 %v2645_v2, %v5206_v51 }
 0x441   : > { %2730 = vxpose.xlu1.b32.cont [12/16] (narrow) %v2698_v8, 8  ;;  %2754 = vxpose.xlu0.b32.cont [4/16] (narrow) %v2706_v36, 8 }
 0x442   : > { %v2650_v20 = vpop.permute.xlu1 %2649  ;;  %v2655_v16 = vpop.permute.xlu0 %2654 }
 0x443   : > { %v2711_v17 = vmul.f32 %v2650_v20, %v5210_v30  ;;  %v2712_v24 = vmul.f32 %v2655_v16, %v5212_v48 }
 0x445   : > { %2731 = vxpose.xlu1.b32.cont [13/16] (narrow) %v2699_v56, 8  ;;  %2755 = vxpose.xlu0.b32.cont [5/16] (narrow) %v2707_v63, 8 }
 0x446   : > { %v2665_v13 = vpop.permute.xlu0 %2664 }
 0x447   : > { %v2714_v28 = vmul.f32 %v2665_v13, %v5218_v1  ;;  %v2783_v1 = vld [vmem:[%s4073_s26] sm:$0xff] }
 0x449   : > { %2732 = vxpose.xlu1.b32.cont [14/16] (narrow) %v2700_v59, 8  ;;  %2756 = vxpose.xlu0.b32.cont [6/16] (narrow) %v2708_v43, 8  ;;  %v2660_v14 = vpop.permute.xlu1 %2659 }
 0x44a   : > { %v2713_v52 = vmul.f32 %v2660_v14, %v5216_v18 }
 0x44d   : > { %2733 = vxpose.xlu1.b32.cont [15/16] (narrow) %v2701_v40, 8  ;;  %2757 = vxpose.xlu0.b32.cont [7/16] (narrow) %v2709_v23, 8 }
 0x44e   : > { %v2675_v37 = vpop.permute.xlu0 %2674 }
 0x44f   : > { %v2716_v30 = vmul.f32 %v2675_v37, %v5224_v57 }
 0x450   : > { %v2670_v10 = vpop.permute.xlu1 %2669 }
 0x451   : > { %2734 = vxpose.xlu1.b32.end [16/16] (narrow) %v2702_v60, 8  ;;  %2758 = vxpose.xlu0.b32.cont [8/16] (narrow) %v2710_v12, 8  ;;  %v2715_v51 = vmul.f32 %v2670_v10, %v5222_v5  ;;  %v2785_v5 = vcombine.high %v2783_v1, %v2783_v1 }
 0x455   : > { %2759 = vxpose.xlu0.b32.cont [9/16] (narrow) %v2711_v17, 8 }
 0x456   : > { %v2685_v18 = vpop.permute.xlu0 %2684 }
 0x457   : > { %v2718_v3 = vmul.f32 %v2685_v18, %v5231_v27 }
 0x458   : > { %v2680_v48 = vpop.permute.xlu1 %2679 }
 0x459   : > { %2760 = vxpose.xlu0.b32.cont [10/16] (narrow) %v2712_v24, 8  ;;  %v2717_v49 = vmul.f32 %v2680_v48, %v5228_v58 }
 0x45d   : > { %2761 = vxpose.xlu0.b32.cont [11/16] (narrow) %v2713_v52, 8 }
 0x461   : > { %2762 = vxpose.xlu0.b32.cont [12/16] (narrow) %v2714_v28, 8 }
 0x465   : > { %2763 = vxpose.xlu0.b32.cont [13/16] (narrow) %v2715_v51, 8 }
 0x469   : > { %2764 = vxpose.xlu0.b32.cont [14/16] (narrow) %v2716_v30, 8 }
 0x46d   : > { %2765 = vxpose.xlu0.b32.cont [15/16] (narrow) %v2717_v49, 8 }
 0x471   : > { %2766 = vxpose.xlu0.b32.end [16/16] (narrow) %v2718_v3, 8 }
 0x495   : > { %v2735_v47 = vpop.trf.xlu1 }
 0x496   : > { %v2787_v31 = vadd.f32 %v2783_v1, %v2735_v47 }
 0x4b5   : > { %v2767_v42 = vpop.trf.xlu0 }
 0x4b6   : > { %v2788_v57 = vadd.f32 %v2785_v5, %v2767_v42 }
 0x4b8   : > { %v2791_v46 = vcombine.low %v2787_v31, %v2788_v57 }
 0x4ba   : > { %2793 = vst [vmem:[%s395_s19] sm:$0xff] %v2791_v46 }
 0x4bb   : > { %3697 = shalt.err (!%p3694_p5)
}
 0x4bc   : > { %s3698_s29 = scalar_lea.hbm %s5277_s1, 128  ;;  %s3702_s13 = scalar_lea.hbm %s5331_s5, 256 }
 0x4bd   : > { %p3699_p1 = scmp.ne.s32.totalorder %s5277_s1, %s3698_s29  ;;  %p3703_p8 = scmp.lt.u32.totalorder %s5277_s1, %s5331_s5 }
 0x4be   : > { %p3704_p12 = scmp.lt.u32.totalorder %s3702_s13, %s3698_s29  ;;  %p3706_p0 = scmp.lt.u32.totalorder %s3698_s29, %s5277_s1 }
 0x4bf   : > { %p3700_p6 = pnand %p3699_p1, %p5551_p9 }
 0x4c0   : > { %p3705_p2 = por %p3704_p12, %p3703_p8 }
 0x4c1   : > { %p3701_p4 = pneg %p3700_p6 }
 0x4c2   : > { %p3707_p10 = por %p3706_p0, %p3705_p2 }
 0x4c4   : > { %p3708_p13 = pnand %p3707_p10, %p3701_p4 }
 0x4c6   : > { %3711 = shalt.err (!%p3708_p13)
}
 0x4c7   : > { %3173 = dma.vmem_to_hbm [thread:$0]  (%p5551_p9), %s5279_s14, 128, %s5277_s1, %s2795_s10  }
 0x4c8 PF: > { %s2823_s11 = sand.u32 1, %s3754_s20   ;;  %p5552_p7 = scmp.ne.s32.totalorder %s5398_s9, 0 }
 0x4c9   : > { %p5553_p11 = scmp.ge.s32.totalorder %s3774_s25, 2  ;;  %s2824_s27 = scalar_lea.sflag [#allocation8], %s2823_s11 }
 0x4cb   : > { %p3189_p3 = pnand %p5553_p11, %p5552_p7 }
 0x4cd   : > { %3749 = dma.done.wait (!%p3189_p3), %s2824_s27, 128  }
 0x4ce   : > { %3751 = vsyncadd (!%p3189_p3), %s2824_s27, 4294967168  ;;  %s28_s25 = sadd.s32 1, %s3774_s25   ;;  %s5554_s16 = sld [smem:[#allocation19_spill]] }
 0x4cf   : > { %p25_p5 = scmp.ge.s32.totalorder %s28_s25, 4   ;;  %s5555_s22 = sld [smem:[#allocation21_spill]] }
 0x4d0   : > { %s5556_s7 = sld [smem:[#allocation20_spill]]  ;;  %s5557_s20 = smov %s3758_s21 }
 0x4d1   : > { %s5559_s23 = smov %s3770_s24  ;;  %27 = sbr.rel (!%p25_p5) target bundleno = 14 (0xe), region = 130 }
 0x4d4   : > { %s5558_s21 = smov %s5554_s16 }
 0x4d6   : > { %s5560_s24 = smov %s5556_s7 }
 0x4d8   :  { %2829 = vsyncpa [#allocation7], 1 }
 0x4d9   :  { %2831 = vsyncpa [#allocation7 + $0x1], 1 }
 0x4da   :  { %2832 = vsyncpa [#allocation10], 1 }
 0x4db   :  { %2834 = vsyncpa [#allocation10 + $0x1], 1 }
 0x4dc   :  { %2835 = vsyncpa [#allocation13], 1 }
 0x4dd   :  { %2837 = vsyncpa [#allocation13 + $0x1], 1 }
 0x4de   :  { %2838 = vsyncpa [#allocation8], 1 }
 0x4df   :  { %2840 = vsyncpa [#allocation8 + $0x1], 1 }

</bundles_post_ra>
